<compile_context>
chip_gen: v5e
topology: v5e:2x2
jax: 0.10.0
libtpu: 0.0.40
codegen_flags: <defaults>
</compile_context>

<pallas_src>
import jax
import jax.numpy as jnp
from jax.experimental import pallas as pl
from jax.experimental.pallas import tpu as pltpu


# ----------------------------------------------------------------------------- kernel

def _make_bottleneck_kernel(has_proj):
    """Builds the fused PreActBottleneck kernel (projection or identity shortcut)."""

    def kernel(*refs):
        if has_proj:
            (x_ref, w1_ref, w2_ref, w3_ref, wsc_ref,
             s1_ref, b1_ref, s2_ref, b2_ref, s3_ref, b3_ref,
             o_ref, y2p_ref) = refs
        else:
            (x_ref, w1_ref, w2_ref, w3_ref,
             s1_ref, b1_ref, s2_ref, b2_ref, s3_ref, b3_ref,
             o_ref, y2p_ref) = refs
            wsc_ref = None

        H, W, C_in = x_ref.shape
        P = w1_ref.shape[1]
        HW = H * W
        COL0 = 8  # y2 parked at an 8-aligned column offset so the padded-copy write stays aligned

        # bn1 + relu on the (H*W, C_in) slab
        x2d = x_ref[...].reshape(HW, C_in)
        a1 = jnp.maximum(x2d * s1_ref[...] + b1_ref[...], 0.0)

        # conv1 (1x1) + bn2 + relu
        y2 = jnp.dot(a1, w1_ref[...], preferred_element_type=jnp.float32)
        y2 = jnp.maximum(y2 * s2_ref[...] + b2_ref[...], 0.0)

        # zero-padded copy of y2 (pre-activation: the conv2 padding applies to y2, NOT to x)
        y2p_ref[...] = jnp.zeros(y2p_ref.shape, jnp.float32)
        y2p_ref[1:H + 1, COL0:COL0 + W, :] = y2.reshape(H, W, P)

        # conv2: 3x3, pad=1 -> 9 shifted MXU matmuls accumulated in registers
        z2 = jnp.zeros((HW, P), jnp.float32)
        for dy in range(3):
            rows = y2p_ref[dy:dy + H, :, :]                       # (H, W+16, P), aligned read
            for dx in range(3):
                c0 = COL0 + dx - 1
                tap = rows[:, c0:c0 + W, :].reshape(HW, P)        # sublane-shifted slice
                z2 = z2 + jnp.dot(tap, w2_ref[dy * 3 + dx],
                                  preferred_element_type=jnp.float32)

        # bn3 + relu -> conv3 (1x1) -> + shortcut, single dense store
        a3 = jnp.maximum(z2 * s3_ref[...] + b3_ref[...], 0.0)
        out = jnp.dot(a3, w3_ref[...], preferred_element_type=jnp.float32)
        if has_proj:
            out = out + jnp.dot(a1, wsc_ref[...], preferred_element_type=jnp.float32)
        else:
            out = out + x2d                                       # identity (C_in == C_out)
        o_ref[...] = out.reshape(H, W, out.shape[-1])

    return kernel


# ----------------------------------------------------------------------------- wrapper

def _fold_bn(gamma, beta, mean, var, eps):
    scale = gamma.astype(jnp.float32) * jax.lax.rsqrt(var.astype(jnp.float32) + eps)
    shift = beta.astype(jnp.float32) - mean.astype(jnp.float32) * scale
    return scale.reshape(1, -1), shift.reshape(1, -1)


def preact_bottleneck_forward(x_nchw, params, *, stride=1, eps=1e-5):
    """Fused Pallas forward of PreActBottleneck.

    x_nchw: (B, C_in, H, W) float32
    params: bn{1,2,3}_{gamma,beta,mean,var}; w1 (C_in,P); w2 (3,3,P,P) HWIO; w3 (P,4P);
            optional wsc (C_in,4P) for the projection shortcut.
    Returns (B, 4P, H//stride, W//stride), matching the PyTorch module (inference-mode BN).
    """
    B, C_in, H, W = x_nchw.shape
    P = params["w1"].shape[1]
    C_out = params["w3"].shape[1]
    has_proj = params.get("wsc", None) is not None

    s1, b1 = _fold_bn(params["bn1_gamma"], params["bn1_beta"],
                      params["bn1_mean"], params["bn1_var"], eps)
    s2, b2 = _fold_bn(params["bn2_gamma"], params["bn2_beta"],
                      params["bn2_mean"], params["bn2_var"], eps)
    s3, b3 = _fold_bn(params["bn3_gamma"], params["bn3_beta"],
                      params["bn3_mean"], params["bn3_var"], eps)

    w1 = params["w1"].astype(jnp.float32)                       # (C_in, P)
    w2 = params["w2"].astype(jnp.float32).reshape(9, P, P)      # (dy*3+dx, C_in, C_out) taps
    w3 = params["w3"].astype(jnp.float32)                       # (P, C_out)

    # NCHW -> NHWC: spatial positions on matmul rows, channels on lanes.
    x_nhwc = jnp.transpose(x_nchw, (0, 2, 3, 1)).astype(jnp.float32)

    in_specs = [pl.BlockSpec((None, H, W, C_in), lambda b: (b, 0, 0, 0)),
                pl.BlockSpec((C_in, P), lambda b: (0, 0)),
                pl.BlockSpec((9, P, P), lambda b: (0, 0, 0)),
                pl.BlockSpec((P, C_out), lambda b: (0, 0))]
    args = [x_nhwc, w1, w2, w3]
    if has_proj:
        in_specs.append(pl.BlockSpec((C_in, C_out), lambda b: (0, 0)))
        args.append(params["wsc"].astype(jnp.float32))
    in_specs += [pl.BlockSpec((1, C_in), lambda b: (0, 0)),
                 pl.BlockSpec((1, C_in), lambda b: (0, 0)),
                 pl.BlockSpec((1, P), lambda b: (0, 0)),
                 pl.BlockSpec((1, P), lambda b: (0, 0)),
                 pl.BlockSpec((1, P), lambda b: (0, 0)),
                 pl.BlockSpec((1, P), lambda b: (0, 0))]
    args += [s1, b1, s2, b2, s3, b3]

    out_nhwc = pl.pallas_call(
        _make_bottleneck_kernel(has_proj),
        out_shape=jax.ShapeDtypeStruct((B, H, W, C_out), jnp.float32),
        grid_spec=pltpu.PrefetchScalarGridSpec(
            num_scalar_prefetch=0,
            grid=(B,),
            in_specs=in_specs,
            out_specs=pl.BlockSpec((None, H, W, C_out), lambda b: (b, 0, 0, 0)),
            scratch_shapes=[pltpu.VMEM((H + 2, W + 16, P), jnp.float32)],
        ),
        compiler_params=pltpu.CompilerParams(dimension_semantics=("parallel",)),
    )(*args)

    # stride handled by subsampling the stride-1 result (identical math for k=3 pad=1 since
    # bn3/relu/conv3/shortcut are all pointwise)
    if stride > 1:
        out_nhwc = out_nhwc[:, ::stride, ::stride, :]
    return jnp.transpose(out_nhwc, (0, 3, 1, 2))


# ----------------------------------------------------------------------------- reference

def preact_bottleneck_reference(x_nchw, params, *, stride=1, eps=1e-5):
    """Pure-JAX reference mirroring the PyTorch forward (inference-mode BN)."""
    hp = jax.lax.Precision.HIGHEST

    def bn(x, g, b, m, v):
        return (x - m) * jax.lax.rsqrt(v + eps) * g + b

    def conv1x1(x, w, s=1):
        xs = x[:, ::s, ::s, :] if s > 1 else x
        return jnp.einsum("bhwc,cd->bhwd", xs, w, precision=hp)

    def conv3x3(x, w, s):
        Hh, Ww = x.shape[1], x.shape[2]
        xp = jnp.pad(x, ((0, 0), (1, 1), (1, 1), (0, 0)))
        acc = 0.0
        for dy in range(3):
            for dx in range(3):
                acc = acc + jnp.einsum("bhwc,cd->bhwd",
                                       xp[:, dy:dy + Hh, dx:dx + Ww, :], w[dy, dx],
                                       precision=hp)
        return acc[:, ::s, ::s, :] if s > 1 else acc

    x = jnp.transpose(x_nchw, (0, 2, 3, 1)).astype(jnp.float32)
    y1 = jax.nn.relu(bn(x, params["bn1_gamma"], params["bn1_beta"],
                        params["bn1_mean"], params["bn1_var"]))
    sc = conv1x1(y1, params["wsc"], stride) if params.get("wsc", None) is not None else x
    z1 = conv1x1(y1, params["w1"])
    y2 = jax.nn.relu(bn(z1, params["bn2_gamma"], params["bn2_beta"],
                        params["bn2_mean"], params["bn2_var"]))
    z2 = conv3x3(y2, params["w2"], stride)
    y3 = jax.nn.relu(bn(z2, params["bn3_gamma"], params["bn3_beta"],
                        params["bn3_mean"], params["bn3_var"]))
    out = conv1x1(y3, params["w3"]) + sc
    return jnp.transpose(out, (0, 3, 1, 2))


# ----------------------------------------------------------------------------- demo

def _make_params(key, in_planes, planes, *, expansion=4, with_proj=True):
    C_out = expansion * planes
    ks = jax.random.split(key, 16)

    def un(k, shape, lo, hi):
        return jax.random.uniform(k, shape, jnp.float32, lo, hi)

    def nrm(k, shape):
        return jax.random.normal(k, shape, jnp.float32)

    p = {
        "bn1_gamma": un(ks[0], (in_planes,), 0.5, 1.5),
        "bn1_beta": 0.1 * nrm(ks[1], (in_planes,)),
        "bn1_mean": 0.1 * nrm(ks[2], (in_planes,)),
        "bn1_var": un(ks[3], (in_planes,), 0.5, 1.5),
        "bn2_gamma": un(ks[4], (planes,), 0.5, 1.5),
        "bn2_beta": 0.1 * nrm(ks[5], (planes,)),
        "bn2_mean": 0.1 * nrm(ks[6], (planes,)),
        "bn2_var": un(ks[7], (planes,), 0.5, 1.5),
        "bn3_gamma": un(ks[8], (planes,), 0.5, 1.5),
        "bn3_beta": 0.1 * nrm(ks[9], (planes,)),
        "bn3_mean": 0.1 * nrm(ks[10], (planes,)),
        "bn3_var": un(ks[11], (planes,), 0.5, 1.5),
        # conv weights in matmul / HWIO form (no biases, matching the PyTorch module)
        "w1": nrm(ks[12], (in_planes, planes)) / jnp.sqrt(jnp.float32(in_planes)),
        "w2": nrm(ks[13], (3, 3, planes, planes)) / jnp.sqrt(jnp.float32(9 * planes)),
        "w3": nrm(ks[14], (planes, C_out)) / jnp.sqrt(jnp.float32(planes)),
    }
    if with_proj:
        p["wsc"] = nrm(ks[15], (in_planes, C_out)) / jnp.sqrt(jnp.float32(in_planes))
    return p


def _check(out, ref, shape, tag):
    assert out.shape == shape, (tag, out.shape, shape)
    max_diff = float(jnp.max(jnp.abs(out - ref)))
    assert jnp.allclose(out, ref, atol=1e-3, rtol=1e-3), f"{tag}: max|diff|={max_diff}"


if __name__ == "__main__":
    key = jax.random.PRNGKey(0)
    k = jax.random.split(key, 4)
    fwd = jax.jit(preact_bottleneck_forward, static_argnames=("stride", "eps"))

    B, planes, H, W = 2, 4, 16, 16
    C_out = 4 * planes

    # 1) projection shortcut (in_planes != expansion*planes), stride 1
    in_planes = 4
    x = jax.random.normal(k[0], (B, in_planes, H, W), jnp.float32)
    params = _make_params(k[1], in_planes, planes, with_proj=True)
    out = jax.block_until_ready(fwd(x, params, stride=1))
    _check(out, preact_bottleneck_reference(x, params, stride=1), (B, C_out, H, W), "proj/s1")

    # 2) identity shortcut (in_planes == expansion*planes), stride 1
    in_planes2 = 16
    x2 = jax.random.normal(k[2], (B, in_planes2, H, W), jnp.float32)
    params2 = _make_params(k[3], in_planes2, planes, with_proj=False)
    out2 = jax.block_until_ready(fwd(x2, params2, stride=1))
    _check(out2, preact_bottleneck_reference(x2, params2, stride=1), (B, C_out, H, W), "id/s1")

    # 3) projection shortcut with stride 2 (same weights as case 1)
    out3 = jax.block_until_ready(fwd(x, params, stride=2))
    _check(out3, preact_bottleneck_reference(x, params, stride=2),
           (B, C_out, H // 2, W // 2), "proj/s2")

    print("KERNEL_OK")
</pallas_src>

<mosaic_0001>
module attributes {stable_mosaic.version = 11 : i64} {
  func.func @kernel(%arg0: i32, %arg1: memref<1x16x16x4xf32, #tpu.memory_space<vmem>>, %arg2: memref<4x4xf32, #tpu.memory_space<vmem>>, %arg3: memref<9x4x4xf32, #tpu.memory_space<vmem>>, %arg4: memref<4x16xf32, #tpu.memory_space<vmem>>, %arg5: memref<4x16xf32, #tpu.memory_space<vmem>>, %arg6: memref<1x4xf32, #tpu.memory_space<vmem>>, %arg7: memref<1x4xf32, #tpu.memory_space<vmem>>, %arg8: memref<1x4xf32, #tpu.memory_space<vmem>>, %arg9: memref<1x4xf32, #tpu.memory_space<vmem>>, %arg10: memref<1x4xf32, #tpu.memory_space<vmem>>, %arg11: memref<1x4xf32, #tpu.memory_space<vmem>>, %arg12: memref<1x16x16x16xf32, #tpu.memory_space<vmem>>, %arg13: memref<18x32x4xf32, #tpu.memory_space<vmem>>) attributes {dimension_semantics = [#tpu.dimension_semantics<parallel>], iteration_bounds = array<i64: 2>, scalar_prefetch = 0 : i64, scratch_operands = 1 : i64, tpu.core_type = #tpu.core_type<tc>, window_params = [{transform_indices = @transform_0, window_bounds = array<i64: 1, 16, 16, 4>}, {pipeline_mode = #tpu.pipeline_mode<synchronous>, transform_indices = @transform_1, window_bounds = array<i64: 4, 4>}, {pipeline_mode = #tpu.pipeline_mode<synchronous>, transform_indices = @transform_2, window_bounds = array<i64: 9, 4, 4>}, {pipeline_mode = #tpu.pipeline_mode<synchronous>, transform_indices = @transform_3, window_bounds = array<i64: 4, 16>}, {pipeline_mode = #tpu.pipeline_mode<synchronous>, transform_indices = @transform_4, window_bounds = array<i64: 4, 16>}, {pipeline_mode = #tpu.pipeline_mode<synchronous>, transform_indices = @transform_5, window_bounds = array<i64: 1, 4>}, {pipeline_mode = #tpu.pipeline_mode<synchronous>, transform_indices = @transform_6, window_bounds = array<i64: 1, 4>}, {pipeline_mode = #tpu.pipeline_mode<synchronous>, transform_indices = @transform_7, window_bounds = array<i64: 1, 4>}, {pipeline_mode = #tpu.pipeline_mode<synchronous>, transform_indices = @transform_8, window_bounds = array<i64: 1, 4>}, {pipeline_mode = #tpu.pipeline_mode<synchronous>, transform_indices = @transform_9, window_bounds = array<i64: 1, 4>}, {pipeline_mode = #tpu.pipeline_mode<synchronous>, transform_indices = @transform_10, window_bounds = array<i64: 1, 4>}, {transform_indices = @transform_11, window_bounds = array<i64: 1, 16, 16, 16>}]} {
    %c0 = arith.constant 0 : index
    %c0_0 = arith.constant 0 : index
    %c0_1 = arith.constant 0 : index
    %c0_2 = arith.constant 0 : index
    %0 = vector.load %arg1[%c0, %c0_0, %c0_1, %c0_2] : memref<1x16x16x4xf32, #tpu.memory_space<vmem>>, vector<1x16x16x4xf32>
    %1 = vector.shape_cast %0 : vector<1x16x16x4xf32> to vector<16x16x4xf32>
    %2 = vector.shape_cast %1 : vector<16x16x4xf32> to vector<256x4xf32>
    %c0_3 = arith.constant 0 : index
    %c0_4 = arith.constant 0 : index
    %3 = vector.load %arg6[%c0_3, %c0_4] : memref<1x4xf32, #tpu.memory_space<vmem>>, vector<1x4xf32>
    %4 = vector.broadcast %3 : vector<1x4xf32> to vector<256x4xf32>
    %5 = arith.mulf %2, %4 : vector<256x4xf32>
    %c0_5 = arith.constant 0 : index
    %c0_6 = arith.constant 0 : index
    %6 = vector.load %arg7[%c0_5, %c0_6] : memref<1x4xf32, #tpu.memory_space<vmem>>, vector<1x4xf32>
    %7 = vector.broadcast %6 : vector<1x4xf32> to vector<256x4xf32>
    %8 = arith.addf %5, %7 : vector<256x4xf32>
    %cst = arith.constant 0.000000e+00 : f32
    %9 = vector.broadcast %cst : f32 to vector<256x4xf32>
    %10 = arith.maximumf %8, %9 : vector<256x4xf32>
    %c0_7 = arith.constant 0 : index
    %c0_8 = arith.constant 0 : index
    %11 = vector.load %arg2[%c0_7, %c0_8] : memref<4x4xf32, #tpu.memory_space<vmem>>, vector<4x4xf32>
    %cst_9 = arith.constant dense<0.000000e+00> : vector<256x4xf32>
    %12 = tpu.matmul %10, %11, %cst_9 {dimension_numbers = #tpu.dot_dimension_numbers<[1], [0], [0], [1], [0, 0, 1, 1], [], []>} : vector<256x4xf32>, vector<4x4xf32>, vector<256x4xf32> -> vector<256x4xf32>
    %c0_10 = arith.constant 0 : index
    %c0_11 = arith.constant 0 : index
    %13 = vector.load %arg8[%c0_10, %c0_11] : memref<1x4xf32, #tpu.memory_space<vmem>>, vector<1x4xf32>
    %14 = vector.broadcast %13 : vector<1x4xf32> to vector<256x4xf32>
    %15 = arith.mulf %12, %14 : vector<256x4xf32>
    %c0_12 = arith.constant 0 : index
    %c0_13 = arith.constant 0 : index
    %16 = vector.load %arg9[%c0_12, %c0_13] : memref<1x4xf32, #tpu.memory_space<vmem>>, vector<1x4xf32>
    %17 = vector.broadcast %16 : vector<1x4xf32> to vector<256x4xf32>
    %18 = arith.addf %15, %17 : vector<256x4xf32>
    %cst_14 = arith.constant 0.000000e+00 : f32
    %19 = vector.broadcast %cst_14 : f32 to vector<256x4xf32>
    %20 = arith.maximumf %18, %19 : vector<256x4xf32>
    %cst_15 = arith.constant 0.000000e+00 : f32
    %21 = vector.broadcast %cst_15 : f32 to vector<18x32x4xf32>
    %c0_16 = arith.constant 0 : index
    %c0_17 = arith.constant 0 : index
    %c0_18 = arith.constant 0 : index
    %22 = vector.load %arg13[%c0_16, %c0_17, %c0_18] : memref<18x32x4xf32, #tpu.memory_space<vmem>>, vector<18x32x4xf32>
    tpu.vector_store %arg13[%c0_16, %c0_17, %c0_18], %21 {strides = array<i32>} : memref<18x32x4xf32, #tpu.memory_space<vmem>>, vector<18x32x4xf32>,
    %23 = vector.shape_cast %20 : vector<256x4xf32> to vector<16x16x4xf32>
    %c1 = arith.constant 1 : index
    %c8 = arith.constant 8 : index
    %c0_19 = arith.constant 0 : index
    %24 = vector.load %arg13[%c1, %c8, %c0_19] : memref<18x32x4xf32, #tpu.memory_space<vmem>>, vector<16x16x4xf32>
    tpu.vector_store %arg13[%c1, %c8, %c0_19], %23 {strides = array<i32>} : memref<18x32x4xf32, #tpu.memory_space<vmem>>, vector<16x16x4xf32>,
    %cst_20 = arith.constant 0.000000e+00 : f32
    %25 = vector.broadcast %cst_20 : f32 to vector<256x4xf32>
    %c0_21 = arith.constant 0 : index
    %c0_22 = arith.constant 0 : index
    %c0_23 = arith.constant 0 : index
    %26 = vector.load %arg13[%c0_21, %c0_22, %c0_23] : memref<18x32x4xf32, #tpu.memory_space<vmem>>, vector<16x32x4xf32>
    %27 = vector.extract_strided_slice %26 {offsets = [0, 7, 0], sizes = [16, 16, 4], strides = [1, 1, 1]} : vector<16x32x4xf32> to vector<16x16x4xf32>
    %28 = vector.shape_cast %27 : vector<16x16x4xf32> to vector<256x4xf32>
    %c0_24 = arith.constant 0 : index
    %c0_25 = arith.constant 0 : index
    %c0_26 = arith.constant 0 : index
    %29 = vector.load %arg3[%c0_24, %c0_25, %c0_26] : memref<9x4x4xf32, #tpu.memory_space<vmem>>, vector<1x4x4xf32>
    %30 = vector.shape_cast %29 : vector<1x4x4xf32> to vector<4x4xf32>
    %cst_27 = arith.constant dense<0.000000e+00> : vector<256x4xf32>
    %31 = tpu.matmul %28, %30, %cst_27 {dimension_numbers = #tpu.dot_dimension_numbers<[1], [0], [0], [1], [0, 0, 1, 1], [], []>} : vector<256x4xf32>, vector<4x4xf32>, vector<256x4xf32> -> vector<256x4xf32>
    %32 = arith.addf %25, %31 : vector<256x4xf32>
    %33 = vector.extract_strided_slice %26 {offsets = [0, 8, 0], sizes = [16, 16, 4], strides = [1, 1, 1]} : vector<16x32x4xf32> to vector<16x16x4xf32>
    %34 = vector.shape_cast %33 : vector<16x16x4xf32> to vector<256x4xf32>
    %c1_28 = arith.constant 1 : index
    %c0_29 = arith.constant 0 : index
    %c0_30 = arith.constant 0 : index
    %35 = vector.load %arg3[%c1_28, %c0_29, %c0_30] : memref<9x4x4xf32, #tpu.memory_space<vmem>>, vector<1x4x4xf32>
    %36 = vector.shape_cast %35 : vector<1x4x4xf32> to vector<4x4xf32>
    %cst_31 = arith.constant dense<0.000000e+00> : vector<256x4xf32>
    %37 = tpu.matmul %34, %36, %cst_31 {dimension_numbers = #tpu.dot_dimension_numbers<[1], [0], [0], [1], [0, 0, 1, 1], [], []>} : vector<256x4xf32>, vector<4x4xf32>, vector<256x4xf32> -> vector<256x4xf32>
    %38 = arith.addf %32, %37 : vector<256x4xf32>
    %39 = vector.extract_strided_slice %26 {offsets = [0, 9, 0], sizes = [16, 16, 4], strides = [1, 1, 1]} : vector<16x32x4xf32> to vector<16x16x4xf32>
    %40 = vector.shape_cast %39 : vector<16x16x4xf32> to vector<256x4xf32>
    %c2 = arith.constant 2 : index
    %c0_32 = arith.constant 0 : index
    %c0_33 = arith.constant 0 : index
    %41 = vector.load %arg3[%c2, %c0_32, %c0_33] : memref<9x4x4xf32, #tpu.memory_space<vmem>>, vector<1x4x4xf32>
    %42 = vector.shape_cast %41 : vector<1x4x4xf32> to vector<4x4xf32>
    %cst_34 = arith.constant dense<0.000000e+00> : vector<256x4xf32>
    %43 = tpu.matmul %40, %42, %cst_34 {dimension_numbers = #tpu.dot_dimension_numbers<[1], [0], [0], [1], [0, 0, 1, 1], [], []>} : vector<256x4xf32>, vector<4x4xf32>, vector<256x4xf32> -> vector<256x4xf32>
    %44 = arith.addf %38, %43 : vector<256x4xf32>
    %c1_35 = arith.constant 1 : index
    %c0_36 = arith.constant 0 : index
    %c0_37 = arith.constant 0 : index
    %45 = vector.load %arg13[%c1_35, %c0_36, %c0_37] : memref<18x32x4xf32, #tpu.memory_space<vmem>>, vector<16x32x4xf32>
    %46 = vector.extract_strided_slice %45 {offsets = [0, 7, 0], sizes = [16, 16, 4], strides = [1, 1, 1]} : vector<16x32x4xf32> to vector<16x16x4xf32>
    %47 = vector.shape_cast %46 : vector<16x16x4xf32> to vector<256x4xf32>
    %c3 = arith.constant 3 : index
    %c0_38 = arith.constant 0 : index
    %c0_39 = arith.constant 0 : index
    %48 = vector.load %arg3[%c3, %c0_38, %c0_39] : memref<9x4x4xf32, #tpu.memory_space<vmem>>, vector<1x4x4xf32>
    %49 = vector.shape_cast %48 : vector<1x4x4xf32> to vector<4x4xf32>
    %cst_40 = arith.constant dense<0.000000e+00> : vector<256x4xf32>
    %50 = tpu.matmul %47, %49, %cst_40 {dimension_numbers = #tpu.dot_dimension_numbers<[1], [0], [0], [1], [0, 0, 1, 1], [], []>} : vector<256x4xf32>, vector<4x4xf32>, vector<256x4xf32> -> vector<256x4xf32>
    %51 = arith.addf %44, %50 : vector<256x4xf32>
    %52 = vector.extract_strided_slice %45 {offsets = [0, 8, 0], sizes = [16, 16, 4], strides = [1, 1, 1]} : vector<16x32x4xf32> to vector<16x16x4xf32>
    %53 = vector.shape_cast %52 : vector<16x16x4xf32> to vector<256x4xf32>
    %c4 = arith.constant 4 : index
    %c0_41 = arith.constant 0 : index
    %c0_42 = arith.constant 0 : index
    %54 = vector.load %arg3[%c4, %c0_41, %c0_42] : memref<9x4x4xf32, #tpu.memory_space<vmem>>, vector<1x4x4xf32>
    %55 = vector.shape_cast %54 : vector<1x4x4xf32> to vector<4x4xf32>
    %cst_43 = arith.constant dense<0.000000e+00> : vector<256x4xf32>
    %56 = tpu.matmul %53, %55, %cst_43 {dimension_numbers = #tpu.dot_dimension_numbers<[1], [0], [0], [1], [0, 0, 1, 1], [], []>} : vector<256x4xf32>, vector<4x4xf32>, vector<256x4xf32> -> vector<256x4xf32>
    %57 = arith.addf %51, %56 : vector<256x4xf32>
    %58 = vector.extract_strided_slice %45 {offsets = [0, 9, 0], sizes = [16, 16, 4], strides = [1, 1, 1]} : vector<16x32x4xf32> to vector<16x16x4xf32>
    %59 = vector.shape_cast %58 : vector<16x16x4xf32> to vector<256x4xf32>
    %c5 = arith.constant 5 : index
    %c0_44 = arith.constant 0 : index
    %c0_45 = arith.constant 0 : index
    %60 = vector.load %arg3[%c5, %c0_44, %c0_45] : memref<9x4x4xf32, #tpu.memory_space<vmem>>, vector<1x4x4xf32>
    %61 = vector.shape_cast %60 : vector<1x4x4xf32> to vector<4x4xf32>
    %cst_46 = arith.constant dense<0.000000e+00> : vector<256x4xf32>
    %62 = tpu.matmul %59, %61, %cst_46 {dimension_numbers = #tpu.dot_dimension_numbers<[1], [0], [0], [1], [0, 0, 1, 1], [], []>} : vector<256x4xf32>, vector<4x4xf32>, vector<256x4xf32> -> vector<256x4xf32>
    %63 = arith.addf %57, %62 : vector<256x4xf32>
    %c2_47 = arith.constant 2 : index
    %c0_48 = arith.constant 0 : index
    %c0_49 = arith.constant 0 : index
    %64 = vector.load %arg13[%c2_47, %c0_48, %c0_49] : memref<18x32x4xf32, #tpu.memory_space<vmem>>, vector<16x32x4xf32>
    %65 = vector.extract_strided_slice %64 {offsets = [0, 7, 0], sizes = [16, 16, 4], strides = [1, 1, 1]} : vector<16x32x4xf32> to vector<16x16x4xf32>
    %66 = vector.shape_cast %65 : vector<16x16x4xf32> to vector<256x4xf32>
    %c6 = arith.constant 6 : index
    %c0_50 = arith.constant 0 : index
    %c0_51 = arith.constant 0 : index
    %67 = vector.load %arg3[%c6, %c0_50, %c0_51] : memref<9x4x4xf32, #tpu.memory_space<vmem>>, vector<1x4x4xf32>
    %68 = vector.shape_cast %67 : vector<1x4x4xf32> to vector<4x4xf32>
    %cst_52 = arith.constant dense<0.000000e+00> : vector<256x4xf32>
    %69 = tpu.matmul %66, %68, %cst_52 {dimension_numbers = #tpu.dot_dimension_numbers<[1], [0], [0], [1], [0, 0, 1, 1], [], []>} : vector<256x4xf32>, vector<4x4xf32>, vector<256x4xf32> -> vector<256x4xf32>
    %70 = arith.addf %63, %69 : vector<256x4xf32>
    %71 = vector.extract_strided_slice %64 {offsets = [0, 8, 0], sizes = [16, 16, 4], strides = [1, 1, 1]} : vector<16x32x4xf32> to vector<16x16x4xf32>
    %72 = vector.shape_cast %71 : vector<16x16x4xf32> to vector<256x4xf32>
    %c7 = arith.constant 7 : index
    %c0_53 = arith.constant 0 : index
    %c0_54 = arith.constant 0 : index
    %73 = vector.load %arg3[%c7, %c0_53, %c0_54] : memref<9x4x4xf32, #tpu.memory_space<vmem>>, vector<1x4x4xf32>
    %74 = vector.shape_cast %73 : vector<1x4x4xf32> to vector<4x4xf32>
    %cst_55 = arith.constant dense<0.000000e+00> : vector<256x4xf32>
    %75 = tpu.matmul %72, %74, %cst_55 {dimension_numbers = #tpu.dot_dimension_numbers<[1], [0], [0], [1], [0, 0, 1, 1], [], []>} : vector<256x4xf32>, vector<4x4xf32>, vector<256x4xf32> -> vector<256x4xf32>
    %76 = arith.addf %70, %75 : vector<256x4xf32>
    %77 = vector.extract_strided_slice %64 {offsets = [0, 9, 0], sizes = [16, 16, 4], strides = [1, 1, 1]} : vector<16x32x4xf32> to vector<16x16x4xf32>
    %78 = vector.shape_cast %77 : vector<16x16x4xf32> to vector<256x4xf32>
    %c8_56 = arith.constant 8 : index
    %c0_57 = arith.constant 0 : index
    %c0_58 = arith.constant 0 : index
    %79 = vector.load %arg3[%c8_56, %c0_57, %c0_58] : memref<9x4x4xf32, #tpu.memory_space<vmem>>, vector<1x4x4xf32>
    %80 = vector.shape_cast %79 : vector<1x4x4xf32> to vector<4x4xf32>
    %cst_59 = arith.constant dense<0.000000e+00> : vector<256x4xf32>
    %81 = tpu.matmul %78, %80, %cst_59 {dimension_numbers = #tpu.dot_dimension_numbers<[1], [0], [0], [1], [0, 0, 1, 1], [], []>} : vector<256x4xf32>, vector<4x4xf32>, vector<256x4xf32> -> vector<256x4xf32>
    %82 = arith.addf %76, %81 : vector<256x4xf32>
    %c0_60 = arith.constant 0 : index
    %c0_61 = arith.constant 0 : index
    %83 = vector.load %arg10[%c0_60, %c0_61] : memref<1x4xf32, #tpu.memory_space<vmem>>, vector<1x4xf32>
    %84 = vector.broadcast %83 : vector<1x4xf32> to vector<256x4xf32>
    %85 = arith.mulf %82, %84 : vector<256x4xf32>
    %c0_62 = arith.constant 0 : index
    %c0_63 = arith.constant 0 : index
    %86 = vector.load %arg11[%c0_62, %c0_63] : memref<1x4xf32, #tpu.memory_space<vmem>>, vector<1x4xf32>
    %87 = vector.broadcast %86 : vector<1x4xf32> to vector<256x4xf32>
    %88 = arith.addf %85, %87 : vector<256x4xf32>
    %cst_64 = arith.constant 0.000000e+00 : f32
    %89 = vector.broadcast %cst_64 : f32 to vector<256x4xf32>
    %90 = arith.maximumf %88, %89 : vector<256x4xf32>
    %c0_65 = arith.constant 0 : index
    %c0_66 = arith.constant 0 : index
    %91 = vector.load %arg4[%c0_65, %c0_66] : memref<4x16xf32, #tpu.memory_space<vmem>>, vector<4x16xf32>
    %cst_67 = arith.constant dense<0.000000e+00> : vector<256x16xf32>
    %92 = tpu.matmul %90, %91, %cst_67 {dimension_numbers = #tpu.dot_dimension_numbers<[1], [0], [0], [1], [0, 0, 1, 1], [], []>} : vector<256x4xf32>, vector<4x16xf32>, vector<256x16xf32> -> vector<256x16xf32>
    %c0_68 = arith.constant 0 : index
    %c0_69 = arith.constant 0 : index
    %93 = vector.load %arg5[%c0_68, %c0_69] : memref<4x16xf32, #tpu.memory_space<vmem>>, vector<4x16xf32>
    %cst_70 = arith.constant dense<0.000000e+00> : vector<256x16xf32>
    %94 = tpu.matmul %10, %93, %cst_70 {dimension_numbers = #tpu.dot_dimension_numbers<[1], [0], [0], [1], [0, 0, 1, 1], [], []>} : vector<256x4xf32>, vector<4x16xf32>, vector<256x16xf32> -> vector<256x16xf32>
    %95 = arith.addf %92, %94 : vector<256x16xf32>
    %96 = vector.shape_cast %95 : vector<256x16xf32> to vector<16x16x16xf32>
    %c0_71 = arith.constant 0 : index
    %c0_72 = arith.constant 0 : index
    %c0_73 = arith.constant 0 : index
    %c0_74 = arith.constant 0 : index
    %97 = vector.load %arg12[%c0_71, %c0_72, %c0_73, %c0_74] : memref<1x16x16x16xf32, #tpu.memory_space<vmem>>, vector<1x16x16x16xf32>
    %98 = vector.shape_cast %97 : vector<1x16x16x16xf32> to vector<16x16x16xf32>
    %99 = vector.shape_cast %96 : vector<16x16x16xf32> to vector<1x16x16x16xf32>
    tpu.vector_store %arg12[%c0_71, %c0_72, %c0_73, %c0_74], %99 {strides = array<i32>} : memref<1x16x16x16xf32, #tpu.memory_space<vmem>>, vector<1x16x16x16xf32>,
    return
  }
  func.func @transform_0(%arg0: i32) -> (i32, i32, i32, i32) {
    %c0_i32 = arith.constant 0 : i32
    %c0_i32_0 = arith.constant 0 : i32
    %c0_i32_1 = arith.constant 0 : i32
    %c0_i32_2 = arith.constant 0 : i32
    return %arg0, %c0_i32, %c0_i32_0, %c0_i32_1 : i32, i32, i32, i32
  }
  func.func @transform_1(%arg0: i32) -> (i32, i32) {
    %c0_i32 = arith.constant 0 : i32
    %c0_i32_0 = arith.constant 0 : i32
    %c0_i32_1 = arith.constant 0 : i32
    return %c0_i32, %c0_i32_0 : i32, i32
  }
  func.func @transform_2(%arg0: i32) -> (i32, i32, i32) {
    %c0_i32 = arith.constant 0 : i32
    %c0_i32_0 = arith.constant 0 : i32
    %c0_i32_1 = arith.constant 0 : i32
    %c0_i32_2 = arith.constant 0 : i32
    return %c0_i32, %c0_i32_0, %c0_i32_1 : i32, i32, i32
  }
  func.func @transform_3(%arg0: i32) -> (i32, i32) {
    %c0_i32 = arith.constant 0 : i32
    %c0_i32_0 = arith.constant 0 : i32
    %c0_i32_1 = arith.constant 0 : i32
    return %c0_i32, %c0_i32_0 : i32, i32
  }
  func.func @transform_4(%arg0: i32) -> (i32, i32) {
    %c0_i32 = arith.constant 0 : i32
    %c0_i32_0 = arith.constant 0 : i32
    %c0_i32_1 = arith.constant 0 : i32
    return %c0_i32, %c0_i32_0 : i32, i32
  }
  func.func @transform_5(%arg0: i32) -> (i32, i32) {
    %c0_i32 = arith.constant 0 : i32
    %c0_i32_0 = arith.constant 0 : i32
    %c0_i32_1 = arith.constant 0 : i32
    return %c0_i32, %c0_i32_0 : i32, i32
  }
  func.func @transform_6(%arg0: i32) -> (i32, i32) {
    %c0_i32 = arith.constant 0 : i32
    %c0_i32_0 = arith.constant 0 : i32
    %c0_i32_1 = arith.constant 0 : i32
    return %c0_i32, %c0_i32_0 : i32, i32
  }
  func.func @transform_7(%arg0: i32) -> (i32, i32) {
    %c0_i32 = arith.constant 0 : i32
    %c0_i32_0 = arith.constant 0 : i32
    %c0_i32_1 = arith.constant 0 : i32
    return %c0_i32, %c0_i32_0 : i32, i32
  }
  func.func @transform_8(%arg0: i32) -> (i32, i32) {
    %c0_i32 = arith.constant 0 : i32
    %c0_i32_0 = arith.constant 0 : i32
    %c0_i32_1 = arith.constant 0 : i32
    return %c0_i32, %c0_i32_0 : i32, i32
  }
  func.func @transform_9(%arg0: i32) -> (i32, i32) {
    %c0_i32 = arith.constant 0 : i32
    %c0_i32_0 = arith.constant 0 : i32
    %c0_i32_1 = arith.constant 0 : i32
    return %c0_i32, %c0_i32_0 : i32, i32
  }
  func.func @transform_10(%arg0: i32) -> (i32, i32) {
    %c0_i32 = arith.constant 0 : i32
    %c0_i32_0 = arith.constant 0 : i32
    %c0_i32_1 = arith.constant 0 : i32
    return %c0_i32, %c0_i32_0 : i32, i32
  }
  func.func @transform_11(%arg0: i32) -> (i32, i32, i32, i32) {
    %c0_i32 = arith.constant 0 : i32
    %c0_i32_0 = arith.constant 0 : i32
    %c0_i32_1 = arith.constant 0 : i32
    %c0_i32_2 = arith.constant 0 : i32
    return %arg0, %c0_i32, %c0_i32_0, %c0_i32_1 : i32, i32, i32, i32
  }
}

</mosaic_0001>

<bundles_post_ra>
// kernel: preact_bottleneck_forward.1
= control target key start
LH: loop header
LB: loop body
LE: loop exit
PB: predicated region body
PF: predicated region fallthrough
CT: control target
= control target key end

     0   :  { %s4740_s17 = smov 0   ;;  %s6849_s0 = inlined_call_operand.vmem [shape: f32[2,16,16,4], index: 0, kind: input, shape index: {}]   ;;  %s6850_s1 = inlined_call_operand.vmem [shape: f32[4,4], index: 1, kind: input, shape index: {}]   ;;  %s6851_s2 = inlined_call_operand.vmem [shape: f32[9,4,4], index: 2, kind: input, shape index: {}]   ;;  %s6852_s3 = inlined_call_operand.vmem [shape: f32[4,16], index: 3, kind: input, shape index: {}]   ;;  %s6853_s4 = inlined_call_operand.vmem [shape: f32[4,16], index: 4, kind: input, shape index: {}]   ;;  %s6854_s5 = inlined_call_operand.vmem [shape: f32[1,4], index: 5, kind: input, shape index: {}]   ;;  %s6855_s6 = inlined_call_operand.vmem [shape: f32[1,4], index: 6, kind: input, shape index: {}]   ;;  %s6856_s7 = inlined_call_operand.vmem [shape: f32[1,4], index: 7, kind: input, shape index: {}]   ;;  %s6857_s8 = inlined_call_operand.vmem [shape: f32[1,4], index: 8, kind: input, shape index: {}]   ;;  %s6858_s9 = inlined_call_operand.vmem [shape: f32[1,4], index: 9, kind: input, shape index: {}]   ;;  %s6859_s10 = inlined_call_operand.vmem [shape: f32[1,4], index: 10, kind: input, shape index: {}]   ;;  %s6860_s11 = inlined_call_operand.vmem [shape: f32[2,16,16,16], index: 11, kind: output, shape index: {}]  }
   0x1 LB: > { %s4197_s18 = sadd.s32 4294967295, %s4677_s17   ;;  %p4201_p0 = scmp.ge.s32.totalorder %s4677_s17, 1  ;;  %s4677_s17 = sphi %s4740_s17, %s21_s17  }
   0x2   : > { %p337_p1 = scmp.lt.s32.totalorder %s4677_s17, 3 }
   0x4   : > { %p338_p2 = pnand %p4201_p0, %p337_p1 }
   0x6   : > { %341 = sbr.rel (%p338_p2) target bundleno = 1183 (0x49f), region = 64 }
   0xb   : > { %v523_v0 = vld [vmem:[%s6850_s1] sm:$0xf]  ;;  %vm621_vm0 = vcmask 1043456   ;;  %p377_p3 = scmp.lt.s32.totalorder %s4197_s18, 1  ;;  %vm524_vm1 = vcmask 31744   ;;  %v4679_v47 = vmov 0.0  }
   0xc   : > { %4206 = vmatpush.msk.msra.mxu0 %vm621_vm0, %v523_v0  ;;  %v4757_v1 = vld [vmem:[%s6854_s5] ss:$0 sm:$0xff]  ;;  %842 = vst.msk [vmem:[#allocation2] sm:$0xff] %vm524_vm1, %v4679_v47  ;;  %vm1059_vm2 = vcmask 1040384   ;;  %v4306_v63 = vld [vmem:[%s6851_s2 + $0x8] sm:$0xf] }
   0xd   : > { %s7142_s18 = smov (!%p377_p3, %s4197_s18), 1  ;;  %v4770_v2 = vld [vmem:[%s6855_s6] ss:$0 sm:$0xff]  ;;  %843 = vst.msk [vmem:[#allocation2 + $0x8] sm:$0xff] %vm524_vm1, %v4679_v47  ;;  %vm1519_vm3 = vcmask 1046528   ;;  %4307 = vmatpush.msk.msra.mxu3 %vm621_vm0, %v4306_v63  ;;  %vm4109_vm4 = vcmask 130048  }
   0xe   : > { %s4612_s23 = sshll.u32 %s7142_s18, 8  ;;  %844 = vst.msk [vmem:[#allocation2 + $0x10] sm:$0xff] %vm524_vm1, %v4679_v47  ;;  %v1140_v51 = vld [vmem:[%s6851_s2] sm:$0xf] }
   0xf   : > { %s4765_s26 = scalar_lea.vmem %s6849_s0, %s4612_s23  ;;  %845 = vst.msk [vmem:[#allocation2 + $0x18] sm:$0xff] %vm524_vm1, %v4679_v47  ;;  %4273 = vmatpush.msk.msra.mxu2 %vm621_vm0, %v1140_v51  ;;  %s6693_s14 = scalar_lea.vmem %s6860_s11, %s4612_s23 }
  0x10   : > { %v387_v3 = vld [vmem:[%s4765_s26] sm:$0xff]  ;;  %v388_v4 = vld [vmem:[%s4765_s26 + $0x8] sm:$0xff]  ;;  %v389_v10 = vld [vmem:[%s4765_s26 + $0x10] sm:$0xff]  ;;  %846 = vst.msk [vmem:[#allocation2 + $0x20] sm:$0xff] %vm524_vm1, %v4679_v47 }
  0x11   : > { %v423_v5 = vmul.f32 %v4757_v1, %v387_v3  ;;  %v424_v7 = vmul.f32 %v4757_v1, %v388_v4  ;;  %v425_v12 = vmul.f32 %v4757_v1, %v389_v10  ;;  %v390_v14 = vld [vmem:[%s4765_s26 + $0x18] sm:$0xff]  ;;  %v391_v18 = vld [vmem:[%s4765_s26 + $0x20] sm:$0xff]  ;;  %v392_v22 = vld [vmem:[%s4765_s26 + $0x28] sm:$0xff]  ;;  %847 = vst.msk [vmem:[#allocation2 + $0x28] sm:$0xff] %vm524_vm1, %v4679_v47 }
  0x12   : > { %v426_v16 = vmul.f32 %v4757_v1, %v390_v14  ;;  %v427_v20 = vmul.f32 %v4757_v1, %v391_v18  ;;  %v428_v24 = vmul.f32 %v4757_v1, %v392_v22  ;;  %v393_v26 = vld [vmem:[%s4765_s26 + $0x30] sm:$0xff]  ;;  %v394_v30 = vld [vmem:[%s4765_s26 + $0x38] sm:$0xff]  ;;  %v395_v34 = vld [vmem:[%s4765_s26 + $0x40] sm:$0xff]  ;;  %848 = vst.msk [vmem:[#allocation2 + $0x30] sm:$0xff] %vm524_vm1, %v4679_v47 }
  0x13   : > { %v4776_v6 = vadd.f32 %v4770_v2, %v423_v5  ;;  %v4784_v9 = vadd.f32 %v4770_v2, %v424_v7  ;;  %v4793_v13 = vadd.f32 %v4770_v2, %v425_v12  ;;  %v429_v28 = vmul.f32 %v4757_v1, %v393_v26  ;;  %v396_v38 = vld [vmem:[%s4765_s26 + $0x48] sm:$0xff]  ;;  %v397_v42 = vld [vmem:[%s4765_s26 + $0x50] sm:$0xff]  ;;  %v398_v46 = vld [vmem:[%s4765_s26 + $0x58] sm:$0xff]  ;;  %849 = vst.msk [vmem:[#allocation2 + $0x38] sm:$0xff] %vm524_vm1, %v4679_v47 }
  0x14   : > { %v4802_v17 = vadd.f32 %v4770_v2, %v426_v16  ;;  %v4811_v21 = vadd.f32 %v4770_v2, %v427_v20  ;;  %v4820_v25 = vadd.f32 %v4770_v2, %v428_v24  ;;  %v430_v32 = vmul.f32 %v4757_v1, %v394_v30  ;;  %v399_v52 = vld [vmem:[%s4765_s26 + $0x60] sm:$0xff]  ;;  %v4897_v54 = vld [vmem:[#allocation2 + $0x8] sm:$0xff]  ;;  %850 = vst.msk [vmem:[#allocation2 + $0x40] sm:$0xff] %vm524_vm1, %v4679_v47  ;;  %v401_v14 = vld [vmem:[%s4765_s26 + $0x70] sm:$0xff] }
  0x15   : > { %6943 = vst [vmem:[#allocation3_spill] sm:$0xff] %v4776_v6  ;;  %v6892_v8 = vmax.f32 %v4776_v6, 0.0  ;;  %v6891_v11 = vmax.f32 %v4784_v9, 0.0  ;;  %v6887_v15 = vmax.f32 %v4793_v13, 0.0  ;;  %v4829_v29 = vadd.f32 %v4770_v2, %v429_v28  ;;  %v947_v53 = vld [vmem:[#allocation2] sm:$0xff]  ;;  %v949_v59 = vld [vmem:[#allocation2 + $0x10] sm:$0xff] }
  0x16   : > { %6944 = vst [vmem:[#allocation4_spill] sm:$0xff] %v4784_v9  ;;  %v6886_v19 = vmax.f32 %v4802_v17, 0.0  ;;  %v6885_v23 = vmax.f32 %v4811_v21, 0.0  ;;  %v6884_v27 = vmax.f32 %v4820_v25, 0.0  ;;  %v4838_v33 = vadd.f32 %v4770_v2, %v430_v32  ;;  %v400_v4 = vld [vmem:[%s4765_s26 + $0x68] sm:$0xff]  ;;  %v402_v22 = vld [vmem:[%s4765_s26 + $0x78] sm:$0xff] }
  0x17   : > { %4207 = vmatmul.msk.f32.vlgmr.msra.gmra.mxu0 %vm524_vm1, %v6892_v8  ;;  %6945 = vst [vmem:[#allocation5_spill] sm:$0xff] %v4793_v13  ;;  %v6881_v31 = vmax.f32 %v4829_v29, 0.0  ;;  %v431_v36 = vmul.f32 %v4757_v1, %v395_v34  ;;  %v432_v40 = vmul.f32 %v4757_v1, %v396_v38  ;;  %v433_v44 = vmul.f32 %v4757_v1, %v397_v42  ;;  %v4239_v5 = vld [vmem:[%s6851_s2 + $0x4] sm:$0xf]  ;;  %v950_v26 = vld [vmem:[#allocation2 + $0x18] sm:$0xff] }
  0x18   : > { %6946 = vst [vmem:[#allocation6_spill] sm:$0xff] %v4802_v17  ;;  %v6880_v35 = vmax.f32 %v4838_v33, 0.0  ;;  %v434_v49 = vmul.f32 %v4757_v1, %v398_v46  ;;  %v1060_v55 = vrot.slane %v947_v53, 7  ;;  %v435_v57 = vmul.f32 %v4757_v1, %v399_v52  ;;  %4240 = vmatpush.msk.msra.mxu1 %vm621_vm0, %v4239_v5  ;;  %v4340_v42 = vld [vmem:[%s6851_s2 + $0xc] sm:$0xf] }
  0x19   : > { %6947 = vst [vmem:[#allocation7_spill] sm:$0xff] %v4811_v21  ;;  %v4847_v37 = vadd.f32 %v4770_v2, %v431_v36  ;;  %v4856_v41 = vadd.f32 %v4770_v2, %v432_v40  ;;  %v4865_v45 = vadd.f32 %v4770_v2, %v433_v44  ;;  %v1061_v58 = vrot.slane %v4897_v54, 7  ;;  %4241 = vmatmul.msk.f32.vlgmr.msra.gmra.mxu1 %vm524_vm1, %v4897_v54  ;;  %v403_v40 = vld [vmem:[%s4765_s26 + $0x80] sm:$0xff]  ;;  %v4374_v44 = vld [vmem:[%s6851_s2 + $0x10] sm:$0xf]  ;;  %v404_v52 = vld [vmem:[%s4765_s26 + $0x88] sm:$0xff] }
  0x1a   : > { %6948 = vst [vmem:[#allocation8_spill] sm:$0xff] %v4820_v25  ;;  %v4884_v50 = vadd.f32 %v4770_v2, %v434_v49  ;;  %v1520_v60 = vrot.slane %v4897_v54, 1  ;;  %v1521_v61 = vrot.slane %v949_v59, 1  ;;  %v4924_v3 = vadd.f32 %v4770_v2, %v435_v57  ;;  %4341 = vmatpush.msk.msrb.mxu0 %vm621_vm0, %v4340_v42  ;;  %4375 = vmatpush.msk.msrb.mxu1 %vm621_vm0, %v4374_v44  ;;  %v407_v42 = vld [vmem:[%s4765_s26 + $0xa0] sm:$0xff] }
  0x1b   : > { %6949 = vst [vmem:[#allocation9_spill] sm:$0xff] %v4829_v29  ;;  %v6879_v39 = vmax.f32 %v4847_v37, 0.0  ;;  %v6878_v43 = vmax.f32 %v4856_v41, 0.0  ;;  %v6875_v48 = vmax.f32 %v4865_v45, 0.0  ;;  %v1062_v62 = vsel %vm1059_vm2, %v1060_v55, %v1061_v58 }
  0x1c   : > { %6950 = vst [vmem:[#allocation10_spill] sm:$0xff] %v4838_v33  ;;  %v6874_v56 = vmax.f32 %v4884_v50, 0.0  ;;  %4274 = vmatmul.msk.f32.vlgmr.msra.gmra.mxu2 %vm524_vm1, %v1062_v62  ;;  %v1522_v0 = vsel %vm1519_vm3, %v1520_v60, %v1521_v61  ;;  %v6873_v7 = vmax.f32 %v4924_v3, 0.0  ;;  %v436_v10 = vmul.f32 %v4757_v1, %v400_v4 }
  0x1d   : > { %6951 = vst [vmem:[#allocation11_spill] sm:$0xff] %v4847_v37  ;;  %4308 = vmatmul.msk.f32.vlgmr.msra.gmra.mxu3 %vm524_vm1, %v1522_v0  ;;  %v437_v18 = vmul.f32 %v4757_v1, %v401_v14  ;;  %v1063_v24 = vrot.slane %v949_v59, 7  ;;  %v438_v30 = vmul.f32 %v4757_v1, %v402_v22  ;;  %v1523_v34 = vrot.slane %v950_v26, 1  ;;  %v5099_v0 = vld [vmem:[%s6857_s8] ss:$0 sm:$0xff] }
  0x1e   : > { %6952 = vst [vmem:[#allocation12_spill] sm:$0xff] %v4856_v41  ;;  %v4956_v12 = vadd.f32 %v4770_v2, %v436_v10  ;;  %v439_v49 = vmul.f32 %v4757_v1, %v403_v40  ;;  %v440_v54 = vmul.f32 %v4757_v1, %v404_v52  ;;  %v406_v10 = vld [vmem:[%s4765_s26 + $0x98] sm:$0xff]  ;;  %v443_v52 = vmul.f32 %v4757_v1, %v407_v42 }
  0x1f   : > { %4208 = vmatmul.msk.f32.gmra.mxu0 %vm524_vm1, %v6891_v11  ;;  %6953 = vst [vmem:[#allocation13_spill] sm:$0xff] %v4865_v45  ;;  %v4982_v20 = vadd.f32 %v4770_v2, %v437_v18  ;;  %v1064_v32 = vsel %vm1059_vm2, %v1061_v58, %v1063_v24  ;;  %v1524_v36 = vsel %vm1519_vm3, %v1521_v61, %v1523_v34  ;;  %v405_v58 = vld [vmem:[%s4765_s26 + $0x90] sm:$0xff] }
  0x20   : > { %6954 = vst [vmem:[#allocation14_spill] sm:$0xff] %v4884_v50  ;;  %v6872_v16 = vmax.f32 %v4956_v12, 0.0  ;;  %v5013_v38 = vadd.f32 %v4770_v2, %v438_v30  ;;  %v5046_v51 = vadd.f32 %v4770_v2, %v439_v49  ;;  %v5071_v57 = vadd.f32 %v4770_v2, %v440_v54 }
  0x21   : > { %851 = vst.msk [vmem:[#allocation2 + $0x48] sm:$0xff] %vm524_vm1, %v4679_v47  ;;  %4242 = vmatmul.msk.f32.gmra.mxu1 %vm524_vm1, %v949_v59  ;;  %v6869_v28 = vmax.f32 %v4982_v20, 0.0  ;;  %v5083_v59 = vld [vmem:[%s6856_s7] ss:$0 sm:$0xff]  ;;  %v441_v61 = vmul.f32 %v4757_v1, %v405_v58  ;;  %v442_v24 = vmul.f32 %v4757_v1, %v406_v10 }
  0x22   : > { %852 = vst.msk [vmem:[#allocation2 + $0x50] sm:$0xff] %vm524_vm1, %v4679_v47  ;;  %v6868_v46 = vmax.f32 %v5013_v38, 0.0  ;;  %v6867_v53 = vmax.f32 %v5046_v51, 0.0  ;;  %v6866_v60 = vmax.f32 %v5071_v57, 0.0 }
  0x23   : > { %853 = vst.msk [vmem:[#allocation2 + $0x58] sm:$0xff] %vm524_vm1, %v4679_v47  ;;  %v5108_v5 = vadd.f32 %v4770_v2, %v441_v61  ;;  %v5137_v40 = vadd.f32 %v4770_v2, %v442_v24 }
  0x24   : > { %854 = vst.msk [vmem:[#allocation2 + $0x60] sm:$0xff] %vm524_vm1, %v4679_v47  ;;  %4275 = vmatmul.msk.f32.gmra.mxu2 %vm524_vm1, %v1064_v32 }
  0x25   : > { %6955 = vst [vmem:[#allocation15_spill] sm:$0xff] %v4924_v3  ;;  %4309 = vmatmul.msk.f32.gmra.mxu3 %vm524_vm1, %v1524_v36  ;;  %v6863_v22 = vmax.f32 %v5108_v5, 0.0  ;;  %v6862_v49 = vmax.f32 %v5137_v40, 0.0 }
  0x26   : > { %855 = vst.msk [vmem:[#allocation2 + $0x68] sm:$0xff] %vm524_vm1, %v4679_v47 }
  0x27   : > { %4209 = vmatmul.msk.f32.gmra.mxu0 %vm524_vm1, %v6887_v15  ;;  %856 = vst.msk [vmem:[#allocation2 + $0x70] sm:$0xff] %vm524_vm1, %v4679_v47 }
  0x28   : > { %857 = vst.msk [vmem:[#allocation2 + $0x78] sm:$0xff] %vm524_vm1, %v4679_v47 }
  0x29   : > { %858 = vst.msk [vmem:[#allocation2 + $0x80] sm:$0xff] %vm524_vm1, %v4679_v47 }
  0x2a   : > { %859 = vst.msk [vmem:[#allocation2 + $0x88] sm:$0xff] %vm524_vm1, %v4679_v47 }
  0x2b   : > { %860 = vst.msk [vmem:[#allocation2 + $0x90] sm:$0xff] %vm524_vm1, %v4679_v47 }
  0x2c   : > { %861 = vst.msk [vmem:[#allocation2 + $0x98] sm:$0xff] %vm524_vm1, %v4679_v47 }
  0x2d   : > { %862 = vst.msk [vmem:[#allocation2 + $0xa0] sm:$0xff] %vm524_vm1, %v4679_v47 }
  0x2e   : > { %6956 = vst [vmem:[#allocation16_spill] sm:$0xff] %v4956_v12 }
  0x2f   : > { %4210 = vmatmul.msk.f32.gmra.mxu0 %vm524_vm1, %v6886_v19  ;;  %863 = vst.msk [vmem:[#allocation2 + $0xa8] sm:$0xff] %vm524_vm1, %v4679_v47  ;;  %v1825_v29 = vld [vmem:[#allocation2 + $0x78] sm:$0xff] }
  0x30   : > { %864 = vst.msk [vmem:[#allocation2 + $0xb0] sm:$0xff] %vm524_vm1, %v4679_v47 }
  0x31   : > { %865 = vst.msk [vmem:[#allocation2 + $0xb8] sm:$0xff] %vm524_vm1, %v4679_v47 }
  0x32   : > { %866 = vst.msk [vmem:[#allocation2 + $0xc0] sm:$0xff] %vm524_vm1, %v4679_v47 }
  0x33   : > { %867 = vst.msk [vmem:[#allocation2 + $0xc8] sm:$0xff] %vm524_vm1, %v4679_v47  ;;  %v1829_v17 = vld [vmem:[#allocation2 + $0x98] sm:$0xff] }
  0x34   : > { %868 = vst.msk [vmem:[#allocation2 + $0xd0] sm:$0xff] %vm524_vm1, %v4679_v47  ;;  %v2757_v21 = vld [vmem:[#allocation2 + $0xa0] sm:$0xff] }
  0x35   : > { %869 = vst.msk [vmem:[#allocation2 + $0xd8] sm:$0xff] %vm524_vm1, %v4679_v47 }
  0x36   : > { %870 = vst.msk [vmem:[#allocation2 + $0xe0] sm:$0xff] %vm524_vm1, %v4679_v47 }
  0x37   : > { %4211 = vmatmul.msk.f32.gmra.mxu0 %vm524_vm1, %v6885_v23  ;;  %6957 = vst [vmem:[#allocation17_spill] sm:$0xff] %v4982_v20  ;;  %v418_v23 = vld [vmem:[%s4765_s26 + $0xf8] sm:$0xff] }
  0x38   : > { %871 = vst.msk [vmem:[#allocation2 + $0xe8] sm:$0xff] %vm524_vm1, %v4679_v47 }
  0x39   : > { %872 = vst.msk [vmem:[#allocation2 + $0xf0] sm:$0xff] %vm524_vm1, %v4679_v47 }
  0x3a   : > { %873 = vst.msk [vmem:[#allocation2 + $0xf8] sm:$0xff] %vm524_vm1, %v4679_v47 }
  0x3b   : > { %874 = vst.msk [vmem:[#allocation2 + $0x100] sm:$0xff] %vm524_vm1, %v4679_v47 }
  0x3c   : > { %875 = vst.msk [vmem:[#allocation2 + $0x108] sm:$0xff] %vm524_vm1, %v4679_v47 }
  0x3d   : > { %876 = vst.msk [vmem:[#allocation2 + $0x110] sm:$0xff] %vm524_vm1, %v4679_v47 }
  0x3e   : > { %877 = vst.msk [vmem:[#allocation2 + $0x118] sm:$0xff] %vm524_vm1, %v4679_v47 }
  0x3f   : > { %4212 = vmatmul.msk.f32.gmra.mxu0 %vm524_vm1, %v6884_v27  ;;  %878 = vst.msk [vmem:[#allocation2 + $0x120] sm:$0xff] %vm524_vm1, %v4679_v47 }
  0x40   : > { %879 = vst.msk [vmem:[#allocation2 + $0x128] sm:$0xff] %vm524_vm1, %v4679_v47 }
  0x41   : > { %6958 = vst [vmem:[#allocation18_spill] sm:$0xff] %v5013_v38 }
  0x42   : > { %880 = vst.msk [vmem:[#allocation2 + $0x130] sm:$0xff] %vm524_vm1, %v4679_v47 }
  0x43   : > { %881 = vst.msk [vmem:[#allocation2 + $0x138] sm:$0xff] %vm524_vm1, %v4679_v47 }
  0x44   : > { %882 = vst.msk [vmem:[#allocation2 + $0x140] sm:$0xff] %vm524_vm1, %v4679_v47 }
  0x45   : > { %883 = vst.msk [vmem:[#allocation2 + $0x148] sm:$0xff] %vm524_vm1, %v4679_v47 }
  0x46   : > { %884 = vst.msk [vmem:[#allocation2 + $0x150] sm:$0xff] %vm524_vm1, %v4679_v47  ;;  %v983_v8 = vld [vmem:[#allocation2 + $0x120] sm:$0xff] }
  0x47   : > { %4213 = vmatmul.msk.f32.gmra.mxu0 %vm524_vm1, %v6881_v31  ;;  %885 = vst.msk [vmem:[#allocation2 + $0x158] sm:$0xff] %vm524_vm1, %v4679_v47 }
  0x48   : > { %886 = vst.msk [vmem:[#allocation2 + $0x160] sm:$0xff] %vm524_vm1, %v4679_v47 }
  0x49   : > { %887 = vst.msk [vmem:[#allocation2 + $0x168] sm:$0xff] %vm524_vm1, %v4679_v47 }
  0x4a   : > { %6959 = vst [vmem:[#allocation19_spill] sm:$0xff] %v5046_v51 }
  0x4b   : > { %888 = vst.msk [vmem:[#allocation2 + $0x170] sm:$0xff] %vm524_vm1, %v4679_v47 }
  0x4c   : > { %889 = vst.msk [vmem:[#allocation2 + $0x178] sm:$0xff] %vm524_vm1, %v4679_v47 }
  0x4d   : > { %890 = vst.msk [vmem:[#allocation2 + $0x180] sm:$0xff] %vm524_vm1, %v4679_v47 }
  0x4e   : > { %891 = vst.msk [vmem:[#allocation2 + $0x188] sm:$0xff] %vm524_vm1, %v4679_v47 }
  0x4f   : > { %4214 = vmatmul.msk.f32.gmra.mxu0 %vm524_vm1, %v6880_v35  ;;  %892 = vst.msk [vmem:[#allocation2 + $0x190] sm:$0xff] %vm524_vm1, %v4679_v47 }
  0x50   : > { %893 = vst.msk [vmem:[#allocation2 + $0x198] sm:$0xff] %vm524_vm1, %v4679_v47 }
  0x51   : > { %894 = vst.msk [vmem:[#allocation2 + $0x1a0] sm:$0xff] %vm524_vm1, %v4679_v47 }
  0x52   : > { %895 = vst.msk [vmem:[#allocation2 + $0x1a8] sm:$0xff] %vm524_vm1, %v4679_v47 }
  0x53   : > { %6960 = vst [vmem:[#allocation20_spill] sm:$0xff] %v5071_v57 }
  0x54   : > { %896 = vst.msk [vmem:[#allocation2 + $0x1b0] sm:$0xff] %vm524_vm1, %v4679_v47 }
  0x55   : > { %897 = vst.msk [vmem:[#allocation2 + $0x1b8] sm:$0xff] %vm524_vm1, %v4679_v47 }
  0x56   : > { %898 = vst.msk [vmem:[#allocation2 + $0x1c0] sm:$0xff] %vm524_vm1, %v4679_v47 }
  0x57   : > { %4215 = vmatmul.msk.f32.gmra.mxu0 %vm524_vm1, %v6879_v39  ;;  %899 = vst.msk [vmem:[#allocation2 + $0x1c8] sm:$0xff] %vm524_vm1, %v4679_v47  ;;  %v416_v39 = vld [vmem:[%s4765_s26 + $0xe8] sm:$0xff] }
  0x58   : > { %900 = vst.msk [vmem:[#allocation2 + $0x1d0] sm:$0xff] %vm524_vm1, %v4679_v47 }
  0x59   : > { %901 = vst.msk [vmem:[#allocation2 + $0x1d8] sm:$0xff] %vm524_vm1, %v4679_v47 }
  0x5a   : > { %902 = vst.msk [vmem:[#allocation2 + $0x1e0] sm:$0xff] %vm524_vm1, %v4679_v47 }
  0x5b   : > { %903 = vst.msk [vmem:[#allocation2 + $0x1e8] sm:$0xff] %vm524_vm1, %v4679_v47 }
  0x5c   : > { %6961 = vst [vmem:[#allocation21_spill] sm:$0xff] %v5108_v5 }
  0x5d   : > { %904 = vst.msk [vmem:[#allocation2 + $0x1f0] sm:$0xff] %vm524_vm1, %v4679_v47  ;;  %v1003_v57 = vld [vmem:[#allocation2 + $0x1c0] sm:$0xff] }
  0x5e   : > { %905 = vst.msk [vmem:[#allocation2 + $0x1f8] sm:$0xff] %vm524_vm1, %v4679_v47 }
  0x5f   : > { %4216 = vmatmul.msk.f32.gmra.mxu0 %vm524_vm1, %v6878_v43  ;;  %906 = vst.msk [vmem:[#allocation2 + $0x200] sm:$0xff] %vm524_vm1, %v4679_v47 }
  0x60   : > { %907 = vst.msk [vmem:[#allocation2 + $0x208] sm:$0xff] %vm524_vm1, %v4679_v47 }
  0x61   : > { %908 = vst.msk [vmem:[#allocation2 + $0x210] sm:$0xff] %vm524_vm1, %v4679_v47 }
  0x62   : > { %909 = vst.msk [vmem:[#allocation2 + $0x218] sm:$0xff] %vm524_vm1, %v4679_v47 }
  0x63   : > { %910 = vst.msk [vmem:[#allocation2 + $0x220] sm:$0xff] %vm524_vm1, %v4679_v47 }
  0x64   : > { %911 = vst.msk [vmem:[#allocation2 + $0x228] sm:$0xff] %vm524_vm1, %v4679_v47 }
  0x65   : > { %6962 = vst [vmem:[#allocation22_spill] sm:$0xff] %v5137_v40 }
  0x66   : > { %912 = vst.msk [vmem:[#allocation2 + $0x230] sm:$0xff] %vm524_vm1, %v4679_v47  ;;  %v1874_v9 = vld [vmem:[#allocation2 + $0x200] sm:$0xff] }
  0x67   : > { %4217 = vmatmul.msk.f32.gmra.mxu0 %vm524_vm1, %v6875_v48  ;;  %913 = vst.msk [vmem:[#allocation2 + $0x238] sm:$0xff] %vm524_vm1, %v4679_v47  ;;  %v5155_v47 = vadd.f32 %v4770_v2, %v443_v52 }
  0x69   : > { %6963 = vst [vmem:[#allocation23_spill] sm:$0xff] %v5155_v47 }
  0x6f   : > { %4218 = vmatmul.msk.f32.gmra.mxu0 %vm524_vm1, %v6874_v56 }
  0x77   : > { %4219 = vmatmul.msk.f32.gmra.mxu0 %vm524_vm1, %v6873_v7  ;;  %v414_v7 = vld [vmem:[%s4765_s26 + $0xd8] sm:$0xff] }
  0x7f   : > { %4220 = vmatmul.msk.f32.gmra.mxu0 %vm524_vm1, %v6872_v16 }
  0x87   : > { %4221 = vmatmul.msk.f32.gmra.mxu0 %vm524_vm1, %v6869_v28 }
  0x8f   : > { %4222 = vmatmul.msk.f32.gmra.mxu0 %vm524_vm1, %v6868_v46 }
  0x94   : > { %v642_v55 = vpop.f32.mrf.mxu0 }
  0x95   : > { %v742_v63 = vmul.f32 %v5083_v59, %v642_v55  ;;  %v951_v55 = vld [vmem:[#allocation2 + $0x20] sm:$0xff] }
  0x97   : > { %4223 = vmatmul.msk.f32.gmra.mxu0 %vm524_vm1, %v6867_v53  ;;  %v778_v14 = vadd.f32 %v5099_v0, %v742_v63  ;;  %v408_v63 = vld [vmem:[%s4765_s26 + $0xa8] sm:$0xff] }
  0x98   : > { %v412_v53 = vld [vmem:[%s4765_s26 + $0xc8] sm:$0xff] }
  0x99   : > { %v810_v32 = vmax.f32 %v778_v14, 0.0 }
  0x9b   : > { %915 = vst.msk [vmem:[#allocation2 + $0x28] sm:$0xff] %vm524_vm1, %v810_v32  ;;  %v444_v32 = vmul.f32 %v4757_v1, %v408_v63 }
  0x9c   : > { %v645_v62 = vpop.f32.mrf.mxu0 }
  0x9d   : > { %v743_v4 = vmul.f32 %v5083_v59, %v645_v62  ;;  %v1065_v62 = vrot.slane %v951_v55, 7 }
  0x9f   : > { %4224 = vmatmul.msk.f32.gmra.mxu0 %vm524_vm1, %v6866_v60  ;;  %v779_v18 = vadd.f32 %v5099_v0, %v743_v4 }
  0xa1   : > { %v811_v34 = vmax.f32 %v779_v18, 0.0 }
  0xa2   : > { %v952_v4 = vld [vmem:[#allocation2 + $0x28] sm:$0xff] }
  0xa3   : > { %916 = vst.msk [vmem:[#allocation2 + $0x30] sm:$0xff] %vm524_vm1, %v811_v34  ;;  %v1066_v14 = vrot.slane %v952_v4, 7  ;;  %4243 = vmatmul.msk.f32.gmra.mxu1 %vm524_vm1, %v952_v4  ;;  %v1525_v24 = vrot.slane %v952_v4, 1 }
  0xa4   : > { %v648_v26 = vpop.f32.mrf.mxu0 }
  0xa5   : > { %v744_v30 = vmul.f32 %v5083_v59, %v648_v26  ;;  %v5163_v34 = vsel %vm1059_vm2, %v1065_v62, %v1066_v14 }
  0xa6   : > { %4276 = vmatmul.msk.f32.gmra.mxu2 %vm524_vm1, %v5163_v34 }
  0xa7   : > { %v780_v36 = vadd.f32 %v5099_v0, %v744_v30  ;;  %4225 = vmatmul.msk.f32.gmra.mxu0 %vm524_vm1, %v6863_v22  ;;  %v6861_v30 = vmax.f32 %v5155_v47, 0.0 }
  0xa9   : > { %v812_v44 = vmax.f32 %v780_v36, 0.0 }
  0xaa   : > { %v953_v18 = vld [vmem:[#allocation2 + $0x30] sm:$0xff] }
  0xab   : > { %917 = vst.msk [vmem:[#allocation2 + $0x48] sm:$0xff] %vm524_vm1, %v812_v44  ;;  %v1526_v26 = vrot.slane %v953_v18, 1  ;;  %v1068_v52 = vrot.slane %v953_v18, 7  ;;  %4244 = vmatmul.msk.f32.gmra.mxu1 %vm524_vm1, %v953_v18 }
  0xac   : > { %v651_v54 = vpop.f32.mrf.mxu0 }
  0xad   : > { %v745_v58 = vmul.f32 %v5083_v59, %v651_v54  ;;  %v1527_v42 = vsel %vm1519_vm3, %v1525_v24, %v1526_v26  ;;  %v954_v54 = vld [vmem:[#allocation2 + $0x38] sm:$0xff]  ;;  %v5180_v4 = vsel %vm1059_vm2, %v1066_v14, %v1068_v52  ;;  %v955_v24 = vld [vmem:[#allocation2 + $0x40] sm:$0xff] }
  0xae   : > { %4310 = vmatmul.msk.f32.gmra.mxu3 %vm524_vm1, %v1527_v42  ;;  %v1528_v63 = vrot.slane %v954_v54, 1  ;;  %4277 = vmatmul.msk.f32.gmra.mxu2 %vm524_vm1, %v5180_v4  ;;  %v1070_v52 = vrot.slane %v955_v24, 7 }
  0xaf   : > { %v781_v61 = vadd.f32 %v5099_v0, %v745_v58  ;;  %4226 = vmatmul.msk.f32.gmra.mxu0 %vm524_vm1, %v6862_v49  ;;  %v5175_v58 = vadd.f32 %v4770_v2, %v444_v32 }
  0xb0   : > { %v1529_v54 = vsel %vm1519_vm3, %v1526_v26, %v1528_v63 }
  0xb1   : > { %v813_v10 = vmax.f32 %v781_v61, 0.0  ;;  %6964 = vst [vmem:[#allocation24_spill] sm:$0xff] %v5175_v58  ;;  %v409_v61 = vld [vmem:[%s4765_s26 + $0xb0] sm:$0xff] }
  0xb2   : > { %v445_v42 = vmul.f32 %v4757_v1, %v409_v61 }
  0xb3   : > { %918 = vst.msk [vmem:[#allocation2 + $0x50] sm:$0xff] %vm524_vm1, %v813_v10  ;;  %v956_v10 = vld [vmem:[#allocation2 + $0x48] sm:$0xff] }
  0xb4   : > { %v654_v36 = vpop.f32.mrf.mxu0  ;;  %v1071_v14 = vrot.slane %v956_v10, 7  ;;  %v5195_v61 = vadd.f32 %v4770_v2, %v445_v42  ;;  %v1530_v49 = vrot.slane %v956_v10, 1  ;;  %4245 = vmatmul.msk.f32.gmra.mxu1 %vm524_vm1, %v956_v10  ;;  %v958_v10 = vld [vmem:[#allocation2 + $0x58] sm:$0xff] }
  0xb5   : > { %v746_v44 = vmul.f32 %v5083_v59, %v654_v36  ;;  %v6864_v36 = vmax.f32 %v5175_v58, 0.0 }
  0xb6   : > { %4311 = vmatmul.msk.f32.gmra.mxu3 %vm524_vm1, %v1529_v54  ;;  %6965 = vst [vmem:[#allocation25_spill] sm:$0xff] %v5195_v61  ;;  %v5200_v26 = vsel %vm1059_vm2, %v1070_v52, %v1071_v14  ;;  %v6865_v24 = vmax.f32 %v5195_v61, 0.0 }
  0xb7   : > { %v782_v55 = vadd.f32 %v5099_v0, %v746_v44  ;;  %4227 = vmatmul.msk.f32.gmra.mxu0 %vm524_vm1, %v6861_v30  ;;  %v410_v30 = vld [vmem:[%s4765_s26 + $0xb8] sm:$0xff]  ;;  %4278 = vmatmul.msk.f32.gmra.mxu2 %vm524_vm1, %v5200_v26 }
  0xb9   : > { %v814_v62 = vmax.f32 %v782_v55, 0.0 }
  0xba   : > { %v957_v44 = vld [vmem:[#allocation2 + $0x50] sm:$0xff] }
  0xbb   : > { %919 = vst.msk [vmem:[#allocation2 + $0x68] sm:$0xff] %vm524_vm1, %v814_v62  ;;  %v1531_v55 = vrot.slane %v957_v44, 1 }
  0xbc   : > { %v657_v32 = vpop.f32.mrf.mxu0  ;;  %4246 = vmatmul.msk.f32.gmra.mxu1 %vm524_vm1, %v957_v44 }
  0xbd   : > { %v747_v18 = vmul.f32 %v5083_v59, %v657_v32  ;;  %v1532_v63 = vsel %vm1519_vm3, %v1530_v49, %v1531_v55  ;;  %v446_v32 = vmul.f32 %v4757_v1, %v410_v30  ;;  %v411_v49 = vld [vmem:[%s4765_s26 + $0xc0] sm:$0xff] }
  0xbe   : > { %4312 = vmatmul.msk.f32.gmra.mxu3 %vm524_vm1, %v1532_v63  ;;  %v959_v63 = vld [vmem:[#allocation2 + $0x60] sm:$0xff] }
  0xbf   : > { %v783_v62 = vadd.f32 %v5099_v0, %v747_v18  ;;  %4228 = vmatmul.msk.f32.gmra.mxu0 %vm524_vm1, %v6864_v36  ;;  %v1073_v18 = vrot.slane %v957_v44, 7 }
  0xc1   : > { %v815_v22 = vmax.f32 %v783_v62, 0.0  ;;  %v1533_v62 = vrot.slane %v958_v10, 1 }
  0xc2   : > { %v960_v36 = vld [vmem:[#allocation2 + $0x68] sm:$0xff] }
  0xc3   : > { %920 = vst.msk [vmem:[#allocation2 + $0x70] sm:$0xff] %vm524_vm1, %v815_v22  ;;  %v5215_v22 = vadd.f32 %v4770_v2, %v446_v32  ;;  %v1534_v10 = vsel %vm1519_vm3, %v1531_v55, %v1533_v62  ;;  %v1535_v46 = vrot.slane %v960_v36, 1 }
  0xc4   : > { %v660_v54 = vpop.f32.mrf.mxu0  ;;  %4247 = vmatmul.msk.f32.gmra.mxu1 %vm524_vm1, %v960_v36 }
  0xc5   : > { %v748_v42 = vmul.f32 %v5083_v59, %v660_v54  ;;  %6966 = vst [vmem:[#allocation26_spill] sm:$0xff] %v5215_v22  ;;  %v5220_v54 = vsel %vm1059_vm2, %v1071_v14, %v1073_v18  ;;  %v1076_v14 = vrot.slane %v960_v36, 7  ;;  %v1075_v18 = vrot.slane %v959_v63, 7  ;;  %v962_v36 = vld [vmem:[#allocation2 + $0x78] sm:$0xff] }
  0xc6   : > { %4279 = vmatmul.msk.f32.gmra.mxu2 %vm524_vm1, %v5220_v54  ;;  %4313 = vmatmul.msk.f32.gmra.mxu3 %vm524_vm1, %v1534_v10 }
  0xc7   : > { %v784_v52 = vadd.f32 %v5099_v0, %v748_v42  ;;  %4229 = vmatmul.msk.f32.gmra.mxu0 %vm524_vm1, %v6865_v24  ;;  %v6870_v42 = vmax.f32 %v5215_v22, 0.0  ;;  %v447_v24 = vmul.f32 %v4757_v1, %v411_v49  ;;  %v5240_v55 = vsel %vm1059_vm2, %v1075_v18, %v1076_v14 }
  0xc9   : > { %v816_v30 = vmax.f32 %v784_v52, 0.0  ;;  %v5235_v49 = vadd.f32 %v4770_v2, %v447_v24 }
  0xca   : > { %v961_v60 = vld [vmem:[#allocation2 + $0x70] sm:$0xff] }
  0xcb   : > { %921 = vst.msk [vmem:[#allocation2 + $0x88] sm:$0xff] %vm524_vm1, %v816_v30  ;;  %v1536_v52 = vrot.slane %v961_v60, 1  ;;  %v6871_v63 = vmax.f32 %v5235_v49, 0.0 }
  0xcc   : > { %v663_v32 = vpop.f32.mrf.mxu0  ;;  %6967 = vst [vmem:[#allocation27_spill] sm:$0xff] %v5235_v49  ;;  %4248 = vmatmul.msk.f32.gmra.mxu1 %vm524_vm1, %v961_v60 }
  0xcd   : > { %v749_v44 = vmul.f32 %v5083_v59, %v663_v32  ;;  %v1537_v62 = vsel %vm1519_vm3, %v1535_v46, %v1536_v52  ;;  %v448_v32 = vmul.f32 %v4757_v1, %v412_v53  ;;  %v413_v46 = vld [vmem:[%s4765_s26 + $0xd0] sm:$0xff] }
  0xce   : > { %4280 = vmatmul.msk.f32.gmra.mxu2 %vm524_vm1, %v5240_v55  ;;  %4314 = vmatmul.msk.f32.gmra.mxu3 %vm524_vm1, %v1537_v62  ;;  %v963_v62 = vld [vmem:[#allocation2 + $0x80] sm:$0xff] }
  0xcf   : > { %v785_v30 = vadd.f32 %v5099_v0, %v749_v44  ;;  %4230 = vmatmul.msk.f32.gmra.mxu0 %vm524_vm1, %v6870_v42  ;;  %v1078_v44 = vrot.slane %v961_v60, 7 }
  0xd1   : > { %v817_v28 = vmax.f32 %v785_v30, 0.0  ;;  %v1538_v30 = vrot.slane %v962_v36, 1 }
  0xd2   : > { %v964_v42 = vld [vmem:[#allocation2 + $0x88] sm:$0xff] }
  0xd3   : > { %922 = vst.msk [vmem:[#allocation2 + $0x90] sm:$0xff] %vm524_vm1, %v817_v28  ;;  %v5255_v28 = vadd.f32 %v4770_v2, %v448_v32  ;;  %v1539_v36 = vsel %vm1519_vm3, %v1536_v52, %v1538_v30  ;;  %v1540_v56 = vrot.slane %v964_v42, 1 }
  0xd4   : > { %v666_v10 = vpop.f32.mrf.mxu0  ;;  %4249 = vmatmul.msk.f32.gmra.mxu1 %vm524_vm1, %v964_v42 }
  0xd5   : > { %v750_v24 = vmul.f32 %v5083_v59, %v666_v10  ;;  %6968 = vst [vmem:[#allocation28_spill] sm:$0xff] %v5255_v28  ;;  %v5260_v10 = vsel %vm1059_vm2, %v1076_v14, %v1078_v44  ;;  %v1081_v14 = vrot.slane %v964_v42, 7  ;;  %v1080_v44 = vrot.slane %v963_v62, 7  ;;  %v966_v42 = vld [vmem:[#allocation2 + $0x98] sm:$0xff] }
  0xd6   : > { %4281 = vmatmul.msk.f32.gmra.mxu2 %vm524_vm1, %v5260_v10  ;;  %4315 = vmatmul.msk.f32.gmra.mxu3 %vm524_vm1, %v1539_v36 }
  0xd7   : > { %v786_v18 = vadd.f32 %v5099_v0, %v750_v24  ;;  %4231 = vmatmul.msk.f32.gmra.mxu0 %vm524_vm1, %v6871_v63  ;;  %v6876_v24 = vmax.f32 %v5255_v28, 0.0  ;;  %v449_v63 = vmul.f32 %v4757_v1, %v413_v46  ;;  %v5280_v52 = vsel %vm1059_vm2, %v1080_v44, %v1081_v14  ;;  %v987_v28 = vld [vmem:[#allocation2 + $0x140] sm:$0xff] }
  0xd9   : > { %v818_v53 = vmax.f32 %v786_v18, 0.0  ;;  %v5275_v46 = vadd.f32 %v4770_v2, %v449_v63 }
  0xda   : > { %v965_v16 = vld [vmem:[#allocation2 + $0x90] sm:$0xff] }
  0xdb   : > { %923 = vst.msk [vmem:[#allocation2 + $0xa8] sm:$0xff] %vm524_vm1, %v818_v53  ;;  %v1541_v18 = vrot.slane %v965_v16, 1  ;;  %v6877_v62 = vmax.f32 %v5275_v46, 0.0 }
  0xdc   : > { %v669_v32 = vpop.f32.mrf.mxu0  ;;  %6969 = vst [vmem:[#allocation29_spill] sm:$0xff] %v5275_v46  ;;  %4250 = vmatmul.msk.f32.gmra.mxu1 %vm524_vm1, %v965_v16 }
  0xdd   : > { %v751_v60 = vmul.f32 %v5083_v59, %v669_v32  ;;  %v1542_v30 = vsel %vm1519_vm3, %v1540_v56, %v1541_v18  ;;  %v450_v32 = vmul.f32 %v4757_v1, %v414_v7  ;;  %v415_v56 = vld [vmem:[%s4765_s26 + $0xe0] sm:$0xff] }
  0xde   : > { %4282 = vmatmul.msk.f32.gmra.mxu2 %vm524_vm1, %v5280_v52  ;;  %4316 = vmatmul.msk.f32.gmra.mxu3 %vm524_vm1, %v1542_v30  ;;  %v967_v30 = vld [vmem:[#allocation2 + $0xa0] sm:$0xff] }
  0xdf   : > { %v787_v53 = vadd.f32 %v5099_v0, %v751_v60  ;;  %4232 = vmatmul.msk.f32.gmra.mxu0 %vm524_vm1, %v6876_v24  ;;  %v1083_v60 = vrot.slane %v965_v16, 7 }
  0xe1   : > { %v819_v48 = vmax.f32 %v787_v53, 0.0  ;;  %v1543_v53 = vrot.slane %v966_v42, 1 }
  0xe2   : > { %v968_v24 = vld [vmem:[#allocation2 + $0xa8] sm:$0xff] }
  0xe3   : > { %924 = vst.msk [vmem:[#allocation2 + $0xb0] sm:$0xff] %vm524_vm1, %v819_v48  ;;  %v5295_v48 = vadd.f32 %v4770_v2, %v450_v32  ;;  %v1544_v42 = vsel %vm1519_vm3, %v1541_v18, %v1543_v53  ;;  %v1545_v35 = vrot.slane %v968_v24, 1 }
  0xe4   : > { %v672_v36 = vpop.f32.mrf.mxu0  ;;  %4251 = vmatmul.msk.f32.gmra.mxu1 %vm524_vm1, %v968_v24 }
  0xe5   : > { %v752_v63 = vmul.f32 %v5083_v59, %v672_v36  ;;  %6970 = vst [vmem:[#allocation30_spill] sm:$0xff] %v5295_v48  ;;  %v5300_v36 = vsel %vm1059_vm2, %v1081_v14, %v1083_v60  ;;  %v1086_v14 = vrot.slane %v968_v24, 7  ;;  %v1085_v60 = vrot.slane %v967_v30, 7  ;;  %v970_v24 = vld [vmem:[#allocation2 + $0xb8] sm:$0xff] }
  0xe6   : > { %4283 = vmatmul.msk.f32.gmra.mxu2 %vm524_vm1, %v5300_v36  ;;  %4317 = vmatmul.msk.f32.gmra.mxu3 %vm524_vm1, %v1544_v42 }
  0xe7   : > { %v788_v44 = vadd.f32 %v5099_v0, %v752_v63  ;;  %4233 = vmatmul.msk.f32.gmra.mxu0 %vm524_vm1, %v6877_v62  ;;  %v6882_v63 = vmax.f32 %v5295_v48, 0.0  ;;  %v451_v62 = vmul.f32 %v4757_v1, %v415_v56  ;;  %v5320_v18 = vsel %vm1059_vm2, %v1085_v60, %v1086_v14 }
  0xe9   : > { %v820_v7 = vmax.f32 %v788_v44, 0.0  ;;  %v5315_v56 = vadd.f32 %v4770_v2, %v451_v62 }
  0xea   : > { %v969_v43 = vld [vmem:[#allocation2 + $0xb0] sm:$0xff] }
  0xeb   : > { %925 = vst.msk [vmem:[#allocation2 + $0xc8] sm:$0xff] %vm524_vm1, %v820_v7  ;;  %v1546_v44 = vrot.slane %v969_v43, 1  ;;  %v6883_v30 = vmax.f32 %v5315_v56, 0.0 }
  0xec   : > { %v675_v32 = vpop.f32.mrf.mxu0  ;;  %6971 = vst [vmem:[#allocation31_spill] sm:$0xff] %v5315_v56  ;;  %4252 = vmatmul.msk.f32.gmra.mxu1 %vm524_vm1, %v969_v43 }
  0xed   : > { %v753_v16 = vmul.f32 %v5083_v59, %v675_v32  ;;  %v1547_v53 = vsel %vm1519_vm3, %v1545_v35, %v1546_v44  ;;  %v452_v32 = vmul.f32 %v4757_v1, %v416_v39  ;;  %v417_v35 = vld [vmem:[%s4765_s26 + $0xf0] sm:$0xff] }
  0xee   : > { %4284 = vmatmul.msk.f32.gmra.mxu2 %vm524_vm1, %v5320_v18  ;;  %4318 = vmatmul.msk.f32.gmra.mxu3 %vm524_vm1, %v1547_v53  ;;  %v971_v53 = vld [vmem:[#allocation2 + $0xc0] sm:$0xff] }
  0xef   : > { %v789_v7 = vadd.f32 %v5099_v0, %v753_v16  ;;  %4234 = vmatmul.msk.f32.gmra.mxu0 %vm524_vm1, %v6882_v63  ;;  %v1088_v16 = vrot.slane %v969_v43, 7 }
  0xf1   : > { %v821_v31 = vmax.f32 %v789_v7, 0.0  ;;  %v1548_v7 = vrot.slane %v970_v24, 1 }
  0xf2   : > { %v972_v63 = vld [vmem:[#allocation2 + $0xc8] sm:$0xff] }
  0xf3   : > { %926 = vst.msk [vmem:[#allocation2 + $0xd0] sm:$0xff] %vm524_vm1, %v821_v31  ;;  %v5335_v31 = vadd.f32 %v4770_v2, %v452_v32  ;;  %v1549_v24 = vsel %vm1519_vm3, %v1546_v44, %v1548_v7  ;;  %v1550_v19 = vrot.slane %v972_v63, 1 }
  0xf4   : > { %v678_v42 = vpop.f32.mrf.mxu0  ;;  %4253 = vmatmul.msk.f32.gmra.mxu1 %vm524_vm1, %v972_v63 }
  0xf5   : > { %v754_v62 = vmul.f32 %v5083_v59, %v678_v42  ;;  %6972 = vst [vmem:[#allocation32_spill] sm:$0xff] %v5335_v31  ;;  %v5340_v42 = vsel %vm1059_vm2, %v1086_v14, %v1088_v16  ;;  %v1091_v14 = vrot.slane %v972_v63, 7  ;;  %v1090_v16 = vrot.slane %v971_v53, 7  ;;  %v4408_v63 = vld [vmem:[%s6851_s2 + $0x14] sm:$0xf] }
  0xf6   : > { %4285 = vmatmul.msk.f32.gmra.mxu2 %vm524_vm1, %v5340_v42  ;;  %4319 = vmatmul.msk.f32.gmra.mxu3 %vm524_vm1, %v1549_v24 }
  0xf7   : > { %v790_v60 = vadd.f32 %v5099_v0, %v754_v62  ;;  %4235 = vmatmul.msk.f32.gmra.mxu0 %vm524_vm1, %v6883_v30  ;;  %v6888_v62 = vmax.f32 %v5335_v31, 0.0  ;;  %v453_v30 = vmul.f32 %v4757_v1, %v417_v35  ;;  %v5360_v44 = vsel %vm1059_vm2, %v1090_v16, %v1091_v14  ;;  %4409 = vmatpush.msk.msrb.mxu2 %vm621_vm0, %v4408_v63 }
  0xf9   : > { %v822_v39 = vmax.f32 %v790_v60, 0.0  ;;  %v5355_v35 = vadd.f32 %v4770_v2, %v453_v30 }
  0xfa   : > { %v973_v27 = vld [vmem:[#allocation2 + $0xd0] sm:$0xff] }
  0xfb   : > { %927 = vst.msk [vmem:[#allocation2 + $0xe8] sm:$0xff] %vm524_vm1, %v822_v39  ;;  %v1551_v60 = vrot.slane %v973_v27, 1  ;;  %v6889_v53 = vmax.f32 %v5355_v35, 0.0 }
  0xfc   : > { %v681_v32 = vpop.f32.mrf.mxu0  ;;  %6973 = vst [vmem:[#allocation33_spill] sm:$0xff] %v5355_v35  ;;  %4254 = vmatmul.msk.f32.gmra.mxu1 %vm524_vm1, %v973_v27 }
  0xfd   : > { %v755_v43 = vmul.f32 %v5083_v59, %v681_v32  ;;  %v1552_v7 = vsel %vm1519_vm3, %v1550_v19, %v1551_v60  ;;  %v454_v32 = vmul.f32 %v4757_v1, %v418_v23  ;;  %v974_v19 = vld [vmem:[#allocation2 + $0xd8] sm:$0xff] }
  0xfe   : > { %4286 = vmatmul.msk.f32.gmra.mxu2 %vm524_vm1, %v5360_v44  ;;  %4320 = vmatmul.msk.f32.gmra.mxu3 %vm524_vm1, %v1552_v7 }
  0xff   : > { %v791_v39 = vadd.f32 %v5099_v0, %v755_v43  ;;  %4236 = vmatmul.msk.f32.gmra.mxu0 %vm524_vm1, %v6888_v62  ;;  %v1093_v43 = vrot.slane %v973_v27, 7  ;;  %v5382_v23 = vadd.f32 %v4770_v2, %v454_v32 }
 0x101   : > { %v823_v15 = vmax.f32 %v791_v39, 0.0  ;;  %6974 = vst [vmem:[#allocation34_spill] sm:$0xff] %v5382_v23  ;;  %v1553_v39 = vrot.slane %v974_v19, 1  ;;  %v5387_v7 = vsel %vm1059_vm2, %v1091_v14, %v1093_v43  ;;  %v6890_v63 = vmax.f32 %v5382_v23, 0.0 }
 0x103   : > { %928 = vst.msk [vmem:[#allocation2 + $0xf0] sm:$0xff] %vm524_vm1, %v823_v15  ;;  %v4442_v15 = vld [vmem:[%s6851_s2 + $0x18] sm:$0xf]  ;;  %v1554_v2 = vsel %vm1519_vm3, %v1551_v60, %v1553_v39 }
 0x104   : > { %v684_v24 = vpop.f32.mrf.mxu0  ;;  %4443 = vmatpush.msk.msrb.mxu3 %vm621_vm0, %v4442_v15 }
 0x105   : > { %v756_v30 = vmul.f32 %v5083_v59, %v684_v24  ;;  %v976_v24 = vld [vmem:[#allocation2 + $0xe8] sm:$0xff] }
 0x106   : > { %4287 = vmatmul.msk.f32.gmra.mxu2 %vm524_vm1, %v5387_v7  ;;  %v1096_v15 = vrot.slane %v976_v24, 7  ;;  %4321 = vmatmul.msk.f32.gmra.mxu3 %vm524_vm1, %v1554_v2  ;;  %v1555_v19 = vrot.slane %v976_v24, 1  ;;  %v978_v2 = vld [vmem:[#allocation2 + $0xf8] sm:$0xff] }
 0x107   : > { %v792_v1 = vadd.f32 %v5099_v0, %v756_v30  ;;  %4237 = vmatmul.msk.f32.gmra.mxu0 %vm524_vm1, %v6889_v53  ;;  %v975_v30 = vld [vmem:[#allocation2 + $0xe0] sm:$0xff]  ;;  %4255 = vmatmul.msk.f32.gmra.mxu1 %vm524_vm1, %v976_v24 }
 0x108   : > { %v1095_v27 = vrot.slane %v975_v30, 7 }
 0x109   : > { %v824_v16 = vmax.f32 %v792_v1, 0.0 }
 0x10a   : > { %v977_v62 = vld [vmem:[#allocation2 + $0xf0] sm:$0xff] }
 0x10b   : > { %929 = vst.msk [vmem:[#allocation2 + $0x108] sm:$0xff] %vm524_vm1, %v824_v16  ;;  %v1556_v14 = vrot.slane %v977_v62, 1  ;;  %v5402_v16 = vsel %vm1059_vm2, %v1095_v27, %v1096_v15  ;;  %v1098_v30 = vrot.slane %v977_v62, 7  ;;  %v1558_v27 = vrot.slane %v978_v2, 1 }
 0x10c   : > { %v687_v53 = vpop.f32.mrf.mxu0 }
 0x10d   : > { %v757_v32 = vmul.f32 %v5083_v59, %v687_v53  ;;  %v1557_v60 = vsel %vm1519_vm3, %v1555_v19, %v1556_v14  ;;  %v5417_v19 = vpop.f32.mrf.mxu1 }
 0x10e   : > { %4288 = vmatmul.msk.f32.gmra.mxu2 %vm524_vm1, %v5402_v16  ;;  %4322 = vmatmul.msk.f32.gmra.mxu3 %vm524_vm1, %v1557_v60 }
 0x10f   : > { %v793_v43 = vadd.f32 %v5099_v0, %v757_v32  ;;  %4238 = vmatmul.msk.f32.gmra.mxu0 %vm524_vm1, %v6890_v63  ;;  %4256 = vmatmul.msk.f32.gmra.mxu1 %vm524_vm1, %v977_v62 }
 0x111   : > { %v825_v1 = vmax.f32 %v793_v43, 0.0  ;;  %v5415_v43 = vsel %vm1059_vm2, %v1096_v15, %v1098_v30 }
 0x113   : > { %930 = vst.msk [vmem:[#allocation2 + $0x110] sm:$0xff] %vm524_vm1, %v825_v1  ;;  %v980_v1 = vld [vmem:[#allocation2 + $0x108] sm:$0xff] }
 0x114   : > { %v690_v53 = vpop.f32.mrf.mxu0  ;;  %v1101_v2 = vrot.slane %v980_v1, 7 }
 0x115   : > { %v758_v39 = vmul.f32 %v5083_v59, %v690_v53  ;;  %v979_v53 = vld [vmem:[#allocation2 + $0x100] sm:$0xff] }
 0x116   : > { %4289 = vmatmul.msk.f32.gmra.mxu2 %vm524_vm1, %v5415_v43  ;;  %v1100_v62 = vrot.slane %v979_v53, 7 }
 0x117   : > { %v794_v32 = vadd.f32 %v5099_v0, %v758_v39  ;;  %4342 = vmatmul.msk.f32.vlgmr.msrb.gmra.mxu0 %vm524_vm1, %v5163_v34  ;;  %v1559_v34 = vsel %vm1519_vm3, %v1556_v14, %v1558_v27  ;;  %4257 = vmatmul.msk.f32.gmra.mxu1 %vm524_vm1, %v980_v1  ;;  %v5436_v27 = vpop.f32.mrf.mxu1 }
 0x118   : > { %4323 = vmatmul.msk.f32.gmra.mxu3 %vm524_vm1, %v1559_v34  ;;  %v5430_v11 = vsel %vm1059_vm2, %v1100_v62, %v1101_v2 }
 0x119   : > { %v826_v24 = vmax.f32 %v794_v32, 0.0  ;;  %v1560_v32 = vrot.slane %v980_v1, 1  ;;  %v982_v1 = vld [vmem:[#allocation2 + $0x118] sm:$0xff] }
 0x11a   : > { %v981_v60 = vld [vmem:[#allocation2 + $0x110] sm:$0xff] }
 0x11b   : > { %931 = vst.msk [vmem:[#allocation2 + $0x128] sm:$0xff] %vm524_vm1, %v826_v24  ;;  %v1561_v15 = vrot.slane %v981_v60, 1  ;;  %v1103_v34 = vrot.slane %v981_v60, 7 }
 0x11c   : > { %v693_v63 = vpop.f32.mrf.mxu0 }
 0x11d   : > { %v759_v39 = vmul.f32 %v5083_v59, %v693_v63  ;;  %v1562_v63 = vsel %vm1519_vm3, %v1560_v32, %v1561_v15  ;;  %v1563_v32 = vrot.slane %v982_v1, 1  ;;  %v1105_v1 = vrot.slane %v983_v8, 7 }
 0x11e   : > { %4290 = vmatmul.msk.f32.gmra.mxu2 %vm524_vm1, %v5430_v11 }
 0x11f   : > { %v795_v30 = vadd.f32 %v5099_v0, %v759_v39  ;;  %4343 = vmatmul.msk.f32.gmra.mxu0 %vm524_vm1, %v5180_v4  ;;  %v5439_v4 = vpop.f32.mrf.mxu2  ;;  %v5442_v39 = vpop.f32.mrf.mxu3  ;;  %4258 = vmatmul.msk.f32.gmra.mxu1 %vm524_vm1, %v981_v60 }
 0x120   : > { %4324 = vmatmul.msk.f32.gmra.mxu3 %vm524_vm1, %v1562_v63  ;;  %v1233_v60 = vpop.f32.mrf.mxu1 }
 0x121   : > { %v827_v24 = vmax.f32 %v795_v30, 0.0 }
 0x123   : > { %932 = vst.msk [vmem:[#allocation2 + $0x130] sm:$0xff] %vm524_vm1, %v827_v24  ;;  %v5449_v24 = vsel %vm1059_vm2, %v1101_v2, %v1103_v34 }
 0x124   : > { %v696_v14 = vpop.f32.mrf.mxu0 }
 0x125   : > { %v760_v53 = vmul.f32 %v5083_v59, %v696_v14  ;;  %v984_v14 = vld [vmem:[#allocation2 + $0x128] sm:$0xff] }
 0x126   : > { %4291 = vmatmul.msk.f32.gmra.mxu2 %vm524_vm1, %v5449_v24  ;;  %v1565_v31 = vrot.slane %v984_v14, 1 }
 0x127   : > { %v796_v62 = vadd.f32 %v5099_v0, %v760_v53  ;;  %4344 = vmatmul.msk.f32.gmra.mxu0 %vm524_vm1, %v5200_v26  ;;  %v1564_v53 = vsel %vm1519_vm3, %v1561_v15, %v1563_v32  ;;  %v5462_v35 = vpop.f32.mrf.mxu3  ;;  %4259 = vmatmul.msk.f32.gmra.mxu1 %vm524_vm1, %v984_v14 }
 0x128   : > { %4325 = vmatmul.msk.f32.gmra.mxu3 %vm524_vm1, %v1564_v53  ;;  %v986_v53 = vld [vmem:[#allocation2 + $0x138] sm:$0xff] }
 0x129   : > { %v828_v30 = vmax.f32 %v796_v62, 0.0  ;;  %v1106_v62 = vrot.slane %v984_v14, 7  ;;  %v1568_v48 = vrot.slane %v986_v53, 1 }
 0x12a   : > { %v985_v63 = vld [vmem:[#allocation2 + $0x130] sm:$0xff] }
 0x12b   : > { %933 = vst.msk [vmem:[#allocation2 + $0x148] sm:$0xff] %vm524_vm1, %v828_v30  ;;  %v1566_v2 = vrot.slane %v985_v63, 1  ;;  %v5460_v30 = vpop.f32.mrf.mxu2  ;;  %v1108_v32 = vrot.slane %v985_v63, 7 }
 0x12c   : > { %v699_v23 = vpop.f32.mrf.mxu0 }
 0x12d   : > { %v761_v26 = vmul.f32 %v5083_v59, %v699_v23  ;;  %v5466_v23 = vsel %vm1059_vm2, %v1105_v1, %v1106_v62  ;;  %v1567_v8 = vsel %vm1519_vm3, %v1565_v31, %v1566_v2  ;;  %v5479_v46 = vsel %vm1059_vm2, %v1106_v62, %v1108_v32 }
 0x12e   : > { %4292 = vmatmul.msk.f32.gmra.mxu2 %vm524_vm1, %v5466_v23 }
 0x12f   : > { %v797_v34 = vadd.f32 %v5099_v0, %v761_v26  ;;  %4345 = vmatmul.msk.f32.gmra.mxu0 %vm524_vm1, %v5220_v54  ;;  %v1236_v26 = vpop.f32.mrf.mxu1  ;;  %4260 = vmatmul.msk.f32.gmra.mxu1 %vm524_vm1, %v985_v63  ;;  %v1110_v63 = vrot.slane %v987_v28, 7 }
 0x130   : > { %4326 = vmatmul.msk.f32.gmra.mxu3 %vm524_vm1, %v1567_v8 }
 0x131   : > { %v829_v56 = vmax.f32 %v797_v34, 0.0  ;;  %v1692_v34 = vpop.f32.mrf.mxu3 }
 0x132   : > { %v988_v8 = vld [vmem:[#allocation2 + $0x148] sm:$0xff] }
 0x133   : > { %934 = vst.msk [vmem:[#allocation2 + $0x150] sm:$0xff] %vm524_vm1, %v829_v56  ;;  %v1413_v1 = vpop.f32.mrf.mxu2  ;;  %v1111_v53 = vrot.slane %v988_v8, 7 }
 0x134   : > { %v702_v15 = vpop.f32.mrf.mxu0  ;;  %v1414_v56 = vadd.f32 %v1413_v1, %v1233_v60 }
 0x135   : > { %v762_v54 = vmul.f32 %v5083_v59, %v702_v15 }
 0x136   : > { %v5481_v15 = vadd.f32 %v1692_v34, %v1414_v56  ;;  %4293 = vmatmul.msk.f32.gmra.mxu2 %vm524_vm1, %v5479_v46  ;;  %v1570_v34 = vrot.slane %v988_v8, 1 }
 0x137   : > { %v798_v14 = vadd.f32 %v5099_v0, %v762_v54  ;;  %4346 = vmatmul.msk.f32.gmra.mxu0 %vm524_vm1, %v5240_v55  ;;  %v1569_v55 = vsel %vm1519_vm3, %v1566_v2, %v1568_v48  ;;  %v1239_v62 = vpop.f32.mrf.mxu1  ;;  %4261 = vmatmul.msk.f32.gmra.mxu1 %vm524_vm1, %v988_v8 }
 0x138   : > { %4327 = vmatmul.msk.f32.gmra.mxu3 %vm524_vm1, %v1569_v55  ;;  %v990_v55 = vld [vmem:[#allocation2 + $0x158] sm:$0xff] }
 0x139   : > { %v830_v31 = vmax.f32 %v798_v14, 0.0 }
 0x13a   : > { %v989_v54 = vld [vmem:[#allocation2 + $0x150] sm:$0xff] }
 0x13b   : > { %935 = vst.msk [vmem:[#allocation2 + $0x168] sm:$0xff] %vm524_vm1, %v830_v31  ;;  %v1571_v32 = vrot.slane %v989_v54, 1  ;;  %v1416_v1 = vpop.f32.mrf.mxu2  ;;  %v1695_v31 = vpop.f32.mrf.mxu3 }
 0x13c   : > { %v705_v49 = vpop.f32.mrf.mxu0  ;;  %v1417_v56 = vadd.f32 %v1416_v1, %v1236_v26  ;;  %v1113_v26 = vrot.slane %v989_v54, 7 }
 0x13d   : > { %v763_v60 = vmul.f32 %v5083_v59, %v705_v49  ;;  %v5494_v49 = vsel %vm1059_vm2, %v1110_v63, %v1111_v53  ;;  %v1572_v48 = vsel %vm1519_vm3, %v1570_v34, %v1571_v32 }
 0x13e   : > { %v5496_v28 = vadd.f32 %v1695_v31, %v1417_v56  ;;  %4294 = vmatmul.msk.f32.gmra.mxu2 %vm524_vm1, %v5494_v49  ;;  %v1573_v56 = vrot.slane %v990_v55, 1  ;;  %v5509_v34 = vsel %vm1059_vm2, %v1111_v53, %v1113_v26 }
 0x13f   : > { %v799_v14 = vadd.f32 %v5099_v0, %v763_v60  ;;  %4347 = vmatmul.msk.f32.gmra.mxu0 %vm524_vm1, %v5260_v10  ;;  %v1242_v8 = vpop.f32.mrf.mxu1  ;;  %4262 = vmatmul.msk.f32.gmra.mxu1 %vm524_vm1, %v989_v54 }
 0x140   : > { %4328 = vmatmul.msk.f32.gmra.mxu3 %vm524_vm1, %v1572_v48 }
 0x141   : > { %v831_v22 = vmax.f32 %v799_v14, 0.0 }
 0x142   : > { %v992_v48 = vld [vmem:[#allocation2 + $0x168] sm:$0xff] }
 0x143   : > { %936 = vst.msk [vmem:[#allocation2 + $0x170] sm:$0xff] %vm524_vm1, %v831_v22  ;;  %v1419_v63 = vpop.f32.mrf.mxu2  ;;  %v1698_v14 = vpop.f32.mrf.mxu3  ;;  %v1116_v55 = vrot.slane %v992_v48, 7 }
 0x144   : > { %v708_v2 = vpop.f32.mrf.mxu0  ;;  %v1420_v22 = vadd.f32 %v1419_v63, %v1239_v62 }
 0x145   : > { %v764_v10 = vmul.f32 %v5083_v59, %v708_v2  ;;  %v991_v2 = vld [vmem:[#allocation2 + $0x160] sm:$0xff] }
 0x146   : > { %v5511_v31 = vadd.f32 %v1698_v14, %v1420_v22  ;;  %4295 = vmatmul.msk.f32.gmra.mxu2 %vm524_vm1, %v5509_v34  ;;  %v1115_v54 = vrot.slane %v991_v2, 7  ;;  %v1575_v14 = vrot.slane %v992_v48, 1 }
 0x147   : > { %v800_v60 = vadd.f32 %v5099_v0, %v764_v10  ;;  %4348 = vmatmul.msk.f32.gmra.mxu0 %vm524_vm1, %v5280_v52  ;;  %v1574_v52 = vsel %vm1519_vm3, %v1571_v32, %v1573_v56  ;;  %v1245_v53 = vpop.f32.mrf.mxu1  ;;  %4263 = vmatmul.msk.f32.gmra.mxu1 %vm524_vm1, %v992_v48 }
 0x148   : > { %4329 = vmatmul.msk.f32.gmra.mxu3 %vm524_vm1, %v1574_v52  ;;  %v994_v52 = vld [vmem:[#allocation2 + $0x178] sm:$0xff] }
 0x149   : > { %v832_v1 = vmax.f32 %v800_v60, 0.0 }
 0x14a   : > { %v993_v10 = vld [vmem:[#allocation2 + $0x170] sm:$0xff] }
 0x14b   : > { %937 = vst.msk [vmem:[#allocation2 + $0x188] sm:$0xff] %vm524_vm1, %v832_v1  ;;  %v1576_v26 = vrot.slane %v993_v10, 1  ;;  %v1422_v63 = vpop.f32.mrf.mxu2  ;;  %v1701_v1 = vpop.f32.mrf.mxu3 }
 0x14c   : > { %v711_v61 = vpop.f32.mrf.mxu0  ;;  %v1423_v22 = vadd.f32 %v1422_v63, %v1242_v8  ;;  %v1118_v8 = vrot.slane %v993_v10, 7 }
 0x14d   : > { %v765_v62 = vmul.f32 %v5083_v59, %v711_v61  ;;  %v5524_v61 = vsel %vm1059_vm2, %v1115_v54, %v1116_v55  ;;  %v1577_v56 = vsel %vm1519_vm3, %v1575_v14, %v1576_v26 }
 0x14e   : > { %v5526_v32 = vadd.f32 %v1701_v1, %v1423_v22  ;;  %4296 = vmatmul.msk.f32.gmra.mxu2 %vm524_vm1, %v5524_v61  ;;  %v1578_v22 = vrot.slane %v994_v52, 1  ;;  %v5539_v14 = vsel %vm1059_vm2, %v1116_v55, %v1118_v8 }
 0x14f   : > { %v801_v60 = vadd.f32 %v5099_v0, %v765_v62  ;;  %4349 = vmatmul.msk.f32.gmra.mxu0 %vm524_vm1, %v5300_v36  ;;  %v1248_v48 = vpop.f32.mrf.mxu1  ;;  %4264 = vmatmul.msk.f32.gmra.mxu1 %vm524_vm1, %v993_v10 }
 0x150   : > { %4330 = vmatmul.msk.f32.gmra.mxu3 %vm524_vm1, %v1577_v56 }
 0x151   : > { %v833_v58 = vmax.f32 %v801_v60, 0.0 }
 0x152   : > { %v996_v56 = vld [vmem:[#allocation2 + $0x188] sm:$0xff] }
 0x153   : > { %938 = vst.msk [vmem:[#allocation2 + $0x190] sm:$0xff] %vm524_vm1, %v833_v58  ;;  %v1425_v54 = vpop.f32.mrf.mxu2  ;;  %v1704_v60 = vpop.f32.mrf.mxu3  ;;  %v1121_v52 = vrot.slane %v996_v56, 7 }
 0x154   : > { %v714_v2 = vpop.f32.mrf.mxu0  ;;  %v1426_v58 = vadd.f32 %v1425_v54, %v1245_v53 }
 0x155   : > { %v766_v36 = vmul.f32 %v5083_v59, %v714_v2  ;;  %v995_v2 = vld [vmem:[#allocation2 + $0x180] sm:$0xff] }
 0x156   : > { %v5541_v1 = vadd.f32 %v1704_v60, %v1426_v58  ;;  %4297 = vmatmul.msk.f32.gmra.mxu2 %vm524_vm1, %v5539_v14  ;;  %v1120_v10 = vrot.slane %v995_v2, 7  ;;  %v1580_v60 = vrot.slane %v996_v56, 1 }
 0x157   : > { %v802_v62 = vadd.f32 %v5099_v0, %v766_v36  ;;  %4350 = vmatmul.msk.f32.gmra.mxu0 %vm524_vm1, %v5320_v18  ;;  %v1579_v18 = vsel %vm1519_vm3, %v1576_v26, %v1578_v22  ;;  %v1251_v55 = vpop.f32.mrf.mxu1  ;;  %4265 = vmatmul.msk.f32.gmra.mxu1 %vm524_vm1, %v996_v56 }
 0x158   : > { %4331 = vmatmul.msk.f32.gmra.mxu3 %vm524_vm1, %v1579_v18  ;;  %v998_v18 = vld [vmem:[#allocation2 + $0x198] sm:$0xff] }
 0x159   : > { %v834_v63 = vmax.f32 %v802_v62, 0.0 }
 0x15a   : > { %v997_v36 = vld [vmem:[#allocation2 + $0x190] sm:$0xff] }
 0x15b   : > { %939 = vst.msk [vmem:[#allocation2 + $0x1a8] sm:$0xff] %vm524_vm1, %v834_v63  ;;  %v1581_v8 = vrot.slane %v997_v36, 1  ;;  %v1428_v54 = vpop.f32.mrf.mxu2  ;;  %v1707_v63 = vpop.f32.mrf.mxu3 }
 0x15c   : > { %v717_v47 = vpop.f32.mrf.mxu0  ;;  %v1429_v58 = vadd.f32 %v1428_v54, %v1248_v48  ;;  %v1123_v48 = vrot.slane %v997_v36, 7 }
 0x15d   : > { %v767_v53 = vmul.f32 %v5083_v59, %v717_v47  ;;  %v5554_v47 = vsel %vm1059_vm2, %v1120_v10, %v1121_v52  ;;  %v1582_v22 = vsel %vm1519_vm3, %v1580_v60, %v1581_v8 }
 0x15e   : > { %v5556_v26 = vadd.f32 %v1707_v63, %v1429_v58  ;;  %4298 = vmatmul.msk.f32.gmra.mxu2 %vm524_vm1, %v5554_v47  ;;  %v1583_v58 = vrot.slane %v998_v18, 1  ;;  %v5569_v60 = vsel %vm1059_vm2, %v1121_v52, %v1123_v48 }
 0x15f   : > { %v803_v62 = vadd.f32 %v5099_v0, %v767_v53  ;;  %4351 = vmatmul.msk.f32.gmra.mxu0 %vm524_vm1, %v5340_v42  ;;  %v1254_v56 = vpop.f32.mrf.mxu1  ;;  %4266 = vmatmul.msk.f32.gmra.mxu1 %vm524_vm1, %v997_v36  ;;  %v5580_v36 = vld [vmem:[%s6856_s7] ss:$0 sm:$0xff] }
 0x160   : > { %4332 = vmatmul.msk.f32.gmra.mxu3 %vm524_vm1, %v1582_v22  ;;  %v999_v22 = vld [vmem:[#allocation2 + $0x1a0] sm:$0xff] }
 0x161   : > { %v835_v40 = vmax.f32 %v803_v62, 0.0 }
 0x162   : > { %v1000_v63 = vld [vmem:[#allocation2 + $0x1a8] sm:$0xff] }
 0x163   : > { %940 = vst.msk [vmem:[#allocation2 + $0x1b0] sm:$0xff] %vm524_vm1, %v835_v40  ;;  %v1431_v10 = vpop.f32.mrf.mxu2  ;;  %v1710_v62 = vpop.f32.mrf.mxu3 }
 0x164   : > { %v720_v2 = vpop.f32.mrf.mxu0  ;;  %v1432_v40 = vadd.f32 %v1431_v10, %v1251_v55  ;;  %v1126_v55 = vrot.slane %v1000_v63, 7 }
 0x165   : > { %v768_v42 = vmul.f32 %v5083_v59, %v720_v2 }
 0x166   : > { %v5571_v59 = vadd.f32 %v1710_v62, %v1432_v40  ;;  %4299 = vmatmul.msk.f32.gmra.mxu2 %vm524_vm1, %v5569_v60  ;;  %v1585_v62 = vrot.slane %v1000_v63, 1 }
 0x167   : > { %v804_v53 = vadd.f32 %v5099_v0, %v768_v42  ;;  %4352 = vmatmul.msk.f32.gmra.mxu0 %vm524_vm1, %v5360_v44  ;;  %v1584_v44 = vsel %vm1519_vm3, %v1581_v8, %v1583_v58  ;;  %v1125_v42 = vrot.slane %v999_v22, 7  ;;  %v1257_v48 = vpop.f32.mrf.mxu1  ;;  %4267 = vmatmul.msk.f32.gmra.mxu1 %vm524_vm1, %v1000_v63 }
 0x168   : > { %4333 = vmatmul.msk.f32.gmra.mxu3 %vm524_vm1, %v1584_v44 }
 0x169   : > { %v836_v54 = vmax.f32 %v804_v53, 0.0  ;;  %v5587_v53 = vld [vmem:[%s6857_s8] ss:$0 sm:$0xff]  ;;  %v5594_v22 = vsel %vm1059_vm2, %v1125_v42, %v1126_v55 }
 0x16a   : > { %v1001_v0 = vld [vmem:[#allocation2 + $0x1b0] sm:$0xff] }
 0x16b   : > { %941 = vst.msk [vmem:[#allocation2 + $0x1c8] sm:$0xff] %vm524_vm1, %v836_v54  ;;  %v1586_v18 = vrot.slane %v1001_v0, 1  ;;  %v1434_v10 = vpop.f32.mrf.mxu2  ;;  %v1713_v54 = vpop.f32.mrf.mxu3 }
 0x16c   : > { %v723_v2 = vpop.f32.mrf.mxu0  ;;  %v1435_v40 = vadd.f32 %v1434_v10, %v1254_v56  ;;  %v1128_v56 = vrot.slane %v1001_v0, 7 }
 0x16d   : > { %v769_v52 = vmul.f32 %v5580_v36, %v723_v2  ;;  %v1587_v44 = vsel %vm1519_vm3, %v1585_v62, %v1586_v18 }
 0x16e   : > { %v5596_v2 = vadd.f32 %v1713_v54, %v1435_v40  ;;  %4300 = vmatmul.msk.f32.gmra.mxu2 %vm524_vm1, %v5594_v22  ;;  %v5609_v5 = vsel %vm1059_vm2, %v1126_v55, %v1128_v56 }
 0x16f   : > { %v805_v8 = vadd.f32 %v5587_v53, %v769_v52  ;;  %4353 = vmatmul.msk.f32.gmra.mxu0 %vm524_vm1, %v5387_v7  ;;  %v1260_v63 = vpop.f32.mrf.mxu1  ;;  %4268 = vmatmul.msk.f32.gmra.mxu1 %vm524_vm1, %v1001_v0  ;;  %v1130_v0 = vrot.slane %v1003_v57, 7 }
 0x170   : > { %4334 = vmatmul.msk.f32.gmra.mxu3 %vm524_vm1, %v1587_v44 }
 0x171   : > { %v837_v58 = vmax.f32 %v805_v8, 0.0  ;;  %v1002_v8 = vld [vmem:[#allocation2 + $0x1b8] sm:$0xff] }
 0x172   : > { %v1004_v44 = vld [vmem:[#allocation2 + $0x1c8] sm:$0xff] }
 0x173   : > { %942 = vst.msk [vmem:[#allocation2 + $0x1d0] sm:$0xff] %vm524_vm1, %v837_v58  ;;  %v1437_v10 = vpop.f32.mrf.mxu2  ;;  %v1716_v54 = vpop.f32.mrf.mxu3  ;;  %v1588_v58 = vrot.slane %v1002_v8, 1  ;;  %v1131_v8 = vrot.slane %v1004_v44, 7 }
 0x174   : > { %v726_v52 = vpop.f32.mrf.mxu0  ;;  %v1438_v40 = vadd.f32 %v1437_v10, %v1257_v48 }
 0x175   : > { %v770_v7 = vmul.f32 %v5580_v36, %v726_v52  ;;  %v5627_v57 = vsel %vm1059_vm2, %v1130_v0, %v1131_v8 }
 0x176   : > { %v5611_v52 = vadd.f32 %v1716_v54, %v1438_v40  ;;  %4301 = vmatmul.msk.f32.gmra.mxu2 %vm524_vm1, %v5609_v5  ;;  %v1590_v54 = vrot.slane %v1004_v44, 1 }
 0x177   : > { %v806_v42 = vadd.f32 %v5587_v53, %v770_v7  ;;  %4354 = vmatmul.msk.f32.gmra.mxu0 %vm524_vm1, %v5402_v16  ;;  %v1589_v16 = vsel %vm1519_vm3, %v1586_v18, %v1588_v58  ;;  %v1263_v55 = vpop.f32.mrf.mxu1  ;;  %4269 = vmatmul.msk.f32.gmra.mxu1 %vm524_vm1, %v1004_v44 }
 0x178   : > { %4335 = vmatmul.msk.f32.gmra.mxu3 %vm524_vm1, %v1589_v16 }
 0x179   : > { %v838_v62 = vmax.f32 %v806_v42, 0.0 }
 0x17a   : > { %v1005_v7 = vld [vmem:[#allocation2 + $0x1d0] sm:$0xff] }
 0x17b   : > { %943 = vst.msk [vmem:[#allocation2 + $0x1e8] sm:$0xff] %vm524_vm1, %v838_v62  ;;  %v1591_v56 = vrot.slane %v1005_v7, 1  ;;  %v1440_v10 = vpop.f32.mrf.mxu2  ;;  %v1719_v62 = vpop.f32.mrf.mxu3  ;;  %v1133_v16 = vrot.slane %v1005_v7, 7 }
 0x17c   : > { %v729_v51 = vpop.f32.mrf.mxu0  ;;  %v1441_v40 = vadd.f32 %v1440_v10, %v1260_v63 }
 0x17d   : > { %v771_v48 = vmul.f32 %v5580_v36, %v729_v51  ;;  %v4476_v51 = vld [vmem:[%s6851_s2 + $0x1c] sm:$0xf]  ;;  %v1592_v63 = vsel %vm1519_vm3, %v1590_v54, %v1591_v56 }
 0x17e   : > { %4477 = vmatpush.msk.msra.mxu0 %vm621_vm0, %v4476_v51  ;;  %v5633_v18 = vadd.f32 %v1719_v62, %v1441_v40  ;;  %4302 = vmatmul.msk.f32.gmra.mxu2 %vm524_vm1, %v5627_v57  ;;  %v5647_v51 = vsel %vm1059_vm2, %v1131_v8, %v1133_v16 }
 0x17f   : > { %v807_v42 = vadd.f32 %v5587_v53, %v771_v48  ;;  %4355 = vmatmul.msk.f32.gmra.mxu0 %vm524_vm1, %v5415_v43  ;;  %v4510_v43 = vld [vmem:[%s6851_s2 + $0x20] sm:$0xf]  ;;  %v1006_v48 = vld [vmem:[#allocation2 + $0x1d8] sm:$0xff]  ;;  %v1266_v0 = vpop.f32.mrf.mxu1  ;;  %4270 = vmatmul.msk.f32.gmra.mxu1 %vm524_vm1, %v1005_v7 }
 0x180   : > { %4511 = vmatpush.msk.msra.mxu1 %vm621_vm0, %v4510_v43  ;;  %4336 = vmatmul.msk.f32.gmra.mxu3 %vm524_vm1, %v1592_v63  ;;  %v1593_v62 = vrot.slane %v1006_v48, 1 }
 0x181   : > { %v839_v38 = vmax.f32 %v807_v42, 0.0 }
 0x182   : > { %v1008_v63 = vld [vmem:[#allocation2 + $0x1e8] sm:$0xff] }
 0x183   : > { %944 = vst.msk [vmem:[#allocation2 + $0x1f0] sm:$0xff] %vm524_vm1, %v839_v38  ;;  %v1443_v38 = vpop.f32.mrf.mxu2  ;;  %v1722_v40 = vpop.f32.mrf.mxu3  ;;  %v1136_v48 = vrot.slane %v1008_v63, 7 }
 0x184   : > { %v732_v58 = vpop.f32.mrf.mxu0  ;;  %v1444_v10 = vadd.f32 %v1443_v38, %v1263_v55 }
 0x185   : > { %v772_v44 = vmul.f32 %v5580_v36, %v732_v58  ;;  %v1007_v58 = vld [vmem:[#allocation2 + $0x1e0] sm:$0xff] }
 0x186   : > { %v5649_v43 = vadd.f32 %v1722_v40, %v1444_v10  ;;  %4303 = vmatmul.msk.f32.gmra.mxu2 %vm524_vm1, %v5647_v51  ;;  %v1135_v7 = vrot.slane %v1007_v58, 7  ;;  %v1595_v40 = vrot.slane %v1008_v63, 1 }
 0x187   : > { %v808_v42 = vadd.f32 %v5587_v53, %v772_v44  ;;  %4356 = vmatmul.msk.f32.gmra.mxu0 %vm524_vm1, %v5430_v11  ;;  %v1594_v11 = vsel %vm1519_vm3, %v1591_v56, %v1593_v62  ;;  %v1269_v8 = vpop.f32.mrf.mxu1  ;;  %4271 = vmatmul.msk.f32.gmra.mxu1 %vm524_vm1, %v1008_v63 }
 0x188   : > { %4337 = vmatmul.msk.f32.gmra.mxu3 %vm524_vm1, %v1594_v11 }
 0x189   : > { %v840_v54 = vmax.f32 %v808_v42, 0.0 }
 0x18a   : > { %v1009_v44 = vld [vmem:[#allocation2 + $0x1f0] sm:$0xff] }
 0x18b   : > { %945 = vst.msk [vmem:[#allocation2 + $0x208] sm:$0xff] %vm524_vm1, %v840_v54  ;;  %v1596_v16 = vrot.slane %v1009_v44, 1  ;;  %v1446_v38 = vpop.f32.mrf.mxu2  ;;  %v1725_v54 = vpop.f32.mrf.mxu3 }
 0x18c   : > { %v735_v20 = vpop.f32.mrf.mxu0  ;;  %v1447_v10 = vadd.f32 %v1446_v38, %v1266_v0  ;;  %v1010_v0 = vld [vmem:[#allocation2 + $0x1f8] sm:$0xff] }
 0x18d   : > { %v773_v55 = vmul.f32 %v5580_v36, %v735_v20  ;;  %v5662_v20 = vsel %vm1059_vm2, %v1135_v7, %v1136_v48  ;;  %v1597_v56 = vsel %vm1519_vm3, %v1595_v40, %v1596_v16 }
 0x18e   : > { %v5664_v36 = vadd.f32 %v1725_v54, %v1447_v10  ;;  %4304 = vmatmul.msk.f32.gmra.mxu2 %vm524_vm1, %v5662_v20 }
 0x18f   : > { %v809_v42 = vadd.f32 %v5587_v53, %v773_v55  ;;  %4357 = vmatmul.msk.f32.gmra.mxu0 %vm524_vm1, %v5449_v24  ;;  %v1138_v24 = vrot.slane %v1009_v44, 7  ;;  %v1272_v62 = vpop.f32.mrf.mxu1  ;;  %v1598_v55 = vrot.slane %v1010_v0, 1  ;;  %4272 = vmatmul.msk.f32.gmra.mxu1 %vm524_vm1, %v1009_v44 }
 0x190   : > { %4338 = vmatmul.msk.f32.gmra.mxu3 %vm524_vm1, %v1597_v56 }
 0x191   : > { %v841_v12 = vmax.f32 %v809_v42, 0.0  ;;  %v1599_v38 = vsel %vm1519_vm3, %v1596_v16, %v1598_v55 }
 0x193   : > { %946 = vst.msk [vmem:[#allocation2 + $0x210] sm:$0xff] %vm524_vm1, %v841_v12  ;;  %v1449_v63 = vpop.f32.mrf.mxu2  ;;  %v1728_v11 = vpop.f32.mrf.mxu3  ;;  %v5677_v12 = vsel %vm1059_vm2, %v1136_v48, %v1138_v24  ;;  %v4631_v48 = vld [vmem:[#allocation2 + $0x30] sm:$0xff] }
 0x194   : > { %v5668_v53 = vpop.f32.mrf.mxu0  ;;  %v1450_v58 = vadd.f32 %v1449_v63, %v1269_v8  ;;  %v5687_v8 = vld [vmem:[#allocation2 + $0x48] sm:$0xff]  ;;  %v2451_v40 = vrot.slane %v4631_v48, 1 }
 0x195   : > { %v2858_v0 = vrot.slane %v5687_v8, 7  ;;  %v4632_v63 = vld [vmem:[#allocation2 + $0x28] sm:$0xff] }
 0x196   : > { %v5679_v7 = vadd.f32 %v1728_v11, %v1450_v58  ;;  %4305 = vmatmul.msk.f32.gmra.mxu2 %vm524_vm1, %v5677_v12  ;;  %v2450_v16 = vrot.slane %v4632_v63, 1 }
 0x197   : > { %4358 = vmatmul.msk.f32.gmra.mxu0 %vm524_vm1, %v5466_v23  ;;  %v2745_v23 = vld [vmem:[#allocation2 + $0x40] sm:$0xff]  ;;  %v1275_v10 = vpop.f32.mrf.mxu1  ;;  %4376 = vmatmul.msk.f32.vlgmr.msrb.gmra.mxu1 %vm524_vm1, %v4632_v63 }
 0x198   : > { %6975 = vst [vmem:[#allocation35_spill] sm:$0xff] %v5679_v7  ;;  %4339 = vmatmul.msk.f32.gmra.mxu3 %vm524_vm1, %v1599_v38  ;;  %v2857_v24 = vrot.slane %v2745_v23, 7  ;;  %v2452_v11 = vsel %vm1519_vm3, %v2450_v16, %v2451_v40 }
 0x19a   : > { %v2859_v38 = vsel %vm1059_vm2, %v2857_v24, %v2858_v0 }
 0x19b   : > { %v1452_v44 = vpop.f32.mrf.mxu2  ;;  %v1731_v56 = vpop.f32.mrf.mxu3 }
 0x19c   : > { %v5681_v42 = vpop.f32.mrf.mxu0  ;;  %v1453_v54 = vadd.f32 %v1452_v44, %v1272_v62  ;;  %v5701_v62 = vld [vmem:[#allocation2 + $0x50] sm:$0xff] }
 0x19d   : > { %v2860_v16 = vrot.slane %v5701_v62, 7 }
 0x19e   : > { %v5693_v58 = vadd.f32 %v1731_v56, %v1453_v54  ;;  %4410 = vmatmul.msk.f32.vlgmr.msrb.gmra.mxu2 %vm524_vm1, %v2452_v11 }
 0x19f   : > { %4359 = vmatmul.msk.f32.gmra.mxu0 %vm524_vm1, %v5479_v46  ;;  %v1817_v46 = vld [vmem:[#allocation2 + $0x38] sm:$0xff]  ;;  %v1278_v23 = vpop.f32.mrf.mxu1  ;;  %4377 = vmatmul.msk.f32.gmra.mxu1 %vm524_vm1, %v4631_v48 }
 0x1a0   : > { %6976 = vst [vmem:[#allocation36_spill] sm:$0xff] %v5693_v58  ;;  %4444 = vmatmul.msk.f32.vlgmr.msrb.gmra.mxu3 %vm524_vm1, %v2859_v38  ;;  %v2453_v54 = vrot.slane %v1817_v46, 1  ;;  %v2861_v38 = vsel %vm1059_vm2, %v2858_v0, %v2860_v16  ;;  %v5715_v46 = vld [vmem:[#allocation2 + $0x68] sm:$0xff] }
 0x1a1   : > { %v2863_v50 = vrot.slane %v5715_v46, 7 }
 0x1a2   : > { %v2454_v24 = vsel %vm1519_vm3, %v2451_v40, %v2453_v54 }
 0x1a3   : > { %v1455_v44 = vpop.f32.mrf.mxu2  ;;  %v1734_v63 = vpop.f32.mrf.mxu3 }
 0x1a4   : > { %v5696_v55 = vpop.f32.mrf.mxu0  ;;  %v1456_v56 = vadd.f32 %v1455_v44, %v1275_v10  ;;  %v4633_v44 = vld [vmem:[#allocation2 + $0x50] sm:$0xff] }
 0x1a6   : > { %v5707_v11 = vadd.f32 %v1734_v63, %v1456_v56  ;;  %4411 = vmatmul.msk.f32.gmra.mxu2 %vm524_vm1, %v2454_v24  ;;  %v2456_v56 = vrot.slane %v4633_v44, 1  ;;  %v4634_v24 = vld [vmem:[#allocation2 + $0x48] sm:$0xff] }
 0x1a7   : > { %4360 = vmatmul.msk.f32.gmra.mxu0 %vm524_vm1, %v5494_v49  ;;  %v2749_v49 = vld [vmem:[#allocation2 + $0x60] sm:$0xff]  ;;  %v1281_v10 = vpop.f32.mrf.mxu1  ;;  %4378 = vmatmul.msk.f32.gmra.mxu1 %vm524_vm1, %v4634_v24  ;;  %v2455_v0 = vrot.slane %v4634_v24, 1 }
 0x1a8   : > { %6977 = vst [vmem:[#allocation37_spill] sm:$0xff] %v5707_v11  ;;  %4445 = vmatmul.msk.f32.gmra.mxu3 %vm524_vm1, %v2861_v38  ;;  %v2862_v54 = vrot.slane %v2749_v49, 7 }
 0x1a9   : > { %v2457_v38 = vsel %vm1519_vm3, %v2455_v0, %v2456_v56 }
 0x1aa   : > { %v2864_v41 = vsel %vm1059_vm2, %v2862_v54, %v2863_v50 }
 0x1ab   : > { %v1458_v48 = vpop.f32.mrf.mxu2  ;;  %v1737_v40 = vpop.f32.mrf.mxu3 }
 0x1ac   : > { %v5710_v3 = vpop.f32.mrf.mxu0  ;;  %v1459_v63 = vadd.f32 %v1458_v48, %v1278_v23  ;;  %v5729_v23 = vld [vmem:[#allocation2 + $0x70] sm:$0xff] }
 0x1ad   : > { %v2865_v0 = vrot.slane %v5729_v23, 7 }
 0x1ae   : > { %v5721_v16 = vadd.f32 %v1737_v40, %v1459_v63  ;;  %4412 = vmatmul.msk.f32.gmra.mxu2 %vm524_vm1, %v2457_v38 }
 0x1af   : > { %4361 = vmatmul.msk.f32.gmra.mxu0 %vm524_vm1, %v5509_v34  ;;  %v1821_v34 = vld [vmem:[#allocation2 + $0x58] sm:$0xff]  ;;  %v1284_v49 = vpop.f32.mrf.mxu1  ;;  %4379 = vmatmul.msk.f32.gmra.mxu1 %vm524_vm1, %v4633_v44 }
 0x1b0   : > { %6978 = vst [vmem:[#allocation38_spill] sm:$0xff] %v5721_v16  ;;  %4446 = vmatmul.msk.f32.gmra.mxu3 %vm524_vm1, %v2864_v41  ;;  %v2458_v63 = vrot.slane %v1821_v34, 1  ;;  %v2866_v41 = vsel %vm1059_vm2, %v2863_v50, %v2865_v0  ;;  %v5743_v34 = vld [vmem:[#allocation2 + $0x88] sm:$0xff] }
 0x1b1   : > { %v2868_v33 = vrot.slane %v5743_v34, 7  ;;  %v5850_v16 = vld [vmem:[#allocation2 + $0x208] sm:$0xff] }
 0x1b2   : > { %v2459_v54 = vsel %vm1519_vm3, %v2456_v56, %v2458_v63  ;;  %6988 = vst [vmem:[#allocation48_spill] sm:$0xff] %v5850_v16 }
 0x1b3   : > { %v1461_v48 = vpop.f32.mrf.mxu2  ;;  %v1740_v24 = vpop.f32.mrf.mxu3 }
 0x1b4   : > { %v5724_v45 = vpop.f32.mrf.mxu0  ;;  %v1462_v40 = vadd.f32 %v1461_v48, %v1281_v10  ;;  %v4635_v48 = vld [vmem:[#allocation2 + $0x70] sm:$0xff] }
 0x1b6   : > { %v5735_v38 = vadd.f32 %v1740_v24, %v1462_v40  ;;  %4413 = vmatmul.msk.f32.gmra.mxu2 %vm524_vm1, %v2459_v54  ;;  %v2461_v40 = vrot.slane %v4635_v48, 1  ;;  %v4636_v54 = vld [vmem:[#allocation2 + $0x68] sm:$0xff] }
 0x1b7   : > { %4362 = vmatmul.msk.f32.gmra.mxu0 %vm524_vm1, %v5524_v61  ;;  %v2753_v61 = vld [vmem:[#allocation2 + $0x80] sm:$0xff]  ;;  %v1287_v10 = vpop.f32.mrf.mxu1  ;;  %4380 = vmatmul.msk.f32.gmra.mxu1 %vm524_vm1, %v4636_v54  ;;  %v2460_v50 = vrot.slane %v4636_v54, 1 }
 0x1b8   : > { %6979 = vst [vmem:[#allocation39_spill] sm:$0xff] %v5735_v38  ;;  %4447 = vmatmul.msk.f32.gmra.mxu3 %vm524_vm1, %v2866_v41  ;;  %v2867_v63 = vrot.slane %v2753_v61, 7  ;;  %v1837_v38 = vld [vmem:[#allocation2 + $0xd8] sm:$0xff] }
 0x1b9   : > { %v2462_v41 = vsel %vm1519_vm3, %v2460_v50, %v2461_v40 }
 0x1bb   : > { %v1464_v44 = vpop.f32.mrf.mxu2  ;;  %v1743_v56 = vpop.f32.mrf.mxu3 }
 0x1bc   : > { %v5738_v37 = vpop.f32.mrf.mxu0  ;;  %v1465_v24 = vadd.f32 %v1464_v44, %v1284_v49  ;;  %v5757_v49 = vld [vmem:[#allocation2 + $0x90] sm:$0xff] }
 0x1bd   : > { %v2870_v50 = vrot.slane %v5757_v49, 7 }
 0x1be   : > { %v5749_v0 = vadd.f32 %v1743_v56, %v1465_v24  ;;  %4414 = vmatmul.msk.f32.gmra.mxu2 %vm524_vm1, %v2462_v41  ;;  %v2463_v24 = vrot.slane %v1825_v29, 1 }
 0x1bf   : > { %4363 = vmatmul.msk.f32.gmra.mxu0 %vm524_vm1, %v5539_v14  ;;  %v2869_v14 = vsel %vm1059_vm2, %v2867_v63, %v2868_v33  ;;  %v1290_v61 = vpop.f32.mrf.mxu1  ;;  %4381 = vmatmul.msk.f32.gmra.mxu1 %vm524_vm1, %v4635_v48 }
 0x1c0   : > { %6980 = vst [vmem:[#allocation40_spill] sm:$0xff] %v5749_v0  ;;  %4448 = vmatmul.msk.f32.gmra.mxu3 %vm524_vm1, %v2869_v14  ;;  %v2464_v63 = vsel %vm1519_vm3, %v2461_v40, %v2463_v24  ;;  %v2871_v14 = vsel %vm1059_vm2, %v2868_v33, %v2870_v50  ;;  %v2872_v24 = vrot.slane %v2757_v21, 7  ;;  %v4638_v33 = vld [vmem:[#allocation2 + $0x88] sm:$0xff]  ;;  %v2468_v0 = vrot.slane %v1829_v17, 1 }
 0x1c1   : > { %v2465_v50 = vrot.slane %v4638_v33, 1  ;;  %v5797_v17 = vld [vmem:[#allocation2 + $0xc8] sm:$0xff] }
 0x1c3   : > { %v1467_v44 = vpop.f32.mrf.mxu2  ;;  %v1746_v54 = vpop.f32.mrf.mxu3 }
 0x1c4   : > { %v5754_v25 = vpop.f32.mrf.mxu0  ;;  %v1468_v56 = vadd.f32 %v1467_v44, %v1287_v10  ;;  %v4637_v44 = vld [vmem:[#allocation2 + $0x90] sm:$0xff] }
 0x1c6   : > { %v5763_v41 = vadd.f32 %v1746_v54, %v1468_v56  ;;  %4415 = vmatmul.msk.f32.gmra.mxu2 %vm524_vm1, %v2464_v63  ;;  %v2466_v56 = vrot.slane %v4637_v44, 1 }
 0x1c7   : > { %4364 = vmatmul.msk.f32.gmra.mxu0 %vm524_vm1, %v5554_v47  ;;  %v5769_v47 = vld [vmem:[#allocation2 + $0xa8] sm:$0xff]  ;;  %v1293_v29 = vpop.f32.mrf.mxu1  ;;  %4382 = vmatmul.msk.f32.gmra.mxu1 %vm524_vm1, %v4638_v33 }
 0x1c8   : > { %6981 = vst [vmem:[#allocation41_spill] sm:$0xff] %v5763_v41  ;;  %4449 = vmatmul.msk.f32.gmra.mxu3 %vm524_vm1, %v2871_v14  ;;  %v2873_v63 = vrot.slane %v5769_v47, 7  ;;  %v2467_v41 = vsel %vm1519_vm3, %v2465_v50, %v2466_v56 }
 0x1cb   : > { %v1470_v48 = vpop.f32.mrf.mxu2  ;;  %v1749_v40 = vpop.f32.mrf.mxu3 }
 0x1cc   : > { %v5771_v10 = vpop.f32.mrf.mxu0  ;;  %v1471_v54 = vadd.f32 %v1470_v48, %v1290_v61  ;;  %v5783_v61 = vld [vmem:[#allocation2 + $0xb0] sm:$0xff] }
 0x1cd   : > { %v2875_v50 = vrot.slane %v5783_v61, 7 }
 0x1ce   : > { %v5777_v14 = vadd.f32 %v1749_v40, %v1471_v54  ;;  %4416 = vmatmul.msk.f32.gmra.mxu2 %vm524_vm1, %v2467_v41 }
 0x1cf   : > { %4365 = vmatmul.msk.f32.gmra.mxu0 %vm524_vm1, %v5569_v60  ;;  %v2874_v60 = vsel %vm1059_vm2, %v2872_v24, %v2873_v63  ;;  %v1296_v21 = vpop.f32.mrf.mxu1  ;;  %4383 = vmatmul.msk.f32.gmra.mxu1 %vm524_vm1, %v4637_v44  ;;  %v2469_v24 = vsel %vm1519_vm3, %v2466_v56, %v2468_v0  ;;  %v2878_v0 = vrot.slane %v5797_v17, 7  ;;  %v4640_v56 = vld [vmem:[#allocation2 + $0xa8] sm:$0xff] }
 0x1d0   : > { %6982 = vst [vmem:[#allocation42_spill] sm:$0xff] %v5777_v14  ;;  %4450 = vmatmul.msk.f32.gmra.mxu3 %vm524_vm1, %v2874_v60  ;;  %v2876_v60 = vsel %vm1059_vm2, %v2873_v63, %v2875_v50  ;;  %v4639_v14 = vld [vmem:[#allocation2 + $0xb0] sm:$0xff]  ;;  %v2470_v63 = vrot.slane %v4640_v56, 1 }
 0x1d1   : > { %v2471_v44 = vrot.slane %v4639_v14, 1 }
 0x1d3   : > { %v1473_v48 = vpop.f32.mrf.mxu2  ;;  %v1752_v54 = vpop.f32.mrf.mxu3 }
 0x1d4   : > { %v1474_v33 = vadd.f32 %v1473_v48, %v1293_v29  ;;  %v5787_v40 = vpop.f32.mrf.mxu0 }
 0x1d6   : > { %v5791_v41 = vadd.f32 %v1752_v54, %v1474_v33  ;;  %4417 = vmatmul.msk.f32.gmra.mxu2 %vm524_vm1, %v2469_v24 }
 0x1d7   : > { %4366 = vmatmul.msk.f32.gmra.mxu0 %vm524_vm1, %v5594_v22  ;;  %v2761_v22 = vld [vmem:[#allocation2 + $0xc0] sm:$0xff]  ;;  %v1299_v29 = vpop.f32.mrf.mxu1  ;;  %4384 = vmatmul.msk.f32.gmra.mxu1 %vm524_vm1, %v4640_v56 }
 0x1d8   : > { %6983 = vst [vmem:[#allocation43_spill] sm:$0xff] %v5791_v41  ;;  %4451 = vmatmul.msk.f32.gmra.mxu3 %vm524_vm1, %v2876_v60  ;;  %v2877_v41 = vrot.slane %v2761_v22, 7  ;;  %v2472_v60 = vsel %vm1519_vm3, %v2470_v63, %v2471_v44 }
 0x1da   : > { %v2879_v13 = vsel %vm1059_vm2, %v2877_v41, %v2878_v0 }
 0x1db   : > { %v1476_v48 = vpop.f32.mrf.mxu2  ;;  %v1755_v54 = vpop.f32.mrf.mxu3 }
 0x1dc   : > { %v1477_v33 = vadd.f32 %v1476_v48, %v1296_v21  ;;  %v5805_v24 = vpop.f32.mrf.mxu0  ;;  %v5811_v21 = vld [vmem:[#allocation2 + $0xd0] sm:$0xff] }
 0x1de   : > { %v5803_v50 = vadd.f32 %v1755_v54, %v1477_v33  ;;  %4418 = vmatmul.msk.f32.gmra.mxu2 %vm524_vm1, %v2472_v60 }
 0x1df   : > { %4367 = vmatmul.msk.f32.gmra.mxu0 %vm524_vm1, %v5609_v5  ;;  %v1833_v5 = vld [vmem:[#allocation2 + $0xb8] sm:$0xff]  ;;  %v1302_v22 = vpop.f32.mrf.mxu1  ;;  %4385 = vmatmul.msk.f32.gmra.mxu1 %vm524_vm1, %v4639_v14 }
 0x1e0   : > { %6984 = vst [vmem:[#allocation44_spill] sm:$0xff] %v5803_v50  ;;  %4452 = vmatmul.msk.f32.gmra.mxu3 %vm524_vm1, %v2879_v13  ;;  %v2473_v33 = vrot.slane %v1833_v5, 1  ;;  %v2880_v50 = vrot.slane %v5811_v21, 7  ;;  %v5825_v5 = vld [vmem:[#allocation2 + $0xe8] sm:$0xff] }
 0x1e2   : > { %v2474_v41 = vsel %vm1519_vm3, %v2471_v44, %v2473_v33  ;;  %v2881_v60 = vsel %vm1059_vm2, %v2878_v0, %v2880_v50 }
 0x1e3   : > { %v1479_v48 = vpop.f32.mrf.mxu2  ;;  %v1758_v56 = vpop.f32.mrf.mxu3 }
 0x1e4   : > { %v1480_v54 = vadd.f32 %v1479_v48, %v1299_v29  ;;  %v5821_v13 = vpop.f32.mrf.mxu0  ;;  %v4641_v48 = vld [vmem:[#allocation2 + $0xd0] sm:$0xff] }
 0x1e6   : > { %v5817_v63 = vadd.f32 %v1758_v56, %v1480_v54  ;;  %4419 = vmatmul.msk.f32.gmra.mxu2 %vm524_vm1, %v2474_v41  ;;  %v2476_v54 = vrot.slane %v4641_v48, 1  ;;  %v2883_v41 = vrot.slane %v5825_v5, 7 }
 0x1e7   : > { %4368 = vmatmul.msk.f32.gmra.mxu0 %vm524_vm1, %v5627_v57  ;;  %v2765_v57 = vld [vmem:[#allocation2 + $0xe0] sm:$0xff]  ;;  %v1305_v29 = vpop.f32.mrf.mxu1 }
 0x1e8   : > { %6985 = vst [vmem:[#allocation45_spill] sm:$0xff] %v5817_v63  ;;  %4453 = vmatmul.msk.f32.gmra.mxu3 %vm524_vm1, %v2881_v60  ;;  %v2882_v33 = vrot.slane %v2765_v57, 7  ;;  %v4642_v63 = vld [vmem:[#allocation2 + $0xc8] sm:$0xff] }
 0x1e9   : > { %4386 = vmatmul.msk.f32.gmra.mxu1 %vm524_vm1, %v4642_v63  ;;  %v2475_v0 = vrot.slane %v4642_v63, 1 }
 0x1eb   : > { %v1482_v14 = vpop.f32.mrf.mxu2  ;;  %v1761_v44 = vpop.f32.mrf.mxu3  ;;  %v2477_v60 = vsel %vm1519_vm3, %v2475_v0, %v2476_v54 }
 0x1ec   : > { %v1483_v56 = vadd.f32 %v1482_v14, %v1302_v22  ;;  %v5837_v22 = vld [vmem:[#allocation2 + $0xf0] sm:$0xff]  ;;  %v5839_v14 = vpop.f32.mrf.mxu0 }
 0x1ed   : > { %v2885_v0 = vrot.slane %v5837_v22, 7 }
 0x1ee   : > { %v5831_v50 = vadd.f32 %v1761_v44, %v1483_v56  ;;  %4420 = vmatmul.msk.f32.gmra.mxu2 %vm524_vm1, %v2477_v60  ;;  %v2478_v56 = vrot.slane %v1837_v38, 1  ;;  %v5853_v38 = vld [vmem:[#allocation2 + $0x108] sm:$0xff] }
 0x1ef   : > { %4369 = vmatmul.msk.f32.gmra.mxu0 %vm524_vm1, %v5647_v51  ;;  %v2884_v51 = vsel %vm1059_vm2, %v2882_v33, %v2883_v41  ;;  %v1308_v57 = vpop.f32.mrf.mxu1 }
 0x1f0   : > { %6986 = vst [vmem:[#allocation46_spill] sm:$0xff] %v5831_v50  ;;  %4454 = vmatmul.msk.f32.gmra.mxu3 %vm524_vm1, %v2884_v51  ;;  %v2479_v33 = vsel %vm1519_vm3, %v2476_v54, %v2478_v56  ;;  %v2886_v51 = vsel %vm1059_vm2, %v2883_v41, %v2885_v0  ;;  %v2001_v54 = vrot.slane %v1874_v9, 7  ;;  %v2002_v56 = vrot.slane %v5850_v16, 7  ;;  %v1841_v9 = vld [vmem:[#allocation2 + $0xf8] sm:$0xff]  ;;  %v5899_v16 = vld [vmem:[#allocation2 + $0x128] sm:$0xff] }
 0x1f1   : > { %4387 = vmatmul.msk.f32.gmra.mxu1 %vm524_vm1, %v4641_v48 }
 0x1f2   : > { %v5866_v58 = vsel %vm1059_vm2, %v2001_v54, %v2002_v56 }
 0x1f3   : > { %v1485_v63 = vpop.f32.mrf.mxu2  ;;  %v1764_v50 = vpop.f32.mrf.mxu3 }
 0x1f4   : > { %v1486_v44 = vadd.f32 %v1485_v63, %v1305_v29  ;;  %v5858_v41 = vpop.f32.mrf.mxu0 }
 0x1f6   : > { %v5845_v60 = vadd.f32 %v1764_v50, %v1486_v44  ;;  %4421 = vmatmul.msk.f32.gmra.mxu2 %vm524_vm1, %v2479_v33  ;;  %v4643_v50 = vld [vmem:[#allocation2 + $0xf0] sm:$0xff] }
 0x1f7   : > { %4370 = vmatmul.msk.f32.gmra.mxu0 %vm524_vm1, %v5662_v20  ;;  %v2769_v20 = vld [vmem:[#allocation2 + $0x100] sm:$0xff]  ;;  %v1311_v29 = vpop.f32.mrf.mxu1  ;;  %v2481_v63 = vrot.slane %v4643_v50, 1 }
 0x1f8   : > { %6987 = vst [vmem:[#allocation47_spill] sm:$0xff] %v5845_v60  ;;  %4455 = vmatmul.msk.f32.gmra.mxu3 %vm524_vm1, %v2886_v51  ;;  %v2887_v33 = vrot.slane %v2769_v20, 7  ;;  %v2888_v51 = vrot.slane %v5853_v38, 7  ;;  %v4644_v60 = vld [vmem:[#allocation2 + $0xe8] sm:$0xff]  ;;  %v5873_v20 = vld [vmem:[#allocation2 + $0x110] sm:$0xff] }
 0x1f9   : > { %4388 = vmatmul.msk.f32.gmra.mxu1 %vm524_vm1, %v4644_v60  ;;  %v2480_v6 = vrot.slane %v4644_v60, 1 }
 0x1fb   : > { %v1488_v48 = vpop.f32.mrf.mxu2  ;;  %v1767_v0 = vpop.f32.mrf.mxu3 }
 0x1fc   : > { %v1489_v44 = vadd.f32 %v1488_v48, %v1308_v57  ;;  %v2889_v57 = vsel %vm1059_vm2, %v2887_v33, %v2888_v51  ;;  %v5870_v48 = vld [vmem:[#allocation2 + $0x210] sm:$0xff]  ;;  %v3780_v33 = vld [vmem:[%s6853_s4] sm:$0xf] }
 0x1fd   : > { %6990 = vst [vmem:[#allocation50_spill] sm:$0xff] %v5870_v48  ;;  %v2004_v54 = vrot.slane %v5870_v48, 7  ;;  %4544 = vmatpush.msk.msra.mxu2 %vm621_vm0, %v3780_v33 }
 0x1fe   : > { %v5862_v11 = vadd.f32 %v1767_v0, %v1489_v44 }
 0x1ff   : > { %4371 = vmatmul.msk.f32.gmra.mxu0 %vm524_vm1, %v5677_v12  ;;  %v2482_v12 = vsel %vm1519_vm3, %v2480_v6, %v2481_v63  ;;  %v1314_v7 = vpop.f32.mrf.mxu1  ;;  %v2483_v6 = vrot.slane %v1841_v9, 1 }
 0x200   : > { %6989 = vst [vmem:[#allocation49_spill] sm:$0xff] %v5862_v11  ;;  %4422 = vmatmul.msk.f32.gmra.mxu2 %vm524_vm1, %v2482_v12  ;;  %4456 = vmatmul.msk.f32.gmra.mxu3 %vm524_vm1, %v2889_v57  ;;  %v2890_v12 = vrot.slane %v5873_v20, 7  ;;  %v3779_v57 = vld [vmem:[%s6852_s3] sm:$0xf]  ;;  %v5887_v11 = vpop.f32.mrf.mxu0 }
 0x201   : > { %4389 = vmatmul.msk.f32.gmra.mxu1 %vm524_vm1, %v4643_v50  ;;  %4577 = vmatpush.msk.msra.mxu3 %vm621_vm0, %v3779_v57  ;;  %v2773_v50 = vld [vmem:[#allocation2 + $0x120] sm:$0xff] }
 0x202   : > { %v2891_v48 = vsel %vm1059_vm2, %v2888_v51, %v2890_v12 }
 0x203   : > { %v1491_v60 = vpop.f32.mrf.mxu2  ;;  %v1770_v0 = vpop.f32.mrf.mxu3 }
 0x204   : > { %v1492_v44 = vadd.f32 %v1491_v60, %v1311_v29  ;;  %v2484_v29 = vsel %vm1519_vm3, %v2481_v63, %v2483_v6  ;;  %v5894_v60 = vsel %vm1059_vm2, %v2002_v56, %v2004_v54  ;;  %v2892_v56 = vrot.slane %v2773_v50, 7  ;;  %v5915_v50 = vld [vmem:[#allocation2 + $0x130] sm:$0xff] }
 0x205   : > { %6992 = vst [vmem:[#allocation52_spill] sm:$0xff] %v5894_v60  ;;  %v2893_v54 = vrot.slane %v5899_v16, 7 }
 0x206   : > { %v5889_v9 = vadd.f32 %v1770_v0, %v1492_v44  ;;  %v4645_v0 = vld [vmem:[#allocation2 + $0x110] sm:$0xff] }
 0x207   : > { %4372 = vmatmul.msk.f32.gmra.mxu0 %vm524_vm1, %v5866_v58  ;;  %v1317_v33 = vpop.f32.mrf.mxu1  ;;  %v2486_v57 = vrot.slane %v4645_v0, 1 }
 0x208   : > { %6991 = vst [vmem:[#allocation51_spill] sm:$0xff] %v5889_v9  ;;  %4423 = vmatmul.msk.f32.gmra.mxu2 %vm524_vm1, %v2484_v29  ;;  %4457 = vmatmul.msk.f32.gmra.mxu3 %vm524_vm1, %v2891_v48  ;;  %v4646_v29 = vld [vmem:[#allocation2 + $0x108] sm:$0xff]  ;;  %v5908_v9 = vpop.f32.mrf.mxu0 }
 0x209   : > { %4390 = vmatmul.msk.f32.gmra.mxu1 %vm524_vm1, %v4646_v29  ;;  %v2485_v51 = vrot.slane %v4646_v29, 1  ;;  %6994 = vst [vmem:[#allocation54_spill] sm:$0xff] %v5908_v9  ;;  %v5930_v9 = vld [vmem:[#allocation2 + $0x148] sm:$0xff] }
 0x20b   : > { %v1494_v44 = vpop.f32.mrf.mxu2  ;;  %v1773_v6 = vpop.f32.mrf.mxu3  ;;  %v2487_v12 = vsel %vm1519_vm3, %v2485_v51, %v2486_v57 }
 0x20c   : > { %v1495_v63 = vadd.f32 %v1494_v44, %v1314_v7  ;;  %v2894_v7 = vsel %vm1059_vm2, %v2892_v56, %v2893_v54 }
 0x20e   : > { %v5905_v48 = vadd.f32 %v1773_v6, %v1495_v63 }
 0x20f   : > { %4373 = vmatmul.msk.f32.gmra.mxu0 %vm524_vm1, %v5894_v60  ;;  %v5911_v60 = vld [vmem:[#allocation2 + $0x118] sm:$0xff]  ;;  %v1320_v44 = vpop.f32.mrf.mxu1 }
 0x210   : > { %6993 = vst [vmem:[#allocation53_spill] sm:$0xff] %v5905_v48  ;;  %4424 = vmatmul.msk.f32.gmra.mxu2 %vm524_vm1, %v2487_v12  ;;  %4458 = vmatmul.msk.f32.gmra.mxu3 %vm524_vm1, %v2894_v7  ;;  %v6930_v6 = vrot.slane %v5911_v60, 1  ;;  %v2895_v48 = vrot.slane %v5915_v50, 7 }
 0x211   : > { %6995 = vst [vmem:[#allocation55_spill] sm:$0xff] %v5911_v60  ;;  %4391 = vmatmul.msk.f32.gmra.mxu1 %vm524_vm1, %v4645_v0 }
 0x212   : > { %v2489_v56 = vsel %vm1519_vm3, %v2486_v57, %v6930_v6  ;;  %v2896_v7 = vsel %vm1059_vm2, %v2893_v54, %v2895_v48  ;;  %v4647_v57 = vld [vmem:[#allocation2 + $0x130] sm:$0xff]  ;;  %v2898_v48 = vrot.slane %v5930_v9, 7 }
 0x213   : > { %v1497_v63 = vpop.f32.mrf.mxu2  ;;  %v1776_v51 = vpop.f32.mrf.mxu3 }
 0x214   : > { %v1498_v29 = vadd.f32 %v1497_v63, %v1317_v33  ;;  %v1408_v33 = vadd.f32 %v5439_v4, %v5417_v19  ;;  %v5934_v63 = vpop.f32.mrf.mxu0 }
 0x215   : > { %6997 = vst [vmem:[#allocation57_spill] sm:$0xff] %v5934_v63  ;;  %v5946_v63 = vld [vmem:[#allocation2 + $0x138] sm:$0xff] }
 0x216   : > { %v5922_v12 = vadd.f32 %v1776_v51, %v1498_v29  ;;  %v2491_v51 = vrot.slane %v4647_v57, 1  ;;  %v1782_v19 = vadd.f32 %v5442_v39, %v1408_v33 }
 0x217   : > { %4478 = vmatmul.msk.f32.vlgmr.msra.gmra.mxu0 %vm524_vm1, %v5687_v8  ;;  %v2777_v8 = vld [vmem:[#allocation2 + $0x140] sm:$0xff]  ;;  %v2306_v0 = vpop.f32.mrf.mxu1 }
 0x218   : > { %6996 = vst [vmem:[#allocation56_spill] sm:$0xff] %v5922_v12  ;;  %4425 = vmatmul.msk.f32.gmra.mxu2 %vm524_vm1, %v2489_v56  ;;  %4459 = vmatmul.msk.f32.gmra.mxu3 %vm524_vm1, %v2896_v7  ;;  %v2897_v54 = vrot.slane %v2777_v8, 7  ;;  %v4648_v7 = vld [vmem:[#allocation2 + $0x128] sm:$0xff]  ;;  %v5950_v8 = vld [vmem:[#allocation2 + $0x150] sm:$0xff] }
 0x219   : > { %4392 = vmatmul.msk.f32.gmra.mxu1 %vm524_vm1, %v4648_v7  ;;  %v2490_v12 = vrot.slane %v4648_v7, 1 }
 0x21b   : > { %v1500_v29 = vpop.f32.mrf.mxu2  ;;  %v1779_v6 = vpop.f32.mrf.mxu3  ;;  %v2492_v60 = vsel %vm1519_vm3, %v2490_v12, %v2491_v51 }
 0x21c   : > { %v1501_v56 = vadd.f32 %v1500_v29, %v1320_v44  ;;  %v2899_v44 = vsel %vm1059_vm2, %v2897_v54, %v2898_v48  ;;  %v1411_v29 = vadd.f32 %v5460_v30, %v5436_v27  ;;  %v2900_v54 = vrot.slane %v5950_v8, 7 }
 0x21e   : > { %v5941_v4 = vadd.f32 %v1779_v6, %v1501_v56  ;;  %v1783_v7 = vadd.f32 %v5462_v35, %v1411_v29  ;;  %v4649_v29 = vld [vmem:[#allocation2 + $0x150] sm:$0xff] }
 0x21f   : > { %4479 = vmatmul.msk.f32.gmra.mxu0 %vm524_vm1, %v5701_v62  ;;  %v2188_v62 = vadd.f32 %v5668_v53, %v1782_v19  ;;  %v2309_v6 = vpop.f32.mrf.mxu1  ;;  %v6936_v53 = vrot.slane %v5946_v63, 1 }
 0x220   : > { %6998 = vst [vmem:[#allocation58_spill] sm:$0xff] %v5941_v4  ;;  %4426 = vmatmul.msk.f32.gmra.mxu2 %vm524_vm1, %v2492_v60  ;;  %4460 = vmatmul.msk.f32.gmra.mxu3 %vm524_vm1, %v2899_v44  ;;  %v5957_v60 = vpop.f32.mrf.mxu0  ;;  %v2189_v30 = vadd.f32 %v5681_v42, %v1783_v7 }
 0x221   : > { %v2402_v39 = vadd.f32 %v2306_v0, %v2188_v62  ;;  %4393 = vmatmul.msk.f32.gmra.mxu1 %vm524_vm1, %v4647_v57  ;;  %v2494_v27 = vsel %vm1519_vm3, %v2491_v51, %v6936_v53  ;;  %v2781_v0 = vld [vmem:[#allocation2 + $0x160] sm:$0xff]  ;;  %v5971_v62 = vld [vmem:[#allocation2 + $0x168] sm:$0xff] }
 0x222   : > { %v2403_v57 = vadd.f32 %v2309_v6, %v2189_v30  ;;  %v2902_v42 = vrot.slane %v2781_v0, 7 }
 0x223   : > { %v2616_v12 = vpop.f32.mrf.mxu2  ;;  %v3023_v56 = vpop.f32.mrf.mxu3 }
 0x224   : > { %v2712_v33 = vadd.f32 %v2616_v12, %v2402_v39  ;;  %v2496_v39 = vrot.slane %v4649_v29, 1 }
 0x226   : > { %v5962_v19 = vadd.f32 %v3023_v56, %v2712_v33  ;;  %v2903_v33 = vrot.slane %v5971_v62, 7  ;;  %v4650_v56 = vld [vmem:[#allocation2 + $0x148] sm:$0xff] }
 0x227   : > { %4480 = vmatmul.msk.f32.gmra.mxu0 %vm524_vm1, %v5715_v46  ;;  %v2901_v46 = vsel %vm1059_vm2, %v2898_v48, %v2900_v54  ;;  %v2312_v44 = vpop.f32.mrf.mxu1  ;;  %v2495_v48 = vrot.slane %v4650_v56, 1 }
 0x228   : > { %4427 = vmatmul.msk.f32.gmra.mxu2 %vm524_vm1, %v2494_v27  ;;  %4461 = vmatmul.msk.f32.gmra.mxu3 %vm524_vm1, %v2901_v46  ;;  %v5977_v54 = vpop.f32.mrf.mxu0  ;;  %v5985_v27 = vld [vmem:[#allocation2 + $0x158] sm:$0xff]  ;;  %v2904_v30 = vsel %vm1059_vm2, %v2902_v42, %v2903_v33  ;;  %v5989_v46 = vld [vmem:[#allocation2 + $0x170] sm:$0xff] }
 0x229   : > { %4394 = vmatmul.msk.f32.gmra.mxu1 %vm524_vm1, %v4650_v56  ;;  %v2497_v6 = vsel %vm1519_vm3, %v2495_v48, %v2496_v39 }
 0x22b   : > { %v2619_v35 = vpop.f32.mrf.mxu2  ;;  %v3026_v12 = vpop.f32.mrf.mxu3 }
 0x22c   : > { %v2713_v51 = vadd.f32 %v2619_v35, %v2403_v57 }
 0x22e   : > { %v5979_v7 = vadd.f32 %v3026_v12, %v2713_v51  ;;  %v6933_v51 = vrot.slane %v5985_v27, 1 }
 0x22f   : > { %4481 = vmatmul.msk.f32.gmra.mxu0 %vm524_vm1, %v5729_v23  ;;  %v2190_v23 = vadd.f32 %v5696_v55, %v5481_v15  ;;  %v2315_v57 = vpop.f32.mrf.mxu1  ;;  %v2905_v55 = vrot.slane %v5989_v46, 7 }
 0x230   : > { %4428 = vmatmul.msk.f32.gmra.mxu2 %vm524_vm1, %v2497_v6  ;;  %4462 = vmatmul.msk.f32.gmra.mxu3 %vm524_vm1, %v2904_v30  ;;  %v2499_v42 = vsel %vm1519_vm3, %v2496_v39, %v6933_v51  ;;  %v6003_v48 = vpop.f32.mrf.mxu0  ;;  %v2785_v6 = vld [vmem:[#allocation2 + $0x180] sm:$0xff] }
 0x231   : > { %v2404_v0 = vadd.f32 %v2312_v44, %v2190_v23  ;;  %4395 = vmatmul.msk.f32.gmra.mxu1 %vm524_vm1, %v4649_v29  ;;  %v2191_v44 = vadd.f32 %v5710_v3, %v5496_v28  ;;  %v6008_v23 = vld [vmem:[#allocation2 + $0x188] sm:$0xff] }
 0x233   : > { %v2622_v35 = vpop.f32.mrf.mxu2  ;;  %v3029_v15 = vpop.f32.mrf.mxu3  ;;  %v2405_v29 = vadd.f32 %v2315_v57, %v2191_v44  ;;  %v2192_v44 = vadd.f32 %v5724_v45, %v5511_v31 }
 0x234   : > { %v2714_v12 = vadd.f32 %v2622_v35, %v2404_v0  ;;  %v4651_v0 = vld [vmem:[#allocation2 + $0x170] sm:$0xff] }
 0x235   : > { %v2501_v35 = vrot.slane %v4651_v0, 1 }
 0x236   : > { %v5996_v56 = vadd.f32 %v3029_v15, %v2714_v12  ;;  %v2907_v12 = vrot.slane %v2785_v6, 7  ;;  %v2908_v15 = vrot.slane %v6008_v23, 7  ;;  %v6024_v6 = vld [vmem:[#allocation2 + $0x190] sm:$0xff] }
 0x237   : > { %4482 = vmatmul.msk.f32.gmra.mxu0 %vm524_vm1, %v5743_v34  ;;  %v2906_v34 = vsel %vm1059_vm2, %v2903_v33, %v2905_v55  ;;  %v2318_v30 = vpop.f32.mrf.mxu1 }
 0x238   : > { %4429 = vmatmul.msk.f32.gmra.mxu2 %vm524_vm1, %v2499_v42  ;;  %4463 = vmatmul.msk.f32.gmra.mxu3 %vm524_vm1, %v2906_v34  ;;  %v4652_v42 = vld [vmem:[#allocation2 + $0x168] sm:$0xff]  ;;  %v2909_v34 = vsel %vm1059_vm2, %v2907_v12, %v2908_v15 }
 0x239   : > { %4396 = vmatmul.msk.f32.gmra.mxu1 %vm524_vm1, %v4652_v42  ;;  %v2500_v33 = vrot.slane %v4652_v42, 1 }
 0x23b   : > { %v2625_v39 = vpop.f32.mrf.mxu2  ;;  %v3032_v28 = vpop.f32.mrf.mxu3  ;;  %v2502_v57 = vsel %vm1519_vm3, %v2500_v33, %v2501_v35  ;;  %v2910_v33 = vrot.slane %v6024_v6, 7 }
 0x23c   : > { %v2715_v3 = vadd.f32 %v2625_v39, %v2405_v29  ;;  %v6026_v29 = vpop.f32.mrf.mxu0  ;;  %v2406_v39 = vadd.f32 %v2318_v30, %v2192_v44  ;;  %v2193_v30 = vadd.f32 %v5738_v37, %v5526_v32  ;;  %v2789_v44 = vld [vmem:[#allocation2 + $0x1a0] sm:$0xff] }
 0x23e   : > { %v6014_v55 = vadd.f32 %v3032_v28, %v2715_v3 }
 0x23f   : > { %4483 = vmatmul.msk.f32.gmra.mxu0 %vm524_vm1, %v5757_v49  ;;  %v6020_v49 = vld [vmem:[#allocation2 + $0x178] sm:$0xff]  ;;  %v2321_v3 = vpop.f32.mrf.mxu1 }
 0x240   : > { %4430 = vmatmul.msk.f32.gmra.mxu2 %vm524_vm1, %v2502_v57  ;;  %4464 = vmatmul.msk.f32.gmra.mxu3 %vm524_vm1, %v2909_v34  ;;  %v6932_v45 = vrot.slane %v6020_v49, 1  ;;  %v6043_v34 = vld [vmem:[#allocation2 + $0x1a8] sm:$0xff] }
 0x241   : > { %4397 = vmatmul.msk.f32.gmra.mxu1 %vm524_vm1, %v4651_v0 }
 0x242   : > { %v2504_v57 = vsel %vm1519_vm3, %v2501_v35, %v6932_v45 }
 0x243   : > { %v2628_v28 = vpop.f32.mrf.mxu2  ;;  %v3035_v42 = vpop.f32.mrf.mxu3 }
 0x244   : > { %v2716_v31 = vadd.f32 %v2628_v28, %v2406_v39  ;;  %v2407_v39 = vadd.f32 %v2321_v3, %v2193_v30  ;;  %v6057_v30 = vld [vmem:[#allocation2 + $0x198] sm:$0xff] }
 0x246   : > { %v6033_v12 = vadd.f32 %v3035_v42, %v2716_v31  ;;  %v4653_v31 = vld [vmem:[#allocation2 + $0x190] sm:$0xff]  ;;  %v6047_v42 = vpop.f32.mrf.mxu0 }
 0x247   : > { %4484 = vmatmul.msk.f32.gmra.mxu0 %vm524_vm1, %v5769_v47  ;;  %v2911_v47 = vsel %vm1059_vm2, %v2908_v15, %v2910_v33  ;;  %v2324_v0 = vpop.f32.mrf.mxu1  ;;  %v2506_v35 = vrot.slane %v4653_v31, 1  ;;  %v2913_v15 = vrot.slane %v6043_v34, 7  ;;  %v4654_v33 = vld [vmem:[#allocation2 + $0x188] sm:$0xff] }
 0x248   : > { %4431 = vmatmul.msk.f32.gmra.mxu2 %vm524_vm1, %v2504_v57  ;;  %4465 = vmatmul.msk.f32.gmra.mxu3 %vm524_vm1, %v2911_v47  ;;  %v2912_v57 = vrot.slane %v2789_v44, 7  ;;  %v2505_v47 = vrot.slane %v4654_v33, 1  ;;  %v6061_v44 = vld [vmem:[#allocation2 + $0x1b0] sm:$0xff] }
 0x249   : > { %4398 = vmatmul.msk.f32.gmra.mxu1 %vm524_vm1, %v4654_v33 }
 0x24a   : > { %v2507_v3 = vsel %vm1519_vm3, %v2505_v47, %v2506_v35 }
 0x24b   : > { %v2631_v28 = vpop.f32.mrf.mxu2  ;;  %v3038_v32 = vpop.f32.mrf.mxu3 }
 0x24c   : > { %v2717_v37 = vadd.f32 %v2631_v28, %v2407_v39  ;;  %v2914_v39 = vsel %vm1059_vm2, %v2912_v57, %v2913_v15 }
 0x24e   : > { %v6051_v45 = vadd.f32 %v3038_v32, %v2717_v37  ;;  %v6934_v32 = vrot.slane %v6057_v30, 1  ;;  %v6068_v47 = vpop.f32.mrf.mxu0 }
 0x24f   : > { %4485 = vmatmul.msk.f32.gmra.mxu0 %vm524_vm1, %v5783_v61  ;;  %v2194_v61 = vadd.f32 %v5754_v25, %v5541_v1  ;;  %v2327_v51 = vpop.f32.mrf.mxu1  ;;  %v2915_v1 = vrot.slane %v6061_v44, 7 }
 0x250   : > { %4432 = vmatmul.msk.f32.gmra.mxu2 %vm524_vm1, %v2507_v3  ;;  %4466 = vmatmul.msk.f32.gmra.mxu3 %vm524_vm1, %v2914_v39  ;;  %v6080_v39 = vld [vmem:[#allocation2 + $0x1c8] sm:$0xff] }
 0x251   : > { %v2408_v28 = vadd.f32 %v2324_v0, %v2194_v61  ;;  %4399 = vmatmul.msk.f32.gmra.mxu1 %vm524_vm1, %v4653_v31  ;;  %v2509_v0 = vsel %vm1519_vm3, %v2506_v35, %v6934_v32  ;;  %v2916_v3 = vsel %vm1059_vm2, %v2913_v15, %v2915_v1  ;;  %v2793_v61 = vld [vmem:[#allocation2 + $0x1c0] sm:$0xff] }
 0x253   : > { %v2634_v37 = vpop.f32.mrf.mxu2  ;;  %v3041_v25 = vpop.f32.mrf.mxu3 }
 0x254   : > { %v2718_v33 = vadd.f32 %v2634_v37, %v2408_v28 }
 0x256   : > { %v6070_v57 = vadd.f32 %v3041_v25, %v2718_v33  ;;  %v4655_v33 = vld [vmem:[#allocation2 + $0x1b0] sm:$0xff] }
 0x257   : > { %4486 = vmatmul.msk.f32.gmra.mxu0 %vm524_vm1, %v5797_v17  ;;  %v2195_v17 = vadd.f32 %v5771_v10, %v5556_v26  ;;  %v2330_v28 = vpop.f32.mrf.mxu1  ;;  %v2511_v35 = vrot.slane %v4655_v33, 1  ;;  %v2917_v26 = vrot.slane %v2793_v61, 7  ;;  %v2918_v10 = vrot.slane %v6080_v39, 7 }
 0x258   : > { %4433 = vmatmul.msk.f32.gmra.mxu2 %vm524_vm1, %v2509_v0  ;;  %4467 = vmatmul.msk.f32.gmra.mxu3 %vm524_vm1, %v2916_v3  ;;  %v4656_v0 = vld [vmem:[#allocation2 + $0x1a8] sm:$0xff]  ;;  %v6091_v3 = vpop.f32.mrf.mxu0 }
 0x259   : > { %v2409_v31 = vadd.f32 %v2327_v51, %v2195_v17  ;;  %4400 = vmatmul.msk.f32.gmra.mxu1 %vm524_vm1, %v4656_v0  ;;  %v2510_v15 = vrot.slane %v4656_v0, 1  ;;  %v2196_v17 = vadd.f32 %v5787_v40, %v5571_v59  ;;  %v2919_v61 = vsel %vm1059_vm2, %v2917_v26, %v2918_v10 }
 0x25b   : > { %v2637_v37 = vpop.f32.mrf.mxu2  ;;  %v3044_v32 = vpop.f32.mrf.mxu3  ;;  %v2512_v51 = vsel %vm1519_vm3, %v2510_v15, %v2511_v35  ;;  %v2410_v0 = vadd.f32 %v2330_v28, %v2196_v17  ;;  %v2197_v28 = vadd.f32 %v5805_v24, %v5596_v2  ;;  %v6115_v17 = vld [vmem:[#allocation2 + $0x1e8] sm:$0xff] }
 0x25c   : > { %v2719_v25 = vadd.f32 %v2637_v37, %v2409_v31  ;;  %v6094_v31 = vld [vmem:[#allocation2 + $0x1b8] sm:$0xff]  ;;  %v6098_v37 = vld [vmem:[#allocation2 + $0x1d0] sm:$0xff] }
 0x25d   : > { %v6935_v59 = vrot.slane %v6094_v31, 1  ;;  %v2920_v15 = vrot.slane %v6098_v37, 7 }
 0x25e   : > { %v6086_v1 = vadd.f32 %v3044_v32, %v2719_v25 }
 0x25f   : > { %4487 = vmatmul.msk.f32.gmra.mxu0 %vm524_vm1, %v5811_v21  ;;  %v2333_v32 = vpop.f32.mrf.mxu1  ;;  %v2514_v26 = vsel %vm1519_vm3, %v2511_v35, %v6935_v59 }
 0x260   : > { %4434 = vmatmul.msk.f32.gmra.mxu2 %vm524_vm1, %v2512_v51  ;;  %4468 = vmatmul.msk.f32.gmra.mxu3 %vm524_vm1, %v2919_v61  ;;  %v2797_v51 = vld [vmem:[#allocation2 + $0x1e0] sm:$0xff]  ;;  %v6117_v61 = vpop.f32.mrf.mxu0 }
 0x261   : > { %4401 = vmatmul.msk.f32.gmra.mxu1 %vm524_vm1, %v4655_v33  ;;  %v2922_v24 = vrot.slane %v2797_v51, 7  ;;  %v6133_v51 = vld [vmem:[#allocation2 + $0x1f0] sm:$0xff] }
 0x263   : > { %v2640_v25 = vpop.f32.mrf.mxu2 }
 0x264   : > { %v6103_v40 = vadd.f32 %v2640_v25, %v2410_v0  ;;  %v2411_v0 = vadd.f32 %v2333_v32, %v2197_v28  ;;  %v4657_v25 = vld [vmem:[#allocation2 + $0x1d0] sm:$0xff]  ;;  %v2198_v32 = vadd.f32 %v5821_v13, %v5611_v52  ;;  %v6129_v28 = vld [vmem:[#allocation2 + $0x1d8] sm:$0xff]  ;;  %v2925_v13 = vrot.slane %v6133_v51, 7 }
 0x265   : > { %v2516_v59 = vrot.slane %v4657_v25, 1  ;;  %7001 = vst [vmem:[#allocation61_spill] sm:$0xff] %v6129_v28 }
 0x266   : > { %6999 = vst [vmem:[#allocation59_spill] sm:$0xff] %v6103_v40  ;;  %v4664_v40 = vld [vmem:[#allocation2 + $0x68] sm:$0xff] }
 0x267   : > { %4488 = vmatmul.msk.f32.gmra.mxu0 %vm524_vm1, %v5825_v5  ;;  %v2921_v5 = vsel %vm1059_vm2, %v2918_v10, %v2920_v15  ;;  %v2336_v33 = vpop.f32.mrf.mxu1  ;;  %v2923_v10 = vrot.slane %v6115_v17, 7  ;;  %v4658_v15 = vld [vmem:[#allocation2 + $0x1c8] sm:$0xff] }
 0x268   : > { %4435 = vmatmul.msk.f32.gmra.mxu2 %vm524_vm1, %v2514_v26  ;;  %4469 = vmatmul.msk.f32.gmra.mxu3 %vm524_vm1, %v2921_v5  ;;  %v2515_v26 = vrot.slane %v4658_v15, 1  ;;  %v6138_v4 = vpop.f32.mrf.mxu0 }
 0x269   : > { %4402 = vmatmul.msk.f32.gmra.mxu1 %vm524_vm1, %v4658_v15  ;;  %v2924_v53 = vsel %vm1059_vm2, %v2922_v24, %v2923_v10  ;;  %v2926_v24 = vsel %vm1059_vm2, %v2923_v10, %v2925_v13  ;;  %v6163_v13 = vld [vmem:[#allocation2 + $0x1f8] sm:$0xff] }
 0x26a   : > { %v2517_v5 = vsel %vm1519_vm3, %v2515_v26, %v2516_v59  ;;  %v6938_v26 = vrot.slane %v6129_v28, 1  ;;  %7004 = vst [vmem:[#allocation64_spill] sm:$0xff] %v6163_v13 }
 0x26b   : > { %v2643_v35 = vpop.f32.mrf.mxu2 }
 0x26c   : > { %v6121_v2 = vadd.f32 %v2643_v35, %v2411_v0  ;;  %v2412_v0 = vadd.f32 %v2336_v33, %v2198_v32  ;;  %v2199_v33 = vadd.f32 %v5839_v14, %v5633_v18 }
 0x26e   : > { %7000 = vst [vmem:[#allocation60_spill] sm:$0xff] %v6121_v2 }
 0x26f   : > { %4489 = vmatmul.msk.f32.gmra.mxu0 %vm524_vm1, %v5837_v22  ;;  %v2339_v35 = vpop.f32.mrf.mxu1 }
 0x270   : > { %4436 = vmatmul.msk.f32.gmra.mxu2 %vm524_vm1, %v2517_v5  ;;  %4470 = vmatmul.msk.f32.gmra.mxu3 %vm524_vm1, %v2924_v53  ;;  %v2519_v53 = vsel %vm1519_vm3, %v2516_v59, %v6938_v26  ;;  %v2413_v5 = vadd.f32 %v2339_v35, %v2199_v33  ;;  %v4660_v59 = vld [vmem:[#allocation2 + $0x1e8] sm:$0xff]  ;;  %v6157_v14 = vpop.f32.mrf.mxu0  ;;  %v2200_v35 = vadd.f32 %v5858_v41, %v5649_v43  ;;  %v2805_v41 = vld [vmem:[#allocation2 + $0x220] sm:$0xff]  ;;  %v7008_v26 = vld [vmem:[#allocation50_spill] sm:$0xff] }
 0x271   : > { %4403 = vmatmul.msk.f32.gmra.mxu1 %vm524_vm1, %v4657_v25  ;;  %v4659_v25 = vld [vmem:[#allocation2 + $0x1f0] sm:$0xff]  ;;  %v2520_v18 = vrot.slane %v4660_v59, 1 }
 0x273   : > { %v2646_v15 = vpop.f32.mrf.mxu2 }
 0x274   : > { %v6140_v52 = vadd.f32 %v2646_v15, %v2412_v0  ;;  %v2521_v15 = vrot.slane %v4659_v25, 1 }
 0x276   : > { %7002 = vst [vmem:[#allocation62_spill] sm:$0xff] %v6140_v52  ;;  %v2522_v10 = vsel %vm1519_vm3, %v2520_v18, %v2521_v15  ;;  %v7006_v18 = vld [vmem:[#allocation52_spill] sm:$0xff] }
 0x277   : > { %4490 = vmatmul.msk.f32.gmra.mxu0 %vm524_vm1, %v5853_v38  ;;  %v2342_v32 = vpop.f32.mrf.mxu1 }
 0x278   : > { %4437 = vmatmul.msk.f32.gmra.mxu2 %vm524_vm1, %v2519_v53  ;;  %4471 = vmatmul.msk.f32.gmra.mxu3 %vm524_vm1, %v2926_v24  ;;  %v2414_v53 = vadd.f32 %v2342_v32, %v2200_v35  ;;  %v6180_v32 = vpop.f32.mrf.mxu0 }
 0x279   : > { %4404 = vmatmul.msk.f32.gmra.mxu1 %vm524_vm1, %v4660_v59  ;;  %v6176_v59 = vld [vmem:[#allocation2 + $0x228] sm:$0xff] }
 0x27b   : > { %v2649_v0 = vpop.f32.mrf.mxu2 }
 0x27c   : > { %v6154_v52 = vadd.f32 %v2649_v0, %v2413_v5  ;;  %v6937_v5 = vrot.slane %v6163_v13, 1  ;;  %v1877_v13 = vld [vmem:[#allocation2 + $0x218] sm:$0xff] }
 0x27e   : > { %7003 = vst [vmem:[#allocation63_spill] sm:$0xff] %v6154_v52  ;;  %v2524_v43 = vsel %vm1519_vm3, %v2521_v15, %v6937_v5  ;;  %v2528_v52 = vrot.slane %v1877_v13, 1 }
 0x27f   : > { %4491 = vmatmul.msk.f32.gmra.mxu0 %vm524_vm1, %v5873_v20  ;;  %v2345_v33 = vpop.f32.mrf.mxu1 }
 0x280   : > { %4438 = vmatmul.msk.f32.gmra.mxu2 %vm524_vm1, %v2522_v10  ;;  %4472 = vmatmul.msk.f32.gmra.mxu3 %vm524_vm1, %v5866_v58  ;;  %v2201_v58 = vadd.f32 %v5887_v11, %v5664_v36  ;;  %v2526_v36 = vrot.slane %v7008_v26, 1 }
 0x281   : > { %4405 = vmatmul.msk.f32.gmra.mxu1 %vm524_vm1, %v4659_v25  ;;  %v2932_v25 = vrot.slane %v2805_v41, 7  ;;  %v6198_v41 = vld [vmem:[#allocation2 + $0x230] sm:$0xff] }
 0x282   : > { %v2415_v10 = vadd.f32 %v2345_v33, %v2201_v58  ;;  %v7011_v58 = vld [vmem:[#allocation35_spill] sm:$0xff] }
 0x283   : > { %v2652_v24 = vpop.f32.mrf.mxu2 }
 0x284   : > { %v6170_v0 = vadd.f32 %v2652_v24, %v2414_v53  ;;  %v2933_v53 = vrot.slane %v6176_v59, 7  ;;  %v7007_v24 = vld [vmem:[#allocation48_spill] sm:$0xff] }
 0x285   : > { %v2525_v5 = vrot.slane %v7007_v24, 1 }
 0x286   : > { %7005 = vst [vmem:[#allocation65_spill] sm:$0xff] %v6170_v0 }
 0x287   : > { %4492 = vmatmul.msk.f32.gmra.mxu0 %vm524_vm1, %v5899_v16  ;;  %v2348_v35 = vpop.f32.mrf.mxu1  ;;  %v6196_v33 = vsel %vm1519_vm3, %v2525_v5, %v2526_v36 }
 0x288   : > { %4439 = vmatmul.msk.f32.gmra.mxu2 %vm524_vm1, %v2524_v43  ;;  %4473 = vmatmul.msk.f32.gmra.mxu3 %vm524_vm1, %v7006_v18  ;;  %v2934_v43 = vsel %vm1059_vm2, %v2932_v25, %v2933_v53  ;;  %7010 = vst [vmem:[#allocation48_spill] sm:$0xff] %v6196_v33  ;;  %v7012_v18 = vld [vmem:[#allocation54_spill] sm:$0xff]  ;;  %v2935_v25 = vrot.slane %v6198_v41, 7 }
 0x289   : > { %4406 = vmatmul.msk.f32.gmra.mxu1 %vm524_vm1, %v7007_v24  ;;  %v2202_v0 = vadd.f32 %v7012_v18, %v7011_v58  ;;  %v4661_v18 = vld [vmem:[#allocation2 + $0x50] sm:$0xff] }
 0x28a   : > { %v2936_v58 = vsel %vm1059_vm2, %v2933_v53, %v2935_v25 }
 0x28b   : > { %v2655_v15 = vpop.f32.mrf.mxu2 }
 0x28c   : > { %v6190_v11 = vadd.f32 %v2655_v15, %v2415_v10  ;;  %v6205_v10 = vpop.f32.mrf.mxu0  ;;  %v2416_v15 = vadd.f32 %v2348_v35, %v2202_v0  ;;  %v3382_v0 = vrot.slane %v4661_v18, 1  ;;  %v7015_v35 = vld [vmem:[#allocation36_spill] sm:$0xff]  ;;  %v7018_v18 = vld [vmem:[#allocation37_spill] sm:$0xff] }
 0x28e   : > { %7009 = vst [vmem:[#allocation52_spill] sm:$0xff] %v6190_v11 }
 0x28f   : > { %4493 = vmatmul.msk.f32.gmra.mxu0 %vm524_vm1, %v5915_v50  ;;  %v2351_v11 = vpop.f32.mrf.mxu1 }
 0x290   : > { %4440 = vmatmul.msk.f32.gmra.mxu2 %vm524_vm1, %v6196_v33  ;;  %4474 = vmatmul.msk.f32.gmra.mxu3 %vm524_vm1, %v2934_v43  ;;  %v6216_v43 = vsel %vm1519_vm3, %v2526_v36, %v2528_v52  ;;  %v7016_v33 = vld [vmem:[#allocation57_spill] sm:$0xff] }
 0x291   : > { %4407 = vmatmul.msk.f32.gmra.mxu1 %vm524_vm1, %v7008_v26  ;;  %7014 = vst [vmem:[#allocation35_spill] sm:$0xff] %v6216_v43  ;;  %v2203_v2 = vadd.f32 %v7016_v33, %v7015_v35  ;;  %v2748_v33 = vld [vmem:[#allocation2 + $0x58] sm:$0xff] }
 0x293   : > { %v2658_v5 = vpop.f32.mrf.mxu2  ;;  %v2417_v13 = vadd.f32 %v2351_v11, %v2203_v2  ;;  %v3384_v2 = vrot.slane %v2748_v33, 1  ;;  %v7019_v11 = vld [vmem:[#allocation3_spill] sm:$0xff] }
 0x294   : > { %v6210_v28 = vadd.f32 %v2658_v5, %v2416_v15  ;;  %v4662_v5 = vld [vmem:[#allocation2 + $0x48] sm:$0xff]  ;;  %v6225_v52 = vpop.f32.mrf.mxu0  ;;  %v7020_v35 = vmax.f32 %v7019_v11, 0.0 }
 0x296   : > { %7013 = vst [vmem:[#allocation50_spill] sm:$0xff] %v6210_v28  ;;  %v3381_v28 = vrot.slane %v4662_v5, 1 }
 0x297   : > { %4494 = vmatmul.msk.f32.gmra.mxu0 %vm524_vm1, %v5930_v9  ;;  %v2354_v15 = vpop.f32.mrf.mxu1 }
 0x298   : > { %4441 = vmatmul.msk.f32.gmra.mxu2 %vm524_vm1, %v6216_v43  ;;  %4475 = vmatmul.msk.f32.gmra.mxu3 %vm524_vm1, %v2936_v58  ;;  %v3383_v25 = vsel %vm1519_vm3, %v3381_v28, %v3382_v0  ;;  %v2204_v58 = vadd.f32 %v5957_v60, %v7018_v18  ;;  %v3385_v28 = vsel %vm1519_vm3, %v3382_v0, %v3384_v2  ;;  %v7022_v60 = vld [vmem:[#allocation38_spill] sm:$0xff]  ;;  %v4663_v18 = vld [vmem:[#allocation2 + $0x70] sm:$0xff] }
 0x299   : > { %4512 = vmatmul.msk.f32.vlgmr.msra.gmra.mxu1 %vm524_vm1, %v3383_v25  ;;  %v2205_v33 = vadd.f32 %v5977_v54, %v7022_v60  ;;  %v3387_v11 = vrot.slane %v4663_v18, 1  ;;  %v2752_v54 = vld [vmem:[#allocation2 + $0x78] sm:$0xff] }
 0x29a   : > { %v2418_v5 = vadd.f32 %v2354_v15, %v2204_v58 }
 0x29b   : > { %v2661_v53 = vpop.f32.mrf.mxu2 }
 0x29c   : > { %v6227_v36 = vadd.f32 %v2661_v53, %v2417_v13  ;;  %v6242_v25 = vpop.f32.mrf.mxu0 }
 0x29e   : > { %7017 = vst [vmem:[#allocation54_spill] sm:$0xff] %v6227_v36 }
 0x29f   : > { %4495 = vmatmul.msk.f32.gmra.mxu0 %vm524_vm1, %v5950_v8  ;;  %v2357_v43 = vpop.f32.mrf.mxu1 }
 0x2a0   : > { %4545 = vmatmul.msk.f32.vlgmr.msra.gmra.mxu2 %vm524_vm1, %v7020_v35  ;;  %v7023_v35 = vld [vmem:[#allocation4_spill] sm:$0xff]  ;;  %v2419_v58 = vadd.f32 %v2357_v43, %v2205_v33  ;;  %v3389_v43 = vrot.slane %v2752_v54, 1  ;;  %v7027_v33 = vld [vmem:[#allocation5_spill] sm:$0xff]  ;;  %v6270_v54 = vpop.f32.mrf.mxu3 }
 0x2a1   : > { %4513 = vmatmul.msk.f32.gmra.mxu1 %vm524_vm1, %v3385_v28  ;;  %v7024_v15 = vmax.f32 %v7023_v35, 0.0  ;;  %v7026_v28 = vld [vmem:[#allocation39_spill] sm:$0xff]  ;;  %v7028_v35 = vmax.f32 %v7027_v33, 0.0 }
 0x2a2   : > { %v2206_v60 = vadd.f32 %v6003_v48, %v7026_v28  ;;  %v7030_v48 = vld [vmem:[#allocation40_spill] sm:$0xff]  ;;  %v4665_v28 = vld [vmem:[#allocation2 + $0x90] sm:$0xff] }
 0x2a3   : > { %v2664_v13 = vpop.f32.mrf.mxu2  ;;  %v3392_v33 = vrot.slane %v4665_v28, 1 }
 0x2a4   : > { %v6238_v53 = vadd.f32 %v2664_v13, %v2418_v5  ;;  %v3386_v5 = vrot.slane %v4664_v40, 1  ;;  %v6257_v18 = vpop.f32.mrf.mxu0 }
 0x2a6   : > { %7021 = vst [vmem:[#allocation36_spill] sm:$0xff] %v6238_v53  ;;  %v3388_v13 = vsel %vm1519_vm3, %v3386_v5, %v3387_v11  ;;  %v4668_v53 = vld [vmem:[#allocation2 + $0xa8] sm:$0xff] }
 0x2a7   : > { %4496 = vmatmul.msk.f32.gmra.mxu0 %vm524_vm1, %v5971_v62  ;;  %v2360_v36 = vpop.f32.mrf.mxu1 }
 0x2a8   : > { %4546 = vmatmul.msk.f32.gmra.mxu2 %vm524_vm1, %v7024_v15  ;;  %v2420_v40 = vadd.f32 %v2360_v36, %v2206_v60 }
 0x2a9   : > { %4514 = vmatmul.msk.f32.gmra.mxu1 %vm524_vm1, %v3388_v13  ;;  %v2207_v13 = vadd.f32 %v6026_v29, %v7030_v48  ;;  %v7035_v48 = vld [vmem:[#allocation41_spill] sm:$0xff] }
 0x2aa   : > { %v2208_v28 = vadd.f32 %v6047_v42, %v7035_v48  ;;  %v7040_v42 = vld [vmem:[#allocation42_spill] sm:$0xff]  ;;  %v4667_v48 = vld [vmem:[#allocation2 + $0xb0] sm:$0xff] }
 0x2ab   : > { %v2667_v0 = vpop.f32.mrf.mxu2 }
 0x2ac   : > { %v6251_v2 = vadd.f32 %v2667_v0, %v2419_v58  ;;  %v3390_v0 = vsel %vm1519_vm3, %v3387_v11, %v3389_v43  ;;  %v6275_v60 = vpop.f32.mrf.mxu0 }
 0x2ad   : > { %7033 = vst [vmem:[#allocation3_spill] sm:$0xff] %v6275_v60 }
 0x2ae   : > { %7025 = vst [vmem:[#allocation57_spill] sm:$0xff] %v6251_v2 }
 0x2af   : > { %4497 = vmatmul.msk.f32.gmra.mxu0 %vm524_vm1, %v5989_v46  ;;  %v2363_v15 = vpop.f32.mrf.mxu1 }
 0x2b0   : > { %4547 = vmatmul.msk.f32.gmra.mxu2 %vm524_vm1, %v7028_v35  ;;  %v7031_v35 = vld [vmem:[#allocation6_spill] sm:$0xff]  ;;  %v2421_v2 = vadd.f32 %v2363_v15, %v2207_v13  ;;  %v6288_v13 = vpop.f32.mrf.mxu3 }
 0x2b1   : > { %4515 = vmatmul.msk.f32.gmra.mxu1 %vm524_vm1, %v3390_v0  ;;  %v7032_v36 = vmax.f32 %v7031_v35, 0.0  ;;  %v2756_v0 = vld [vmem:[#allocation2 + $0x98] sm:$0xff]  ;;  %7038 = vst [vmem:[#allocation4_spill] sm:$0xff] %v6288_v13  ;;  %v3396_v13 = vrot.slane %v4668_v53, 1  ;;  %v7045_v53 = vld [vmem:[#allocation9_spill] sm:$0xff] }
 0x2b2   : > { %v3394_v35 = vrot.slane %v2756_v0, 1  ;;  %v2209_v0 = vadd.f32 %v6068_v47, %v7040_v42  ;;  %v7044_v42 = vld [vmem:[#allocation43_spill] sm:$0xff] }
 0x2b3   : > { %v2670_v58 = vpop.f32.mrf.mxu2 }
 0x2b4   : > { %v6264_v5 = vadd.f32 %v2670_v58, %v2420_v40  ;;  %v4666_v58 = vld [vmem:[#allocation2 + $0x88] sm:$0xff] }
 0x2b6   : > { %7029 = vst [vmem:[#allocation37_spill] sm:$0xff] %v6264_v5  ;;  %v3391_v5 = vrot.slane %v4666_v58, 1 }
 0x2b7   : > { %4498 = vmatmul.msk.f32.gmra.mxu0 %vm524_vm1, %v6008_v23  ;;  %v2366_v40 = vpop.f32.mrf.mxu1 }
 0x2b8   : > { %4548 = vmatmul.msk.f32.gmra.mxu2 %vm524_vm1, %v7032_v36  ;;  %v3393_v29 = vsel %vm1519_vm3, %v3391_v5, %v3392_v33  ;;  %v7036_v36 = vld [vmem:[#allocation7_spill] sm:$0xff]  ;;  %v2422_v58 = vadd.f32 %v2366_v40, %v2208_v28  ;;  %v6292_v5 = vpop.f32.mrf.mxu0 }
 0x2b9   : > { %4516 = vmatmul.msk.f32.gmra.mxu1 %vm524_vm1, %v3393_v29  ;;  %v7037_v15 = vmax.f32 %v7036_v36, 0.0  ;;  %v3395_v29 = vsel %vm1519_vm3, %v3392_v33, %v3394_v35  ;;  %v3397_v36 = vrot.slane %v4667_v48, 1  ;;  %v6305_v33 = vpop.f32.mrf.mxu3  ;;  %v7046_v48 = vmax.f32 %v7045_v53, 0.0 }
 0x2bb   : > { %v2673_v11 = vpop.f32.mrf.mxu2  ;;  %v3398_v47 = vsel %vm1519_vm3, %v3396_v13, %v3397_v36 }
 0x2bc   : > { %v6279_v43 = vadd.f32 %v2673_v11, %v2421_v2 }
 0x2be   : > { %7034 = vst [vmem:[#allocation38_spill] sm:$0xff] %v6279_v43 }
 0x2bf   : > { %4499 = vmatmul.msk.f32.gmra.mxu0 %vm524_vm1, %v6024_v6  ;;  %v2369_v60 = vpop.f32.mrf.mxu1 }
 0x2c0   : > { %4549 = vmatmul.msk.f32.gmra.mxu2 %vm524_vm1, %v7037_v15  ;;  %v7041_v15 = vld [vmem:[#allocation8_spill] sm:$0xff]  ;;  %v2423_v28 = vadd.f32 %v2369_v60, %v2209_v0  ;;  %v2210_v60 = vadd.f32 %v6091_v3, %v7044_v42 }
 0x2c1   : > { %4517 = vmatmul.msk.f32.gmra.mxu1 %vm524_vm1, %v3395_v29  ;;  %v7042_v40 = vmax.f32 %v7041_v15, 0.0  ;;  %v6311_v29 = vpop.f32.mrf.mxu0  ;;  %v7048_v3 = vld [vmem:[#allocation44_spill] sm:$0xff] }
 0x2c3   : > { %v2676_v2 = vpop.f32.mrf.mxu2 }
 0x2c4   : > { %v6294_v11 = vadd.f32 %v2676_v2, %v2422_v58  ;;  %v2760_v2 = vld [vmem:[#allocation2 + $0xb8] sm:$0xff] }
 0x2c5   : > { %v3399_v0 = vrot.slane %v2760_v2, 1  ;;  %v2211_v2 = vadd.f32 %v6117_v61, %v7048_v3 }
 0x2c6   : > { %7039 = vst [vmem:[#allocation39_spill] sm:$0xff] %v6294_v11  ;;  %v4670_v11 = vld [vmem:[#allocation2 + $0xe8] sm:$0xff] }
 0x2c7   : > { %4500 = vmatmul.msk.f32.gmra.mxu0 %vm524_vm1, %v6043_v34  ;;  %v2372_v43 = vpop.f32.mrf.mxu1 }
 0x2c8   : > { %4550 = vmatmul.msk.f32.gmra.mxu2 %vm524_vm1, %v7042_v40  ;;  %v2424_v15 = vadd.f32 %v2372_v43, %v2210_v60  ;;  %v3402_v43 = vrot.slane %v5811_v21, 1  ;;  %v7049_v60 = vld [vmem:[#allocation10_spill] sm:$0xff]  ;;  %v7052_v21 = vld [vmem:[#allocation45_spill] sm:$0xff] }
 0x2c9   : > { %4518 = vmatmul.msk.f32.gmra.mxu1 %vm524_vm1, %v3398_v47  ;;  %v6324_v47 = vpop.f32.mrf.mxu3  ;;  %v6328_v42 = vpop.f32.mrf.mxu0  ;;  %v7050_v53 = vmax.f32 %v7049_v60, 0.0  ;;  %v2212_v3 = vadd.f32 %v6138_v4, %v7052_v21  ;;  %v7055_v4 = vld [vmem:[#allocation46_spill] sm:$0xff]  ;;  %v3407_v21 = vrot.slane %v5837_v22, 1 }
 0x2cb   : > { %v2679_v58 = vpop.f32.mrf.mxu2 }
 0x2cc   : > { %v6307_v35 = vadd.f32 %v2679_v58, %v2423_v28  ;;  %v3400_v58 = vsel %vm1519_vm3, %v3397_v36, %v3399_v0 }
 0x2ce   : > { %7043 = vst [vmem:[#allocation5_spill] sm:$0xff] %v6307_v35 }
 0x2cf   : > { %4501 = vmatmul.msk.f32.gmra.mxu0 %vm524_vm1, %v6061_v44  ;;  %v2375_v40 = vpop.f32.mrf.mxu1 }
 0x2d0   : > { %4551 = vmatmul.msk.f32.gmra.mxu2 %vm524_vm1, %v7046_v48  ;;  %v2425_v48 = vadd.f32 %v2375_v40, %v2211_v2  ;;  %v7053_v2 = vld [vmem:[#allocation11_spill] sm:$0xff] }
 0x2d1   : > { %4519 = vmatmul.msk.f32.gmra.mxu1 %vm524_vm1, %v3400_v58  ;;  %v2764_v58 = vld [vmem:[#allocation2 + $0xd8] sm:$0xff]  ;;  %v6342_v60 = vpop.f32.mrf.mxu3 }
 0x2d2   : > { %v3404_v40 = vrot.slane %v2764_v58, 1  ;;  %v2213_v58 = vadd.f32 %v6157_v14, %v7055_v4  ;;  %v2768_v14 = vld [vmem:[#allocation2 + $0xf8] sm:$0xff] }
 0x2d3   : > { %v2682_v28 = vpop.f32.mrf.mxu2 }
 0x2d4   : > { %v6320_v13 = vadd.f32 %v2682_v28, %v2424_v15  ;;  %v4669_v28 = vld [vmem:[#allocation2 + $0xc8] sm:$0xff] }
 0x2d6   : > { %7047 = vst [vmem:[#allocation40_spill] sm:$0xff] %v6320_v13  ;;  %v3401_v13 = vrot.slane %v4669_v28, 1  ;;  %v6347_v28 = vpop.f32.mrf.mxu0 }
 0x2d7   : > { %4502 = vmatmul.msk.f32.gmra.mxu0 %vm524_vm1, %v6080_v39  ;;  %v2378_v15 = vpop.f32.mrf.mxu1 }
 0x2d8   : > { %4552 = vmatmul.msk.f32.gmra.mxu2 %vm524_vm1, %v7050_v53  ;;  %v3403_v61 = vsel %vm1519_vm3, %v3401_v13, %v3402_v43  ;;  %v7054_v53 = vmax.f32 %v7053_v2, 0.0  ;;  %v2426_v35 = vadd.f32 %v2378_v15, %v2212_v3  ;;  %v7056_v2 = vld [vmem:[#allocation12_spill] sm:$0xff] }
 0x2d9   : > { %4520 = vmatmul.msk.f32.gmra.mxu1 %vm524_vm1, %v3403_v61  ;;  %v3405_v61 = vsel %vm1519_vm3, %v3402_v43, %v3404_v40  ;;  %v6361_v15 = vpop.f32.mrf.mxu3 }
 0x2db   : > { %v2685_v36 = vpop.f32.mrf.mxu2 }
 0x2dc   : > { %v6336_v0 = vadd.f32 %v2685_v36, %v2425_v48 }
 0x2de   : > { %7051 = vst [vmem:[#allocation6_spill] sm:$0xff] %v6336_v0  ;;  %v6365_v40 = vpop.f32.mrf.mxu0 }
 0x2df   : > { %4503 = vmatmul.msk.f32.gmra.mxu0 %vm524_vm1, %v6098_v37  ;;  %v2381_v48 = vpop.f32.mrf.mxu1 }
 0x2e0   : > { %4553 = vmatmul.msk.f32.gmra.mxu2 %vm524_vm1, %v7054_v53  ;;  %v7057_v53 = vmax.f32 %v7056_v2, 0.0  ;;  %v2427_v3 = vadd.f32 %v2381_v48, %v2213_v58  ;;  %v3409_v48 = vrot.slane %v2768_v14, 1  ;;  %v7059_v58 = vld [vmem:[#allocation13_spill] sm:$0xff] }
 0x2e1   : > { %4521 = vmatmul.msk.f32.gmra.mxu1 %vm524_vm1, %v3405_v61  ;;  %v7058_v61 = vld [vmem:[#allocation47_spill] sm:$0xff]  ;;  %v7060_v2 = vmax.f32 %v7059_v58, 0.0  ;;  %v7061_v14 = vld [vmem:[#allocation49_spill] sm:$0xff] }
 0x2e2   : > { %v2214_v4 = vadd.f32 %v6180_v32, %v7058_v61  ;;  %v2215_v61 = vadd.f32 %v6205_v10, %v7061_v14 }
 0x2e3   : > { %v2688_v13 = vpop.f32.mrf.mxu2 }
 0x2e4   : > { %v6351_v36 = vadd.f32 %v2688_v13, %v2426_v35  ;;  %v3406_v35 = vrot.slane %v4670_v11, 1 }
 0x2e6   : > { %v3408_v22 = vsel %vm1519_vm3, %v3406_v35, %v3407_v21  ;;  %v6384_v32 = vpop.f32.mrf.mxu0 }
 0x2e7   : > { %4504 = vmatmul.msk.f32.gmra.mxu0 %vm524_vm1, %v6115_v17  ;;  %v2384_v0 = vpop.f32.mrf.mxu1 }
 0x2e8   : > { %4554 = vmatmul.msk.f32.gmra.mxu2 %vm524_vm1, %v7057_v53  ;;  %v2428_v11 = vadd.f32 %v2384_v0, %v2214_v4  ;;  %v3412_v0 = vrot.slane %v5873_v20, 1  ;;  %v7062_v4 = vld [vmem:[#allocation14_spill] sm:$0xff]  ;;  %v7064_v20 = vld [vmem:[#allocation51_spill] sm:$0xff] }
 0x2e9   : > { %4522 = vmatmul.msk.f32.gmra.mxu1 %vm524_vm1, %v3408_v22  ;;  %v3410_v22 = vsel %vm1519_vm3, %v3407_v21, %v3409_v48  ;;  %v7063_v58 = vmax.f32 %v7062_v4, 0.0 }
 0x2eb   : > { %v2691_v43 = vpop.f32.mrf.mxu2 }
 0x2ec   : > { %v6367_v13 = vadd.f32 %v2691_v43, %v2427_v3  ;;  %v6378_v43 = vpop.f32.mrf.mxu3 }
 0x2ee   : > { %v6403_v14 = vpop.f32.mrf.mxu0 }
 0x2ef   : > { %4505 = vmatmul.msk.f32.gmra.mxu0 %vm524_vm1, %v6133_v51  ;;  %v2387_v53 = vpop.f32.mrf.mxu1 }
 0x2f0   : > { %4555 = vmatmul.msk.f32.gmra.mxu2 %vm524_vm1, %v7060_v2 }
 0x2f1   : > { %4523 = vmatmul.msk.f32.gmra.mxu1 %vm524_vm1, %v3410_v22  ;;  %v2216_v22 = vadd.f32 %v6225_v52, %v7064_v20  ;;  %v7070_v52 = vld [vmem:[#allocation53_spill] sm:$0xff] }
 0x2f3   : > { %v2694_v3 = vpop.f32.mrf.mxu2 }
 0x2f4   : > { %v6380_v35 = vadd.f32 %v2694_v3, %v2428_v11  ;;  %v3411_v11 = vrot.slane %v5853_v38, 1  ;;  %v6399_v10 = vpop.f32.mrf.mxu3 }
 0x2f6   : > { %v3413_v3 = vsel %vm1519_vm3, %v3411_v11, %v3412_v0 }
 0x2f7   : > { %4506 = vmatmul.msk.f32.gmra.mxu0 %vm524_vm1, %v7007_v24  ;;  %v2429_v24 = vadd.f32 %v2387_v53, %v2215_v61  ;;  %v2390_v2 = vpop.f32.mrf.mxu1  ;;  %v7065_v53 = vld [vmem:[#allocation15_spill] sm:$0xff] }
 0x2f8   : > { %4556 = vmatmul.msk.f32.gmra.mxu2 %vm524_vm1, %v7063_v58  ;;  %v7066_v61 = vmax.f32 %v7065_v53, 0.0  ;;  %v2430_v38 = vadd.f32 %v2390_v2, %v2216_v22  ;;  %v3417_v2 = vrot.slane %v5915_v50, 1  ;;  %v7071_v22 = vld [vmem:[#allocation16_spill] sm:$0xff] }
 0x2f9   : > { %4524 = vmatmul.msk.f32.gmra.mxu1 %vm524_vm1, %v3413_v3  ;;  %v2217_v3 = vadd.f32 %v6242_v25, %v7070_v52  ;;  %v7072_v53 = vmax.f32 %v7071_v22, 0.0  ;;  %v7073_v50 = vld [vmem:[#allocation56_spill] sm:$0xff]  ;;  %v7074_v52 = vld [vmem:[#allocation17_spill] sm:$0xff] }
 0x2fa   : > { %v7075_v22 = vmax.f32 %v7074_v52, 0.0 }
 0x2fb   : > { %v2697_v21 = vpop.f32.mrf.mxu2 }
 0x2fc   : > { %v6395_v48 = vadd.f32 %v2697_v21, %v2429_v24  ;;  %v7068_v24 = vld [vmem:[#allocation55_spill] sm:$0xff]  ;;  %v6418_v20 = vpop.f32.mrf.mxu3 }
 0x2fd   : > { %v7069_v11 = vrot.slane %v7068_v24, 1  ;;  %v3416_v24 = vrot.slane %v5899_v16, 1 }
 0x2ff   : > { %4507 = vmatmul.msk.f32.gmra.mxu0 %vm524_vm1, %v7008_v26  ;;  %v2393_v26 = vpop.f32.mrf.mxu1  ;;  %v3415_v21 = vsel %vm1519_vm3, %v3412_v0, %v7069_v11  ;;  %v3418_v25 = vsel %vm1519_vm3, %v3416_v24, %v3417_v2 }
 0x300   : > { %4557 = vmatmul.msk.f32.gmra.mxu2 %vm524_vm1, %v7066_v61  ;;  %v6424_v61 = vpop.f32.mrf.mxu0 }
 0x301   : > { %4525 = vmatmul.msk.f32.gmra.mxu1 %vm524_vm1, %v3415_v21  ;;  %v2218_v21 = vadd.f32 %v6257_v18, %v7073_v50  ;;  %v3422_v18 = vrot.slane %v5950_v8, 1  ;;  %v6457_v50 = vld [vmem:[%s6858_s9] ss:$0 sm:$0xff] }
 0x302   : > { %v6463_v8 = vld [vmem:[%s6859_s10] ss:$0 sm:$0xff] }
 0x303   : > { %v2700_v4 = vpop.f32.mrf.mxu2 }
 0x304   : > { %v6410_v58 = vadd.f32 %v2700_v4, %v2430_v38  ;;  %v2431_v38 = vadd.f32 %v2393_v26, %v2217_v3  ;;  %v6438_v26 = vpop.f32.mrf.mxu3 }
 0x306   : > { %7067 = vst [vmem:[#allocation41_spill] sm:$0xff] %v6410_v58 }
 0x307   : > { %4508 = vmatmul.msk.f32.gmra.mxu0 %vm524_vm1, %v6176_v59  ;;  %v2396_v4 = vpop.f32.mrf.mxu1 }
 0x308   : > { %4558 = vmatmul.msk.f32.gmra.mxu2 %vm524_vm1, %v7072_v53  ;;  %v2432_v16 = vadd.f32 %v2396_v4, %v2218_v21  ;;  %v3333_v4 = vadd.f32 %v6292_v5, %v5962_v19 }
 0x309   : > { %4526 = vmatmul.msk.f32.gmra.mxu1 %vm524_vm1, %v3418_v25 }
 0x30b   : > { %v2703_v0 = vpop.f32.mrf.mxu2 }
 0x30c   : > { %v6429_v11 = vadd.f32 %v2703_v0, %v2431_v38  ;;  %v7076_v38 = vrot.slane %v5946_v63, 1  ;;  %v7077_v0 = vld [vmem:[#allocation18_spill] sm:$0xff]  ;;  %v3421_v63 = vrot.slane %v5930_v9, 1  ;;  %v6465_v52 = vpop.f32.mrf.mxu3  ;;  %v3334_v9 = vadd.f32 %v6311_v29, %v5979_v7  ;;  %v7082_v29 = vld [vmem:[#allocation20_spill] sm:$0xff] }
 0x30d   : > { %v7078_v25 = vmax.f32 %v7077_v0, 0.0  ;;  %v3427_v7 = vrot.slane %v5989_v46, 1 }
 0x30e   : > { %v3420_v24 = vsel %vm1519_vm3, %v3417_v2, %v7076_v38 }
 0x30f   : > { %4509 = vmatmul.msk.f32.gmra.mxu0 %vm524_vm1, %v6198_v41  ;;  %v6440_v3 = vpop.f32.mrf.mxu1 }
 0x310   : > { %4559 = vmatmul.msk.f32.gmra.mxu2 %vm524_vm1, %v7075_v22  ;;  %v3423_v22 = vsel %vm1519_vm3, %v3421_v63, %v3422_v18 }
 0x311   : > { %4527 = vmatmul.msk.f32.gmra.mxu1 %vm524_vm1, %v3420_v24 }
 0x313   : > { %v2706_v53 = vpop.f32.mrf.mxu2 }
 0x314   : > { %v6442_v58 = vadd.f32 %v2706_v53, %v2432_v16  ;;  %v7079_v16 = vld [vmem:[#allocation19_spill] sm:$0xff]  ;;  %v6482_v63 = vpop.f32.mrf.mxu3 }
 0x315   : > { %v7080_v53 = vmax.f32 %v7079_v16, 0.0  ;;  %v3426_v16 = vrot.slane %v5971_v62, 1  ;;  %v3336_v62 = vadd.f32 %v6347_v28, %v6014_v55  ;;  %v7087_v55 = vld [vmem:[#allocation22_spill] sm:$0xff] }
 0x316   : > { %v7088_v28 = vmax.f32 %v7087_v55, 0.0 }
 0x317   : > { %v3547_v21 = vpop.f32.mrf.mxu1 }
 0x318   : > { %4560 = vmatmul.msk.f32.gmra.mxu2 %vm524_vm1, %v7078_v25  ;;  %v3643_v2 = vadd.f32 %v3547_v21, %v3333_v4  ;;  %v7081_v25 = vrot.slane %v5985_v27, 1  ;;  %v3335_v27 = vadd.f32 %v6328_v42, %v5996_v56 }
 0x319   : > { %4528 = vmatmul.msk.f32.gmra.mxu1 %vm524_vm1, %v3423_v22  ;;  %v6485_v22 = vpop.f32.mrf.mxu0 }
 0x31a   : > { %v3679_v19 = vmul.f32 %v6457_v50, %v3643_v2  ;;  %v3425_v4 = vsel %vm1519_vm3, %v3422_v18, %v7081_v25 }
 0x31c   : > { %v3715_v5 = vadd.f32 %v6463_v8, %v3679_v19  ;;  %v7083_v19 = vmax.f32 %v7082_v29, 0.0 }
 0x31e   : > { %v3747_v38 = vmax.f32 %v3715_v5, 0.0 }
 0x31f   : > { %v3550_v24 = vpop.f32.mrf.mxu1 }
 0x320   : > { %4561 = vmatmul.msk.f32.gmra.mxu2 %vm524_vm1, %v7080_v53  ;;  %v3644_v0 = vadd.f32 %v3550_v24, %v3334_v9  ;;  %4578 = vmatmul.msk.f32.vlgmr.msra.gmra.mxu3 %vm524_vm1, %v3747_v38  ;;  %v3428_v9 = vsel %vm1519_vm3, %v3426_v16, %v3427_v7  ;;  %v6499_v24 = vpop.f32.mrf.mxu3 }
 0x321   : > { %4529 = vmatmul.msk.f32.gmra.mxu1 %vm524_vm1, %v3425_v4  ;;  %v6506_v42 = vpop.f32.mrf.mxu0 }
 0x322   : > { %v3680_v21 = vmul.f32 %v6457_v50, %v3644_v0  ;;  %v7084_v0 = vld [vmem:[#allocation21_spill] sm:$0xff] }
 0x323   : > { %v7085_v25 = vmax.f32 %v7084_v0, 0.0 }
 0x324   : > { %v3716_v2 = vadd.f32 %v6463_v8, %v3680_v21 }
 0x326   : > { %v3748_v18 = vmax.f32 %v3716_v2, 0.0  ;;  %v7086_v2 = vrot.slane %v6020_v49, 1 }
 0x327   : > { %v3553_v5 = vpop.f32.mrf.mxu1 }
 0x328   : > { %4562 = vmatmul.msk.f32.gmra.mxu2 %vm524_vm1, %v7083_v19  ;;  %v3645_v53 = vadd.f32 %v3553_v5, %v3335_v27  ;;  %4579 = vmatmul.msk.f32.gmra.mxu3 %vm524_vm1, %v3748_v18  ;;  %v3430_v29 = vsel %vm1519_vm3, %v3427_v7, %v7086_v2  ;;  %v3432_v18 = vrot.slane %v6024_v6, 1  ;;  %v3337_v5 = vadd.f32 %v6365_v40, %v6033_v12  ;;  %v7089_v12 = vld [vmem:[#allocation23_spill] sm:$0xff] }
 0x329   : > { %4530 = vmatmul.msk.f32.gmra.mxu1 %vm524_vm1, %v3428_v9  ;;  %v3431_v7 = vrot.slane %v6008_v23, 1  ;;  %v7090_v40 = vmax.f32 %v7089_v12, 0.0  ;;  %v3338_v23 = vadd.f32 %v6384_v32, %v6051_v45  ;;  %v3437_v45 = vrot.slane %v6061_v44, 1  ;;  %v7092_v32 = vld [vmem:[#allocation24_spill] sm:$0xff] }
 0x32a   : > { %v3681_v38 = vmul.f32 %v6457_v50, %v3645_v53  ;;  %v6521_v53 = vpop.f32.mrf.mxu3  ;;  %v7093_v55 = vmax.f32 %v7092_v32, 0.0 }
 0x32b   : > { %v3433_v6 = vsel %vm1519_vm3, %v3431_v7, %v3432_v18 }
 0x32c   : > { %v3717_v46 = vadd.f32 %v6463_v8, %v3681_v38  ;;  %v6525_v38 = vpop.f32.mrf.mxu0 }
 0x32e   : > { %v3749_v56 = vmax.f32 %v3717_v46, 0.0 }
 0x32f   : > { %v3556_v4 = vpop.f32.mrf.mxu1 }
 0x330   : > { %4563 = vmatmul.msk.f32.gmra.mxu2 %vm524_vm1, %v7085_v25  ;;  %v3646_v21 = vadd.f32 %v3556_v4, %v3336_v62  ;;  %4580 = vmatmul.msk.f32.gmra.mxu3 %vm524_vm1, %v3749_v56 }
 0x331   : > { %4531 = vmatmul.msk.f32.gmra.mxu1 %vm524_vm1, %v3430_v29 }
 0x332   : > { %v3682_v19 = vmul.f32 %v6457_v50, %v3646_v21  ;;  %v6537_v4 = vpop.f32.mrf.mxu3  ;;  %v7091_v21 = vrot.slane %v6057_v30, 1 }
 0x334   : > { %v3718_v27 = vadd.f32 %v6463_v8, %v3682_v19  ;;  %v3435_v2 = vsel %vm1519_vm3, %v3432_v18, %v7091_v21  ;;  %v6544_v19 = vpop.f32.mrf.mxu0  ;;  %v3436_v18 = vrot.slane %v6043_v34, 1  ;;  %v3340_v34 = vadd.f32 %v6424_v61, %v6086_v1  ;;  %v6579_v1 = vpop.f32.mrf.mxu2 }
 0x335   : > { %v3442_v61 = vrot.slane %v6098_v37, 1  ;;  %v7100_v37 = vld [vmem:[#allocation60_spill] sm:$0xff] }
 0x336   : > { %v3750_v16 = vmax.f32 %v3718_v27, 0.0 }
 0x337   : > { %v3559_v49 = vpop.f32.mrf.mxu1 }
 0x338   : > { %4564 = vmatmul.msk.f32.gmra.mxu2 %vm524_vm1, %v7088_v28  ;;  %v3647_v9 = vadd.f32 %v3559_v49, %v3337_v5  ;;  %4581 = vmatmul.msk.f32.gmra.mxu3 %vm524_vm1, %v3750_v16  ;;  %v3339_v28 = vadd.f32 %v6403_v14, %v6070_v57  ;;  %v3438_v49 = vsel %vm1519_vm3, %v3436_v18, %v3437_v45  ;;  %v7094_v57 = vld [vmem:[#allocation25_spill] sm:$0xff]  ;;  %v7101_v18 = vld [vmem:[#allocation4_spill] sm:$0xff] }
 0x339   : > { %4532 = vmatmul.msk.f32.gmra.mxu1 %vm524_vm1, %v3433_v6  ;;  %v7095_v14 = vmax.f32 %v7094_v57, 0.0 }
 0x33a   : > { %v3683_v46 = vmul.f32 %v6457_v50, %v3647_v9  ;;  %v6558_v44 = vpop.f32.mrf.mxu3 }
 0x33c   : > { %v3719_v0 = vadd.f32 %v6463_v8, %v3683_v46  ;;  %v6561_v6 = vpop.f32.mrf.mxu0 }
 0x33e   : > { %v3751_v25 = vmax.f32 %v3719_v0, 0.0 }
 0x33f   : > { %v3562_v62 = vpop.f32.mrf.mxu1 }
 0x340   : > { %4565 = vmatmul.msk.f32.gmra.mxu2 %vm524_vm1, %v7090_v40  ;;  %v3648_v56 = vadd.f32 %v3562_v62, %v3338_v23  ;;  %4582 = vmatmul.msk.f32.gmra.mxu3 %vm524_vm1, %v3751_v25  ;;  %v7096_v40 = vrot.slane %v6094_v31, 1  ;;  %v7097_v62 = vld [vmem:[#allocation59_spill] sm:$0xff] }
 0x341   : > { %4533 = vmatmul.msk.f32.gmra.mxu1 %vm524_vm1, %v3435_v2 }
 0x342   : > { %v3684_v29 = vmul.f32 %v6457_v50, %v3648_v56  ;;  %v3440_v23 = vsel %vm1519_vm3, %v3437_v45, %v7096_v40  ;;  %v3127_v56 = vadd.f32 %v6270_v54, %v7097_v62  ;;  %v6577_v2 = vpop.f32.mrf.mxu3  ;;  %v7104_v40 = vld [vmem:[#allocation62_spill] sm:$0xff] }
 0x344   : > { %v3720_v27 = vadd.f32 %v6463_v8, %v3684_v29  ;;  %v7098_v29 = vld [vmem:[#allocation26_spill] sm:$0xff]  ;;  %v3341_v31 = vadd.f32 %v6485_v22, %v3127_v56  ;;  %v3276_v32 = vpop.f32.mrf.mxu0 }
 0x346   : > { %v3752_v30 = vmax.f32 %v3720_v27, 0.0  ;;  %v7099_v27 = vmax.f32 %v7098_v29, 0.0  ;;  %v3446_v29 = vrot.slane %v6115_v17, 1 }
 0x347   : > { %v3565_v5 = vpop.f32.mrf.mxu1 }
 0x348   : > { %4566 = vmatmul.msk.f32.gmra.mxu2 %vm524_vm1, %v7093_v55  ;;  %v3649_v16 = vadd.f32 %v3565_v5, %v3339_v28  ;;  %4583 = vmatmul.msk.f32.gmra.mxu3 %vm524_vm1, %v3752_v30  ;;  %v3441_v28 = vrot.slane %v6080_v39, 1 }
 0x349   : > { %4534 = vmatmul.msk.f32.gmra.mxu1 %vm524_vm1, %v3438_v49 }
 0x34a   : > { %v3685_v7 = vmul.f32 %v6457_v50, %v3649_v16  ;;  %v3443_v30 = vsel %vm1519_vm3, %v3441_v28, %v3442_v61  ;;  %v3128_v16 = vadd.f32 %v7101_v18, %v7100_v37 }
 0x34c   : > { %v3721_v9 = vadd.f32 %v6463_v8, %v3685_v7  ;;  %v3342_v22 = vadd.f32 %v6506_v42, %v3128_v16 }
 0x34e   : > { %v3753_v46 = vmax.f32 %v3721_v9, 0.0  ;;  %v6595_v9 = vpop.f32.mrf.mxu3 }
 0x34f   : > { %v3568_v0 = vpop.f32.mrf.mxu1 }
 0x350   : > { %4567 = vmatmul.msk.f32.gmra.mxu2 %vm524_vm1, %v7095_v14  ;;  %v3650_v12 = vadd.f32 %v3568_v0, %v3340_v34  ;;  %4584 = vmatmul.msk.f32.gmra.mxu3 %vm524_vm1, %v3753_v46  ;;  %v3279_v14 = vpop.f32.mrf.mxu0  ;;  %v7102_v34 = vld [vmem:[#allocation61_spill] sm:$0xff] }
 0x351   : > { %4535 = vmatmul.msk.f32.gmra.mxu1 %vm524_vm1, %v3440_v23  ;;  %v7103_v46 = vrot.slane %v7102_v34, 1  ;;  %v3129_v23 = vadd.f32 %v6305_v33, %v7104_v40  ;;  %v7110_v40 = vld [vmem:[#allocation52_spill] sm:$0xff] }
 0x352   : > { %v3686_v25 = vmul.f32 %v6457_v50, %v3650_v12 }
 0x353   : > { %v3445_v0 = vsel %vm1519_vm3, %v3442_v61, %v7103_v46  ;;  %v3343_v62 = vadd.f32 %v6525_v38, %v3129_v23  ;;  %v3132_v23 = vadd.f32 %v6361_v15, %v7110_v40  ;;  %v3457_v15 = vrot.slane %v6198_v41, 1  ;;  %v2808_v41 = vld [vmem:[#allocation2 + $0x238] sm:$0xff] }
 0x354   : > { %v3722_v21 = vadd.f32 %v6463_v8, %v3686_v25  ;;  %v3447_v25 = vrot.slane %v6133_v51, 1 }
 0x356   : > { %v3754_v45 = vmax.f32 %v3722_v21, 0.0  ;;  %v6610_v61 = vpop.f32.mrf.mxu3 }
 0x357   : > { %v3571_v55 = vpop.f32.mrf.mxu1 }
 0x358   : > { %4568 = vmatmul.msk.f32.gmra.mxu2 %vm524_vm1, %v7099_v27  ;;  %v3651_v54 = vadd.f32 %v3571_v55, %v3341_v31  ;;  %4585 = vmatmul.msk.f32.gmra.mxu3 %vm524_vm1, %v3754_v45  ;;  %v3448_v31 = vsel %vm1519_vm3, %v3446_v29, %v3447_v25  ;;  %v3282_v33 = vpop.f32.mrf.mxu0  ;;  %v7105_v55 = vld [vmem:[#allocation63_spill] sm:$0xff] }
 0x359   : > { %4536 = vmatmul.msk.f32.gmra.mxu1 %vm524_vm1, %v3443_v30  ;;  %v3130_v51 = vadd.f32 %v6324_v47, %v7105_v55  ;;  %v7108_v47 = vld [vmem:[#allocation65_spill] sm:$0xff] }
 0x35a   : > { %v3687_v5 = vmul.f32 %v6457_v50, %v3651_v54 }
 0x35b   : > { %v3344_v28 = vadd.f32 %v6544_v19, %v3130_v51  ;;  %v3801_v51 = vpop.f32.mrf.mxu2 }
 0x35c   : > { %v3723_v49 = vadd.f32 %v6463_v8, %v3687_v5  ;;  %v7106_v5 = vld [vmem:[#allocation64_spill] sm:$0xff] }
 0x35d   : > { %v7107_v37 = vrot.slane %v7106_v5, 1 }
 0x35e   : > { %v3755_v7 = vmax.f32 %v3723_v49, 0.0  ;;  %v6625_v49 = vpop.f32.mrf.mxu3 }
 0x35f   : > { %v3574_v39 = vpop.f32.mrf.mxu1  ;;  %v3450_v18 = vsel %vm1519_vm3, %v3447_v25, %v7107_v37  ;;  %v3346_v25 = vadd.f32 %v3276_v32, %v3132_v23 }
 0x360   : > { %v3652_v57 = vadd.f32 %v3574_v39, %v3342_v22  ;;  %4586 = vmatmul.msk.f32.gmra.mxu3 %vm524_vm1, %v3755_v7  ;;  %v3131_v22 = vadd.f32 %v6342_v60, %v7108_v47  ;;  %v3285_v7 = vpop.f32.mrf.mxu0  ;;  %v7115_v47 = vld [vmem:[#allocation54_spill] sm:$0xff] }
 0x361   : > { %4537 = vmatmul.msk.f32.gmra.mxu1 %vm524_vm1, %v3445_v0 }
 0x362   : > { %v3688_v12 = vmul.f32 %v6457_v50, %v3652_v57  ;;  %v3345_v39 = vadd.f32 %v6561_v6, %v3131_v22  ;;  %v3134_v22 = vadd.f32 %v6399_v10, %v7115_v47  ;;  %v7124_v47 = vld [vmem:[#allocation37_spill] sm:$0xff] }
 0x364   : > { %v3724_v42 = vadd.f32 %v6463_v8, %v3688_v12  ;;  %v7109_v12 = vld [vmem:[#allocation48_spill] sm:$0xff] }
 0x366   : > { %v3756_v56 = vmax.f32 %v3724_v42, 0.0  ;;  %v6638_v42 = vpop.f32.mrf.mxu3 }
 0x367   : > { %v3577_v21 = vpop.f32.mrf.mxu1 }
 0x368   : > { %v3653_v27 = vadd.f32 %v3577_v21, %v3343_v62  ;;  %4587 = vmatmul.msk.f32.gmra.mxu3 %vm524_vm1, %v3756_v56  ;;  %v3288_v6 = vpop.f32.mrf.mxu0 }
 0x369   : > { %4538 = vmatmul.msk.f32.gmra.mxu1 %vm524_vm1, %v3448_v31  ;;  %v3456_v31 = vrot.slane %v6176_v59, 1 }
 0x36a   : > { %v3689_v45 = vmul.f32 %v6457_v50, %v3653_v27  ;;  %v7111_v27 = vld [vmem:[#allocation35_spill] sm:$0xff] }
 0x36b   : > { %v3458_v37 = vsel %vm1519_vm3, %v3456_v31, %v3457_v15 }
 0x36c   : > { %v3725_v38 = vadd.f32 %v6463_v8, %v3689_v45  ;;  %v7112_v45 = vld [vmem:[#allocation50_spill] sm:$0xff] }
 0x36d   : > { %v3133_v55 = vadd.f32 %v6378_v43, %v7112_v45 }
 0x36e   : > { %v3757_v17 = vmax.f32 %v3725_v38, 0.0  ;;  %v7113_v38 = vld [vmem:[#allocation27_spill] sm:$0xff] }
 0x36f   : > { %v3580_v54 = vpop.f32.mrf.mxu1 }
 0x370   : > { %v3654_v30 = vadd.f32 %v3580_v54, %v3344_v28  ;;  %4588 = vmatmul.msk.f32.gmra.mxu3 %vm524_vm1, %v3757_v17  ;;  %v7114_v28 = vmax.f32 %v7113_v38, 0.0  ;;  %v3347_v17 = vadd.f32 %v3279_v14, %v3133_v55  ;;  %v7121_v38 = vld [vmem:[#allocation57_spill] sm:$0xff] }
 0x371   : > { %4539 = vmatmul.msk.f32.gmra.mxu1 %vm524_vm1, %v3450_v18  ;;  %v3291_v18 = vpop.f32.mrf.mxu0 }
 0x372   : > { %v3690_v16 = vmul.f32 %v6457_v50, %v3654_v30  ;;  %4569 = vmatmul.msk.f32.gmra.mxu2 %vm524_vm1, %v7114_v28  ;;  %v6652_v30 = vpop.f32.mrf.mxu3 }
 0x374   : > { %v3726_v19 = vadd.f32 %v6463_v8, %v3690_v16  ;;  %v3459_v16 = vrot.slane %v2808_v41, 1 }
 0x376   : > { %v3758_v57 = vmax.f32 %v3726_v19, 0.0  ;;  %v3804_v19 = vpop.f32.mrf.mxu2 }
 0x377   : > { %v3583_v34 = vpop.f32.mrf.mxu1 }
 0x378   : > { %v3655_v46 = vadd.f32 %v3583_v34, %v3345_v39  ;;  %4589 = vmatmul.msk.f32.gmra.mxu3 %vm524_vm1, %v3758_v57  ;;  %v7116_v39 = vld [vmem:[#allocation28_spill] sm:$0xff]  ;;  %v3348_v34 = vadd.f32 %v3282_v33, %v3134_v22  ;;  %v3137_v22 = vadd.f32 %v6465_v52, %v7124_v47 }
 0x379   : > { %4540 = vmatmul.msk.f32.gmra.mxu1 %vm524_vm1, %v7109_v12  ;;  %v7117_v57 = vmax.f32 %v7116_v39, 0.0  ;;  %v3460_v12 = vsel %vm1519_vm3, %v3457_v15, %v3459_v16  ;;  %v3294_v10 = vpop.f32.mrf.mxu0 }
 0x37a   : > { %v3691_v0 = vmul.f32 %v6457_v50, %v3655_v46  ;;  %v6666_v23 = vpop.f32.mrf.mxu3 }
 0x37b   : > { %4570 = vmatmul.msk.f32.gmra.mxu2 %vm524_vm1, %v7117_v57  ;;  %v7125_v57 = vld [vmem:[#allocation31_spill] sm:$0xff] }
 0x37c   : > { %v3727_v60 = vadd.f32 %v6463_v8, %v3691_v0 }
 0x37e   : > { %v3759_v62 = vmax.f32 %v3727_v60, 0.0  ;;  %v3807_v33 = vpop.f32.mrf.mxu2 }
 0x37f   : > { %v3586_v56 = vpop.f32.mrf.mxu1 }
 0x380   : > { %v3656_v21 = vadd.f32 %v3586_v56, %v3346_v25  ;;  %4590 = vmatmul.msk.f32.gmra.mxu3 %vm524_vm1, %v3759_v62  ;;  %v7118_v25 = vld [vmem:[#allocation36_spill] sm:$0xff] }
 0x381   : > { %4541 = vmatmul.msk.f32.gmra.mxu1 %vm524_vm1, %v7111_v27  ;;  %v3135_v62 = vadd.f32 %v6418_v20, %v7118_v25  ;;  %v3136_v20 = vadd.f32 %v6438_v26, %v7121_v38 }
 0x382   : > { %v3692_v29 = vmul.f32 %v6457_v50, %v3656_v21  ;;  %v7119_v21 = vld [vmem:[#allocation29_spill] sm:$0xff] }
 0x383   : > { %v3349_v27 = vadd.f32 %v3285_v7, %v3135_v62  ;;  %v3297_v7 = vpop.f32.mrf.mxu0  ;;  %v7127_v62 = vld [vmem:[#allocation38_spill] sm:$0xff] }
 0x384   : > { %v3728_v32 = vadd.f32 %v6463_v8, %v3692_v29  ;;  %v7120_v29 = vmax.f32 %v7119_v21, 0.0 }
 0x386   : > { %v3760_v54 = vmax.f32 %v3728_v32, 0.0  ;;  %4571 = vmatmul.msk.f32.gmra.mxu2 %vm524_vm1, %v7120_v29  ;;  %v6678_v32 = vpop.f32.mrf.mxu3 }
 0x387   : > { %v3589_v5 = vpop.f32.mrf.mxu1 }
 0x388   : > { %v3657_v59 = vadd.f32 %v3589_v5, %v3347_v17  ;;  %4591 = vmatmul.msk.f32.gmra.mxu3 %vm524_vm1, %v3760_v54  ;;  %v3810_v17 = vpop.f32.mrf.mxu2  ;;  %v7122_v54 = vld [vmem:[#allocation30_spill] sm:$0xff] }
 0x389   : > { %4542 = vmatmul.msk.f32.gmra.mxu1 %vm524_vm1, %v3458_v37  ;;  %v7123_v5 = vmax.f32 %v7122_v54, 0.0  ;;  %v3350_v37 = vadd.f32 %v3288_v6, %v3136_v20 }
 0x38a   : > { %v3693_v43 = vmul.f32 %v6457_v50, %v3657_v59 }
 0x38c   : > { %v3729_v14 = vadd.f32 %v6463_v8, %v3693_v43 }
 0x38e   : > { %v3761_v46 = vmax.f32 %v3729_v14, 0.0  ;;  %4572 = vmatmul.msk.f32.gmra.mxu2 %vm524_vm1, %v7123_v5 }
 0x38f   : > { %v3592_v0 = vpop.f32.mrf.mxu1 }
 0x390   : > { %v3658_v40 = vadd.f32 %v3592_v0, %v3348_v34  ;;  %4592 = vmatmul.msk.f32.gmra.mxu3 %vm524_vm1, %v3761_v46  ;;  %v3813_v39 = vpop.f32.mrf.mxu2  ;;  %v7126_v34 = vmax.f32 %v7125_v57, 0.0  ;;  %v3351_v46 = vadd.f32 %v3291_v18, %v3137_v22  ;;  %v7128_v18 = vld [vmem:[#allocation32_spill] sm:$0xff] }
 0x391   : > { %4543 = vmatmul.msk.f32.gmra.mxu1 %vm524_vm1, %v3460_v12  ;;  %v3300_v12 = vpop.f32.mrf.mxu0 }
 0x392   : > { %v3694_v60 = vmul.f32 %v6457_v50, %v3658_v40 }
 0x394   : > { %v3730_v56 = vadd.f32 %v6463_v8, %v3694_v60 }
 0x396   : > { %v3762_v31 = vmax.f32 %v3730_v56, 0.0  ;;  %4573 = vmatmul.msk.f32.gmra.mxu2 %vm524_vm1, %v7126_v34 }
 0x397   : > { %v3595_v15 = vpop.f32.mrf.mxu1 }
 0x398   : > { %v3659_v45 = vadd.f32 %v3595_v15, %v3349_v27  ;;  %4593 = vmatmul.msk.f32.gmra.mxu3 %vm524_vm1, %v3762_v31  ;;  %v3816_v29 = vpop.f32.mrf.mxu2  ;;  %v7129_v27 = vmax.f32 %v7128_v18, 0.0 }
 0x399   : > { %v3303_v38 = vpop.f32.mrf.mxu0 }
 0x39a   : > { %v3695_v55 = vmul.f32 %v6457_v50, %v3659_v45 }
 0x39c   : > { %v3731_v28 = vadd.f32 %v6463_v8, %v3695_v55 }
 0x39e   : > { %v3763_v59 = vmax.f32 %v3731_v28, 0.0  ;;  %4574 = vmatmul.msk.f32.gmra.mxu2 %vm524_vm1, %v7129_v27  ;;  %v7130_v28 = vld [vmem:[#allocation39_spill] sm:$0xff] }
 0x39f   : > { %v3598_v41 = vpop.f32.mrf.mxu1 }
 0x3a0   : > { %v3660_v43 = vadd.f32 %v3598_v41, %v3350_v37  ;;  %4594 = vmatmul.msk.f32.gmra.mxu3 %vm524_vm1, %v3763_v59  ;;  %v3819_v37 = vpop.f32.mrf.mxu2 }
 0x3a2   : > { %v3696_v16 = vmul.f32 %v6457_v50, %v3660_v43 }
 0x3a3   : > { %v4013_v26 = vpop.f32.mrf.mxu3 }
 0x3a4   : > { %v3732_v6 = vadd.f32 %v6463_v8, %v3696_v16  ;;  %v4014_v14 = vadd.f32 %v4013_v26, %v3801_v51  ;;  %v3138_v51 = vadd.f32 %v6482_v63, %v7127_v62  ;;  %v7136_v62 = vld [vmem:[#allocation40_spill] sm:$0xff] }
 0x3a6   : > { %v3764_v0 = vmax.f32 %v3732_v6, 0.0  ;;  %4110 = vst.msk [vmem:[%s6693_s14] sm:$0xff] %vm4109_vm4, %v4014_v14  ;;  %v3352_v31 = vadd.f32 %v3294_v10, %v3138_v51  ;;  %v7131_v10 = vld [vmem:[#allocation33_spill] sm:$0xff] }
 0x3a7   : > { %v3601_v40 = vpop.f32.mrf.mxu1  ;;  %v7132_v59 = vmax.f32 %v7131_v10, 0.0  ;;  %v7133_v6 = vld [vmem:[#allocation5_spill] sm:$0xff] }
 0x3a8   : > { %v3661_v60 = vadd.f32 %v3601_v40, %v3351_v46  ;;  %4595 = vmatmul.msk.f32.gmra.mxu3 %vm524_vm1, %v3764_v0  ;;  %v3822_v34 = vpop.f32.mrf.mxu2 }
 0x3a9   : > { %4575 = vmatmul.msk.f32.gmra.mxu2 %vm524_vm1, %v7132_v59 }
 0x3aa   : > { %v3697_v52 = vmul.f32 %v6457_v50, %v3661_v60 }
 0x3ab   : > { %v4016_v25 = vpop.f32.mrf.mxu3 }
 0x3ac   : > { %v3733_v56 = vadd.f32 %v6463_v8, %v3697_v52  ;;  %v4017_v21 = vadd.f32 %v4016_v25, %v3804_v19  ;;  %v3139_v19 = vadd.f32 %v6499_v24, %v7130_v28  ;;  %v3306_v24 = vpop.f32.mrf.mxu0 }
 0x3ae   : > { %v3765_v15 = vmax.f32 %v3733_v56, 0.0  ;;  %4111 = vst.msk [vmem:[%s6693_s14 + $0x8] sm:$0xff] %vm4109_vm4, %v4017_v21  ;;  %v3353_v41 = vadd.f32 %v3297_v7, %v3139_v19  ;;  %v7134_v7 = vld [vmem:[#allocation34_spill] sm:$0xff] }
 0x3af   : > { %v3604_v45 = vpop.f32.mrf.mxu1  ;;  %v7135_v46 = vmax.f32 %v7134_v7, 0.0 }
 0x3b0   : > { %v3662_v55 = vadd.f32 %v3604_v45, %v3352_v31  ;;  %4596 = vmatmul.msk.f32.gmra.mxu3 %vm524_vm1, %v3765_v15  ;;  %v3825_v21 = vpop.f32.mrf.mxu2 }
 0x3b1   : > { %4576 = vmatmul.msk.f32.gmra.mxu2 %vm524_vm1, %v7135_v46 }
 0x3b2   : > { %v3698_v63 = vmul.f32 %v6457_v50, %v3662_v55 }
 0x3b3   : > { %v4019_v20 = vpop.f32.mrf.mxu3 }
 0x3b4   : > { %v3734_v54 = vadd.f32 %v6463_v8, %v3698_v63  ;;  %v4020_v5 = vadd.f32 %v4019_v20, %v3807_v33  ;;  %v3140_v33 = vadd.f32 %v6521_v53, %v7133_v6  ;;  %v3309_v18 = vpop.f32.mrf.mxu0  ;;  %v7137_v63 = vld [vmem:[#allocation6_spill] sm:$0xff] }
 0x3b6   : > { %v3766_v43 = vmax.f32 %v3734_v54, 0.0  ;;  %4112 = vst.msk [vmem:[%s6693_s14 + $0x10] sm:$0xff] %vm4109_vm4, %v4020_v5  ;;  %v3354_v0 = vadd.f32 %v3300_v12, %v3140_v33 }
 0x3b7   : > { %v3607_v16 = vpop.f32.mrf.mxu1 }
 0x3b8   : > { %v3663_v26 = vadd.f32 %v3607_v16, %v3353_v41  ;;  %4597 = vmatmul.msk.f32.gmra.mxu3 %vm524_vm1, %v3766_v43  ;;  %v3828_v28 = vpop.f32.mrf.mxu2 }
 0x3ba   : > { %v3699_v47 = vmul.f32 %v6457_v50, %v3663_v26 }
 0x3bb   : > { %v4022_v22 = vpop.f32.mrf.mxu3 }
 0x3bc   : > { %v3735_v14 = vadd.f32 %v6463_v8, %v3699_v47  ;;  %v4023_v57 = vadd.f32 %v4022_v22, %v3810_v17  ;;  %v3141_v17 = vadd.f32 %v6537_v4, %v7136_v62  ;;  %v3142_v4 = vadd.f32 %v6558_v44, %v7137_v63  ;;  %v3312_v54 = vpop.f32.mrf.mxu0 }
 0x3bd   : > { %v3143_v44 = vadd.f32 %v6577_v2, %v6351_v36  ;;  %v3144_v36 = vadd.f32 %v6595_v9, %v6367_v13  ;;  %v3145_v13 = vadd.f32 %v6610_v61, %v6380_v35 }
 0x3be   : > { %v3767_v40 = vmax.f32 %v3735_v14, 0.0  ;;  %4113 = vst.msk [vmem:[%s6693_s14 + $0x18] sm:$0xff] %vm4109_vm4, %v4023_v57  ;;  %v3355_v12 = vadd.f32 %v3303_v38, %v3141_v17  ;;  %v3356_v19 = vadd.f32 %v3306_v24, %v3142_v4 }
 0x3bf   : > { %v3610_v60 = vpop.f32.mrf.mxu1  ;;  %v3357_v26 = vadd.f32 %v3309_v18, %v3143_v44  ;;  %v3358_v7 = vadd.f32 %v3312_v54, %v3144_v36 }
 0x3c0   : > { %v3664_v52 = vadd.f32 %v3610_v60, %v3354_v0  ;;  %4598 = vmatmul.msk.f32.gmra.mxu3 %vm524_vm1, %v3767_v40  ;;  %v3831_v16 = vpop.f32.mrf.mxu2 }
 0x3c2   : > { %v3700_v25 = vmul.f32 %v6457_v50, %v3664_v52 }
 0x3c3   : > { %v4025_v53 = vpop.f32.mrf.mxu3 }
 0x3c4   : > { %v3736_v51 = vadd.f32 %v6463_v8, %v3700_v25  ;;  %v4026_v56 = vadd.f32 %v4025_v53, %v3813_v39  ;;  %v3315_v6 = vpop.f32.mrf.mxu0 }
 0x3c5   : > { %v3359_v62 = vadd.f32 %v3315_v6, %v3145_v13 }
 0x3c6   : > { %v3768_v27 = vmax.f32 %v3736_v51, 0.0  ;;  %4114 = vst.msk [vmem:[%s6693_s14 + $0x20] sm:$0xff] %vm4109_vm4, %v4026_v56 }
 0x3c7   : > { %v3613_v31 = vpop.f32.mrf.mxu1 }
 0x3c8   : > { %v3665_v15 = vadd.f32 %v3613_v31, %v3355_v12  ;;  %4599 = vmatmul.msk.f32.gmra.mxu3 %vm524_vm1, %v3768_v27  ;;  %v3834_v57 = vpop.f32.mrf.mxu2  ;;  %v3146_v27 = vadd.f32 %v6625_v49, %v6395_v48 }
 0x3ca   : > { %v3701_v45 = vmul.f32 %v6457_v50, %v3665_v15 }
 0x3cb   : > { %v4028_v55 = vpop.f32.mrf.mxu3 }
 0x3cc   : > { %v3737_v20 = vadd.f32 %v6463_v8, %v3701_v45  ;;  %v4029_v39 = vadd.f32 %v4028_v55, %v3816_v29  ;;  %v3318_v52 = vpop.f32.mrf.mxu0 }
 0x3cd   : > { %v3360_v15 = vadd.f32 %v3318_v52, %v3146_v27 }
 0x3ce   : > { %v3769_v38 = vmax.f32 %v3737_v20, 0.0  ;;  %4115 = vst.msk [vmem:[%s6693_s14 + $0x28] sm:$0xff] %vm4109_vm4, %v4029_v39  ;;  %v7138_v39 = vld [vmem:[#allocation41_spill] sm:$0xff] }
 0x3cf   : > { %v3616_v5 = vpop.f32.mrf.mxu1  ;;  %v3147_v48 = vadd.f32 %v6638_v42, %v7138_v39  ;;  %v3148_v42 = vadd.f32 %v6652_v30, %v6429_v11  ;;  %v3149_v11 = vadd.f32 %v6666_v23, %v6442_v58 }
 0x3d0   : > { %v3666_v10 = vadd.f32 %v3616_v5, %v3356_v19  ;;  %4600 = vmatmul.msk.f32.gmra.mxu3 %vm524_vm1, %v3769_v38  ;;  %v3837_v53 = vpop.f32.mrf.mxu2 }
 0x3d2   : > { %v3702_v59 = vmul.f32 %v6457_v50, %v3666_v10 }
 0x3d3   : > { %v4031_v41 = vpop.f32.mrf.mxu3 }
 0x3d4   : > { %v3738_v43 = vadd.f32 %v6463_v8, %v3702_v59  ;;  %v4032_v29 = vadd.f32 %v4031_v41, %v3819_v37  ;;  %v3321_v31 = vpop.f32.mrf.mxu0 }
 0x3d5   : > { %v3361_v38 = vadd.f32 %v3321_v31, %v3147_v48 }
 0x3d6   : > { %v3770_v47 = vmax.f32 %v3738_v43, 0.0  ;;  %4116 = vst.msk [vmem:[%s6693_s14 + $0x30] sm:$0xff] %vm4109_vm4, %v4032_v29 }
 0x3d7   : > { %v3619_v24 = vpop.f32.mrf.mxu1 }
 0x3d8   : > { %v3667_v22 = vadd.f32 %v3619_v24, %v3357_v26  ;;  %4601 = vmatmul.msk.f32.gmra.mxu3 %vm524_vm1, %v3770_v47 }
 0x3da   : > { %v3703_v33 = vmul.f32 %v6457_v50, %v3667_v22 }
 0x3db   : > { %v4034_v14 = vpop.f32.mrf.mxu3 }
 0x3dc   : > { %v3739_v2 = vadd.f32 %v6463_v8, %v3703_v33  ;;  %v4035_v37 = vadd.f32 %v4034_v14, %v3822_v34  ;;  %v3324_v5 = vpop.f32.mrf.mxu0 }
 0x3dd   : > { %v3362_v26 = vadd.f32 %v3324_v5, %v3148_v42 }
 0x3de   : > { %v3771_v46 = vmax.f32 %v3739_v2, 0.0  ;;  %4117 = vst.msk [vmem:[%s6693_s14 + $0x38] sm:$0xff] %vm4109_vm4, %v4035_v37  ;;  %v7139_v37 = vld [vmem:[#allocation58_spill] sm:$0xff] }
 0x3df   : > { %v3622_v0 = vpop.f32.mrf.mxu1 }
 0x3e0   : > { %v3668_v40 = vadd.f32 %v3622_v0, %v3358_v7  ;;  %4602 = vmatmul.msk.f32.gmra.mxu3 %vm524_vm1, %v3771_v46 }
 0x3e2   : > { %v3704_v60 = vmul.f32 %v6457_v50, %v3668_v40 }
 0x3e3   : > { %v4037_v25 = vpop.f32.mrf.mxu3 }
 0x3e4   : > { %v3740_v9 = vadd.f32 %v6463_v8, %v3704_v60  ;;  %v4038_v34 = vadd.f32 %v4037_v25, %v3825_v21  ;;  %v3840_v21 = vpop.f32.mrf.mxu2  ;;  %v3327_v6 = vpop.f32.mrf.mxu0 }
 0x3e5   : > { %v3363_v46 = vadd.f32 %v3327_v6, %v3149_v11 }
 0x3e6   : > { %v3772_v17 = vmax.f32 %v3740_v9, 0.0  ;;  %4118 = vst.msk [vmem:[%s6693_s14 + $0x40] sm:$0xff] %vm4109_vm4, %v4038_v34 }
 0x3e7   : > { %v3625_v51 = vpop.f32.mrf.mxu1 }
 0x3e8   : > { %v3669_v56 = vadd.f32 %v3625_v51, %v3359_v62  ;;  %4603 = vmatmul.msk.f32.gmra.mxu3 %vm524_vm1, %v3772_v17 }
 0x3ea   : > { %v3705_v18 = vmul.f32 %v6457_v50, %v3669_v56 }
 0x3eb   : > { %v4040_v12 = vpop.f32.mrf.mxu3 }
 0x3ec   : > { %v3741_v35 = vadd.f32 %v6463_v8, %v3705_v18  ;;  %v4041_v61 = vadd.f32 %v4040_v12, %v3828_v28  ;;  %v3843_v19 = vpop.f32.mrf.mxu2  ;;  %v3330_v25 = vpop.f32.mrf.mxu0 }
 0x3ee   : > { %v3773_v45 = vmax.f32 %v3741_v35, 0.0  ;;  %4119 = vst.msk [vmem:[%s6693_s14 + $0x48] sm:$0xff] %vm4109_vm4, %v4041_v61 }
 0x3ef   : > { %v3628_v55 = vpop.f32.mrf.mxu1 }
 0x3f0   : > { %v3670_v63 = vadd.f32 %v3628_v55, %v3360_v15  ;;  %4604 = vmatmul.msk.f32.gmra.mxu3 %vm524_vm1, %v3773_v45 }
 0x3f2   : > { %v3706_v4 = vmul.f32 %v6457_v50, %v3670_v63 }
 0x3f3   : > { %v4043_v20 = vpop.f32.mrf.mxu3 }
 0x3f4   : > { %v3742_v49 = vadd.f32 %v6463_v8, %v3706_v4  ;;  %v4044_v28 = vadd.f32 %v4043_v20, %v3831_v16  ;;  %v3846_v16 = vpop.f32.mrf.mxu2 }
 0x3f6   : > { %v3774_v54 = vmax.f32 %v3742_v49, 0.0  ;;  %4120 = vst.msk [vmem:[%s6693_s14 + $0x50] sm:$0xff] %vm4109_vm4, %v4044_v28 }
 0x3f7   : > { %v3631_v10 = vpop.f32.mrf.mxu1 }
 0x3f8   : > { %v3671_v59 = vadd.f32 %v3631_v10, %v3361_v38  ;;  %4605 = vmatmul.msk.f32.gmra.mxu3 %vm524_vm1, %v3774_v54 }
 0x3fa   : > { %v3707_v41 = vmul.f32 %v6457_v50, %v3671_v59 }
 0x3fb   : > { %v4046_v44 = vpop.f32.mrf.mxu3 }
 0x3fc   : > { %v3743_v43 = vadd.f32 %v6463_v8, %v3707_v41  ;;  %v4047_v29 = vadd.f32 %v4046_v44, %v3834_v57  ;;  %v3849_v2 = vpop.f32.mrf.mxu2  ;;  %v7140_v57 = vld [vmem:[#allocation3_spill] sm:$0xff] }
 0x3fd   : > { %v2219_v7 = vadd.f32 %v7140_v57, %v7139_v37 }
 0x3fe   : > { %v3775_v47 = vmax.f32 %v3743_v43, 0.0  ;;  %4121 = vst.msk [vmem:[%s6693_s14 + $0x58] sm:$0xff] %vm4109_vm4, %v4047_v29 }
 0x3ff   : > { %v3634_v24 = vpop.f32.mrf.mxu1  ;;  %v2433_v60 = vadd.f32 %v6440_v3, %v2219_v7 }
 0x400   : > { %v3672_v22 = vadd.f32 %v3634_v24, %v3362_v26  ;;  %4606 = vmatmul.msk.f32.gmra.mxu3 %vm524_vm1, %v3775_v47 }
 0x401   : > { %v2743_v58 = vadd.f32 %v6579_v1, %v2433_v60 }
 0x402   : > { %v3708_v33 = vmul.f32 %v6457_v50, %v3672_v22 }
 0x403   : > { %v4049_v14 = vpop.f32.mrf.mxu3  ;;  %v3150_v9 = vadd.f32 %v6678_v32, %v2743_v58 }
 0x404   : > { %v3744_v30 = vadd.f32 %v6463_v8, %v3708_v33  ;;  %v4050_v36 = vadd.f32 %v4049_v14, %v3837_v53  ;;  %v3852_v62 = vpop.f32.mrf.mxu2 }
 0x405   : > { %v3364_v17 = vadd.f32 %v3330_v25, %v3150_v9 }
 0x406   : > { %v3776_v0 = vmax.f32 %v3744_v30, 0.0  ;;  %4122 = vst.msk [vmem:[%s6693_s14 + $0x60] sm:$0xff] %vm4109_vm4, %v4050_v36 }
 0x407   : > { %v3637_v40 = vpop.f32.mrf.mxu1 }
 0x408   : > { %v3673_v52 = vadd.f32 %v3637_v40, %v3363_v46  ;;  %4607 = vmatmul.msk.f32.gmra.mxu3 %vm524_vm1, %v3776_v0 }
 0x40a   : > { %v3709_v23 = vmul.f32 %v6457_v50, %v3673_v52 }
 0x40b   : > { %v4052_v13 = vpop.f32.mrf.mxu3 }
 0x40c   : > { %v3745_v34 = vadd.f32 %v6463_v8, %v3709_v23  ;;  %v4053_v53 = vadd.f32 %v4052_v13, %v3840_v21  ;;  %v3855_v35 = vpop.f32.mrf.mxu2 }
 0x40e   : > { %v3777_v51 = vmax.f32 %v3745_v34, 0.0  ;;  %4123 = vst.msk [vmem:[%s6693_s14 + $0x68] sm:$0xff] %vm4109_vm4, %v4053_v53 }
 0x40f   : > { %v3640_v3 = vpop.f32.mrf.mxu1 }
 0x410   : > { %v3674_v56 = vadd.f32 %v3640_v3, %v3364_v17  ;;  %4608 = vmatmul.msk.f32.gmra.mxu3 %vm524_vm1, %v3777_v51 }
 0x412   : > { %v3710_v1 = vmul.f32 %v6457_v50, %v3674_v56 }
 0x413   : > { %v4055_v18 = vpop.f32.mrf.mxu3 }
 0x414   : > { %v3746_v12 = vadd.f32 %v6463_v8, %v3710_v1  ;;  %v4056_v32 = vadd.f32 %v4055_v18, %v3843_v19  ;;  %v3858_v31 = vpop.f32.mrf.mxu2 }
 0x416   : > { %v3778_v27 = vmax.f32 %v3746_v12, 0.0  ;;  %4124 = vst.msk [vmem:[%s6693_s14 + $0x70] sm:$0xff] %vm4109_vm4, %v4056_v32 }
 0x418   : > { %4609 = vmatmul.msk.f32.gmra.mxu3 %vm524_vm1, %v3778_v27 }
 0x41b   : > { %v4058_v61 = vpop.f32.mrf.mxu3 }
 0x41c   : > { %v4059_v21 = vadd.f32 %v4058_v61, %v3846_v16  ;;  %v3861_v45 = vpop.f32.mrf.mxu2 }
 0x41e   : > { %4125 = vst.msk [vmem:[%s6693_s14 + $0x78] sm:$0xff] %vm4109_vm4, %v4059_v21 }
 0x423   : > { %v4061_v15 = vpop.f32.mrf.mxu3 }
 0x424   : > { %v4062_v50 = vadd.f32 %v4061_v15, %v3849_v2  ;;  %v3864_v20 = vpop.f32.mrf.mxu2 }
 0x426   : > { %4126 = vst.msk [vmem:[%s6693_s14 + $0x80] sm:$0xff] %vm4109_vm4, %v4062_v50 }
 0x42b   : > { %v4064_v8 = vpop.f32.mrf.mxu3 }
 0x42c   : > { %v4065_v55 = vadd.f32 %v4064_v8, %v3852_v62  ;;  %v3867_v49 = vpop.f32.mrf.mxu2 }
 0x42e   : > { %4127 = vst.msk [vmem:[%s6693_s14 + $0x88] sm:$0xff] %vm4109_vm4, %v4065_v55 }
 0x433   : > { %v4067_v63 = vpop.f32.mrf.mxu3 }
 0x434   : > { %v4068_v4 = vadd.f32 %v4067_v63, %v3855_v35  ;;  %v3870_v38 = vpop.f32.mrf.mxu2 }
 0x436   : > { %4128 = vst.msk [vmem:[%s6693_s14 + $0x90] sm:$0xff] %vm4109_vm4, %v4068_v4 }
 0x43b   : > { %v4070_v39 = vpop.f32.mrf.mxu3 }
 0x43c   : > { %v4071_v48 = vadd.f32 %v4070_v39, %v3858_v31  ;;  %v3873_v59 = vpop.f32.mrf.mxu2 }
 0x43e   : > { %4129 = vst.msk [vmem:[%s6693_s14 + $0x98] sm:$0xff] %vm4109_vm4, %v4071_v48 }
 0x443   : > { %v4073_v28 = vpop.f32.mrf.mxu3 }
 0x444   : > { %v4074_v19 = vadd.f32 %v4073_v28, %v3861_v45  ;;  %v3876_v43 = vpop.f32.mrf.mxu2 }
 0x446   : > { %4130 = vst.msk [vmem:[%s6693_s14 + $0xa0] sm:$0xff] %vm4109_vm4, %v4074_v19 }
 0x44b   : > { %v4076_v54 = vpop.f32.mrf.mxu3 }
 0x44c   : > { %v4077_v5 = vadd.f32 %v4076_v54, %v3864_v20  ;;  %v3879_v26 = vpop.f32.mrf.mxu2 }
 0x44e   : > { %4131 = vst.msk [vmem:[%s6693_s14 + $0xa8] sm:$0xff] %vm4109_vm4, %v4077_v5 }
 0x453   : > { %v4079_v10 = vpop.f32.mrf.mxu3 }
 0x454   : > { %v4080_v41 = vadd.f32 %v4079_v10, %v3867_v49  ;;  %v3882_v22 = vpop.f32.mrf.mxu2 }
 0x456   : > { %4132 = vst.msk [vmem:[%s6693_s14 + $0xb0] sm:$0xff] %vm4109_vm4, %v4080_v41 }
 0x45b   : > { %v4082_v44 = vpop.f32.mrf.mxu3 }
 0x45c   : > { %v4083_v42 = vadd.f32 %v4082_v44, %v3870_v38  ;;  %v3885_v11 = vpop.f32.mrf.mxu2 }
 0x45e   : > { %4133 = vst.msk [vmem:[%s6693_s14 + $0xb8] sm:$0xff] %vm4109_vm4, %v4083_v42 }
 0x463   : > { %v4085_v29 = vpop.f32.mrf.mxu3 }
 0x464   : > { %v4086_v16 = vadd.f32 %v4085_v29, %v3873_v59  ;;  %v3888_v37 = vpop.f32.mrf.mxu2 }
 0x466   : > { %4134 = vst.msk [vmem:[%s6693_s14 + $0xc0] sm:$0xff] %vm4109_vm4, %v4086_v16 }
 0x46b   : > { %v4088_v47 = vpop.f32.mrf.mxu3 }
 0x46c   : > { %v4089_v24 = vadd.f32 %v4088_v47, %v3876_v43  ;;  %v3891_v46 = vpop.f32.mrf.mxu2 }
 0x46e   : > { %4135 = vst.msk [vmem:[%s6693_s14 + $0xc8] sm:$0xff] %vm4109_vm4, %v4089_v24 }
 0x473   : > { %v4091_v6 = vpop.f32.mrf.mxu3 }
 0x474   : > { %v4092_v33 = vadd.f32 %v4091_v6, %v3879_v26  ;;  %v3894_v60 = vpop.f32.mrf.mxu2 }
 0x476   : > { %4136 = vst.msk [vmem:[%s6693_s14 + $0xd0] sm:$0xff] %vm4109_vm4, %v4092_v33 }
 0x47b   : > { %v4094_v14 = vpop.f32.mrf.mxu3 }
 0x47c   : > { %v4095_v30 = vadd.f32 %v4094_v14, %v3882_v22 }
 0x47e   : > { %4137 = vst.msk [vmem:[%s6693_s14 + $0xd8] sm:$0xff] %vm4109_vm4, %v4095_v30 }
 0x483   : > { %v4097_v36 = vpop.f32.mrf.mxu3 }
 0x484   : > { %v4098_v2 = vadd.f32 %v4097_v36, %v3885_v11 }
 0x486   : > { %4138 = vst.msk [vmem:[%s6693_s14 + $0xe0] sm:$0xff] %vm4109_vm4, %v4098_v2 }
 0x48b   : > { %v4100_v57 = vpop.f32.mrf.mxu3 }
 0x48c   : > { %v4101_v7 = vadd.f32 %v4100_v57, %v3888_v37 }
 0x48e   : > { %4139 = vst.msk [vmem:[%s6693_s14 + $0xe8] sm:$0xff] %vm4109_vm4, %v4101_v7 }
 0x493   : > { %v4103_v0 = vpop.f32.mrf.mxu3 }
 0x494   : > { %v4104_v40 = vadd.f32 %v4103_v0, %v3891_v46 }
 0x496   : > { %4140 = vst.msk [vmem:[%s6693_s14 + $0xf0] sm:$0xff] %vm4109_vm4, %v4104_v40 }
 0x49b   : > { %v4106_v52 = vpop.f32.mrf.mxu3 }
 0x49c   : > { %v4107_v58 = vadd.f32 %v4106_v52, %v3894_v60 }
 0x49e   : > { %4141 = vst.msk [vmem:[%s6693_s14 + $0xf8] sm:$0xff] %vm4109_vm4, %v4107_v58 }
 0x49f PF: > { %s21_s17 = sadd.s32 1, %s4677_s17  }
 0x4a0   : > { %p18_p4 = scmp.ge.s32.totalorder %s21_s17, 4  }
 0x4a2   :  { %20 = sbr.rel (!%p18_p4) target bundleno = 1 (0x1), region = 104 }

</bundles_post_ra>
